<compile_context>
chip_gen: v5e
topology: v5e:2x2
jax: 0.10.0
libtpu: 0.0.40
codegen_flags: <defaults>
</compile_context>

<pallas_src>
import functools
import math

import numpy as np
import jax
import jax.numpy as jnp
from jax.experimental import pallas as pl
from jax.experimental.pallas import tpu as pltpu

# ------------------------- small, MAE-consistent config -------------------------
B = 2                      # batch
C = 3                      # n_channels
SPATIAL = 20               # spatial_dim
PATCH = 5                  # patch_size
GRID = SPATIAL // PATCH    # 4
N_PATCHES = GRID * GRID    # 16
HIDDEN = 32                # hidden_size (scaled down from 768)
DEC_HIDDEN = 32            # decoder_hidden_size
MLP = 64                   # mlp_dim (scaled down from 3072)
DEC_MLP = 64
HEADS = 4
DEC_HEADS = 4
LAYERS = 2                 # num_layers (scaled down from 8)
DEC_LAYERS = 2
MASK_RATIO = 0.75
N_VISIBLE = int((1 - MASK_RATIO) * N_PATCHES)   # 4
N_MASKED = N_PATCHES - N_VISIBLE                # 12

PROJ_W = 128               # lane-dense padded width of the fused stack projections
NEG_INF = -1.0e9           # additive mask value for cross-batch attention entries

# ------------------------------- Pallas kernel ----------------------------------


def _ln(x, g, b, eps=1e-5):
    mu = jnp.mean(x, axis=-1, keepdims=True)
    var = jnp.mean(jnp.square(x - mu), axis=-1, keepdims=True)
    return (x - mu) * jax.lax.rsqrt(var + eps) * g + b


def _stack_kernel(x_ref, mask_ref, aw_ref, mw_ref, vec_ref, fin_ref, pw_ref, pb_ref,
                  o_ref, act_ref, *, num_heads):
    """Fused L-layer pre-LN transformer stack + final LN + (padded) projection.

    grid = (layer,).  Activation (flattened [B*S, D]) stays resident in
    `act_ref` (VMEM scratch) across the layer axis; the three packed weight
    blocks stream through their BlockSpec windows (double buffered).
    """
    l = pl.program_id(0)
    n_layers = pl.num_programs(0)

    BS, D = act_ref.shape
    M = mw_ref.shape[-1] // 2
    H = num_heads
    hd = D // H
    scale = 1.0 / math.sqrt(hd)

    @pl.when(l == 0)
    def _():
        act_ref[...] = x_ref[...]

    x = act_ref[...]                                        # [BS, D]

    # ---- unpack this layer's weights (static slices of lane-dense blocks) ----
    v = vec_ref[0]                                          # [8, VEC_W]
    ln1_g, ln1_b = v[0:1, :D], v[1:2, :D]
    b_qkv = v[2:3, :3 * D]
    bo = v[3:4, :D]
    ln2_g, ln2_b = v[4:5, :D], v[5:6, :D]
    b1 = v[6:7, :M]
    b2 = v[7:8, :D]

    aw = aw_ref[0]                                          # [D, 4D]
    w_qkv, wo = aw[:, :3 * D], aw[:, 3 * D:4 * D]
    mw = mw_ref[0]                                          # [D, 2M]
    w1, w2t = mw[:, :M], mw[:, M:2 * M]                     # w2t == W2^T  [D, M]

    # --- attention sub-block (pre-LN), fused QKV, block-diagonal batch mask ---
    h = _ln(x, ln1_g, ln1_b)
    qkv = jnp.dot(h, w_qkv, preferred_element_type=jnp.float32) + b_qkv   # [BS, 3D]
    amask = mask_ref[...]                                   # [BS, BS] additive mask
    heads = []
    for hh in range(H):                                     # static unrolled loop
        q = qkv[:, hh * hd:(hh + 1) * hd]
        k = qkv[:, D + hh * hd:D + (hh + 1) * hd]
        val = qkv[:, 2 * D + hh * hd:2 * D + (hh + 1) * hd]
        s = jax.lax.dot_general(q, k, (((1,), (1,)), ((), ())),
                                preferred_element_type=jnp.float32) * scale
        s = s + amask                                       # kill cross-batch attention
        s = s - jnp.max(s, axis=-1, keepdims=True)
        p = jnp.exp(s)
        p = p * pl.reciprocal(jnp.sum(p, axis=-1, keepdims=True), approx=True)
        heads.append(jnp.dot(p, val, preferred_element_type=jnp.float32))  # [BS, hd]
    attn = jnp.concatenate(heads, axis=-1)                  # [BS, D]
    x = x + jnp.dot(attn, wo, preferred_element_type=jnp.float32) + bo

    # --- MLP sub-block (pre-LN) ---
    h2 = _ln(x, ln2_g, ln2_b)
    m = jnp.dot(h2, w1, preferred_element_type=jnp.float32) + b1
    # TODO(synk): reference nn.GELU is exact-erf; tanh-approx GELU used here.
    m = jax.nn.gelu(m)
    m2 = jax.lax.dot_general(m, w2t, (((1,), (1,)), ((), ())),
                             preferred_element_type=jnp.float32) + b2
    x = x + m2

    act_ref[...] = x                                        # keep activation resident

    # --- epilogue: final LayerNorm + fused lane-dense projection, last layer ---
    @pl.when(l == n_layers - 1)
    def _():
        y = _ln(x, fin_ref[0:1, :], fin_ref[1:2, :])
        o_ref[...] = (jnp.dot(y, pw_ref[...], preferred_element_type=jnp.float32)
                      + pb_ref[...]).astype(o_ref.dtype)


def transformer_stack(x, stack, final_gb, proj_w, proj_b, *, num_heads):
    """x: [B, S, D] -> [B, S, PROJ_W] (padded).  One pallas_call for the stack."""
    Bb, S, D = x.shape
    L, _, AW = stack["attn_w"].shape
    MW = stack["mlp_w"].shape[-1]
    VW = stack["vecs"].shape[-1]
    Dout = proj_w.shape[1]
    BS = Bb * S

    x2d = x.reshape(BS, D)

    # Constant additive attention mask (block-diagonal over the folded batch).
    bid = np.repeat(np.arange(Bb), S)
    attn_mask = jnp.asarray(
        np.where(bid[:, None] == bid[None, :], 0.0, NEG_INF), dtype=jnp.float32)

    out2d = pl.pallas_call(
        functools.partial(_stack_kernel, num_heads=num_heads),
        out_shape=jax.ShapeDtypeStruct((BS, Dout), jnp.float32),
        grid=(L,),
        in_specs=[
            pl.BlockSpec((BS, D), lambda l: (0, 0)),        # activation input
            pl.BlockSpec((BS, BS), lambda l: (0, 0)),       # batch attention mask
            pl.BlockSpec((1, D, AW), lambda l: (l, 0, 0)),  # packed attn weights
            pl.BlockSpec((1, D, MW), lambda l: (l, 0, 0)),  # packed MLP weights
            pl.BlockSpec((1, 8, VW), lambda l: (l, 0, 0)),  # packed LN/bias vectors
            pl.BlockSpec((2, D), lambda l: (0, 0)),         # final LN gamma/beta
            pl.BlockSpec((D, Dout), lambda l: (0, 0)),      # fused projection W (padded)
            pl.BlockSpec((1, Dout), lambda l: (0, 0)),      # fused projection b (padded)
        ],
        out_specs=pl.BlockSpec((BS, Dout), lambda l: (0, 0)),
        scratch_shapes=[pltpu.VMEM((BS, D), jnp.float32)],
        compiler_params=pltpu.CompilerParams(
            dimension_semantics=("arbitrary",)),
    )(x2d, attn_mask, stack["attn_w"], stack["mlp_w"], stack["vecs"],
      final_gb, proj_w, proj_b)
    return out2d.reshape(Bb, S, Dout)


# -------------------------- parameter / pos-emb setup ---------------------------


def sincos_1d(embed_dim, pos):
    omega = np.arange(embed_dim // 2, dtype=np.float64)
    omega /= embed_dim / 2.0
    omega = 1.0 / 10000 ** omega
    pos = pos.reshape(-1).astype(np.float64)
    out = np.einsum("m,d->md", pos, omega)
    return np.concatenate([np.sin(out), np.cos(out)], axis=1)


def sincos_2d(hidden, grid_size, cls_token=True):
    # matches PositionalEncoding (torch.meshgrid default 'ij', w first)
    gw, gh = np.meshgrid(np.arange(grid_size), np.arange(grid_size), indexing="ij")
    grid = np.stack([gw, gh], axis=0).reshape(2, 1, grid_size, grid_size)
    emb_h = sincos_1d(hidden // 2, grid[0])
    emb_w = sincos_1d(hidden // 2, grid[1])
    emb = np.concatenate([emb_h, emb_w], axis=1)
    if cls_token:
        emb = np.concatenate([np.zeros((1, hidden)), emb], axis=0)
    return emb.astype(np.float32)


def init_linear(key, fan_in, fan_out):
    kw, kb = jax.random.split(key)
    bound = 1.0 / math.sqrt(fan_in)
    w = jax.random.uniform(kw, (fan_in, fan_out), jnp.float32, -bound, bound)
    b = jax.random.uniform(kb, (1, fan_out), jnp.float32, -bound, bound)
    return w, b


def _pad_cols(w, width):
    return jnp.pad(w, ((0, 0), (0, width - w.shape[1])))


def init_block_packed(key, dim, mlp_dim, vec_w):
    ks = jax.random.split(key, 6)
    wq, bq = init_linear(ks[0], dim, dim)
    wk, bk = init_linear(ks[1], dim, dim)
    wv, bv = init_linear(ks[2], dim, dim)
    wo, bo = init_linear(ks[3], dim, dim)
    w1, b1 = init_linear(ks[4], dim, mlp_dim)
    w2, b2 = init_linear(ks[5], mlp_dim, dim)

    attn_w = jnp.concatenate([wq, wk, wv, wo], axis=1)          # [D, 4D] lane-dense
    mlp_w = jnp.concatenate([w1, w2.T], axis=1)                 # [D, 2M] lane-dense

    def row(vec):
        vec = jnp.asarray(vec, jnp.float32).reshape(1, -1)
        return _pad_cols(vec, vec_w)

    vecs = jnp.concatenate([
        row(jnp.ones((dim,))), row(jnp.zeros((dim,))),          # LN1 gamma, beta
        row(jnp.concatenate([bq.reshape(-1), bk.reshape(-1), bv.reshape(-1)])),
        row(bo.reshape(-1)),
        row(jnp.ones((dim,))), row(jnp.zeros((dim,))),          # LN2 gamma, beta
        row(b1.reshape(-1)), row(b2.reshape(-1)),
    ], axis=0)                                                  # [8, vec_w]
    return attn_w, mlp_w, vecs


def init_stack(key, num_layers, dim, mlp_dim, num_heads):
    assert dim % num_heads == 0
    vec_w = ((max(3 * dim, mlp_dim, dim) + 127) // 128) * 128
    blocks = [init_block_packed(k, dim, mlp_dim, vec_w)
              for k in jax.random.split(key, num_layers)]
    return {
        "attn_w": jnp.stack([blk[0] for blk in blocks], axis=0),   # [L, D, 4D]
        "mlp_w": jnp.stack([blk[1] for blk in blocks], axis=0),    # [L, D, 2M]
        "vecs": jnp.stack([blk[2] for blk in blocks], axis=0),     # [L, 8, vec_w]
    }


def init_mae_params(key):
    keys = jax.random.split(key, 5)
    params = {}
    params["patch_w"], params["patch_b"] = init_linear(keys[0], C * PATCH * PATCH, HIDDEN)

    dec_emb_w, dec_emb_b = init_linear(keys[1], HIDDEN, DEC_HIDDEN)
    out_w, out_b = init_linear(keys[2], DEC_HIDDEN, C * PATCH * PATCH)
    assert DEC_HIDDEN <= PROJ_W and C * PATCH * PATCH <= PROJ_W
    # Lane-dense (128-wide) padded fused projections; sliced back in XLA.
    params["dec_emb_w"] = _pad_cols(dec_emb_w, PROJ_W)
    params["dec_emb_b"] = _pad_cols(dec_emb_b, PROJ_W)
    params["out_w"] = _pad_cols(out_w, PROJ_W)
    params["out_b"] = _pad_cols(out_b, PROJ_W)

    params["enc_stack"] = init_stack(keys[3], LAYERS, HIDDEN, MLP, HEADS)
    params["dec_stack"] = init_stack(keys[4], DEC_LAYERS, DEC_HIDDEN, DEC_MLP, DEC_HEADS)

    params["enc_norm"] = jnp.stack([jnp.ones(HIDDEN), jnp.zeros(HIDDEN)]).astype(jnp.float32)
    params["dec_norm"] = jnp.stack([jnp.ones(DEC_HIDDEN), jnp.zeros(DEC_HIDDEN)]).astype(jnp.float32)

    params["cls_token"] = jnp.zeros((1, 1, HIDDEN))        # nn.Parameter(torch.zeros)
    params["mask_token"] = jnp.zeros((1, 1, DEC_HIDDEN))   # nn.Parameter(torch.zeros)
    params["pos_emb"] = jnp.asarray(sincos_2d(HIDDEN, GRID, cls_token=True))          # [N+1, H]
    params["dec_pos_emb"] = jnp.asarray(sincos_2d(DEC_HIDDEN, GRID, cls_token=True))  # [N+1, Hd]
    return params


# --------------------------------- MAE forward ----------------------------------


def extract_patches(x):
    """NCHW -> [B, N, C*p*p]  (matches GridPatch + permute + view)."""
    Bb, Cc, H, W = x.shape
    gh, gw = H // PATCH, W // PATCH
    xp = x.reshape(Bb, Cc, gh, PATCH, gw, PATCH)
    xp = xp.transpose(0, 2, 4, 1, 3, 5)             # [B, gh, gw, C, p, p]
    return xp.reshape(Bb, gh * gw, Cc * PATCH * PATCH)


def mae_forward(x, params, key):
    Bb = x.shape[0]
    x_patches = extract_patches(x)                                    # [B, N, C*p*p]

    # ---------------- forward_encode (patch embed + pos emb: tiny XLA glue) ----
    emb = jnp.einsum("bnp,ph->bnh", x_patches, params["patch_w"]) + params["patch_b"]
    emb = emb + params["pos_emb"][None, 1:, :]

    # random_sample_tokens: per-batch random permutation via one argsort of noise
    noise = jax.random.uniform(key, (Bb, N_PATCHES))
    shuffled = jnp.argsort(noise, axis=1)
    visible_idxs = shuffled[:, :N_VISIBLE]                            # [B, n_vis]
    masked_idxs = shuffled[:, N_VISIBLE:]                             # [B, n_mask]
    visible_tokens = jnp.take_along_axis(emb, visible_idxs[:, :, None], axis=1)

    cls = params["cls_token"] + params["pos_emb"][:1][None]           # [1, 1, H]
    cls = jnp.broadcast_to(cls, (Bb, 1, HIDDEN))
    tokens = jnp.concatenate([cls, visible_tokens], axis=1)           # [B, 1+n_vis, H]

    # fused: encoder blocks + encoder LayerNorm + decoder_embedding linear
    x_emb = transformer_stack(tokens, params["enc_stack"], params["enc_norm"],
                              params["dec_emb_w"], params["dec_emb_b"],
                              num_heads=HEADS)[..., :DEC_HIDDEN]      # [B, 1+n_vis, Hd]

    # ---------------- forward_decode (un-shuffle glue in XLA) ----------------
    mask_tokens = jnp.broadcast_to(params["mask_token"], (Bb, N_MASKED, DEC_HIDDEN))
    x_plus = jnp.concatenate([x_emb[:, 1:, :], mask_tokens], axis=1)  # [B, N, Hd]
    shuffled_idxs = jnp.concatenate([visible_idxs, masked_idxs], axis=1)
    sorted_idxs = jnp.argsort(shuffled_idxs, axis=1)
    x_plus = jnp.take_along_axis(x_plus, sorted_idxs[:, :, None], axis=1)
    x_plus = jnp.concatenate([x_emb[:, :1, :], x_plus], axis=1)       # [B, N+1, Hd]
    x_plus = x_plus + params["dec_pos_emb"][None]

    # fused: decoder blocks + decoder LayerNorm + output projection
    out = transformer_stack(x_plus, params["dec_stack"], params["dec_norm"],
                            params["out_w"], params["out_b"],
                            num_heads=DEC_HEADS)[..., :C * PATCH * PATCH]
    out = out.reshape(Bb, N_PATCHES + 1, C, PATCH, PATCH)
    x_patches_pred = out[:, 1:]                                       # drop cls

    # ---------------- final gathers ----------------
    masked_sorted = jnp.sort(masked_idxs, axis=1)
    masked_patches_pred = jnp.take_along_axis(
        x_patches_pred, masked_sorted[:, :, None, None, None], axis=1)
    masked_patches_true = jnp.take_along_axis(
        x_patches, masked_sorted[:, :, None], axis=1
    ).reshape(Bb, N_MASKED, C, PATCH, PATCH)
    return masked_patches_pred, masked_patches_true


# ------------------------------------ main --------------------------------------

if __name__ == "__main__":
    root = jax.random.PRNGKey(0)
    pkey, xkey, mkey = jax.random.split(root, 3)
    params = init_mae_params(pkey)
    x = jax.random.normal(xkey, (B, C, SPATIAL, SPATIAL), jnp.float32)

    fwd = jax.jit(mae_forward)
    pred, true = fwd(x, params, mkey)
    jax.block_until_ready((pred, true))

    assert pred.shape == (B, N_MASKED, C, PATCH, PATCH), pred.shape
    assert true.shape == (B, N_MASKED, C, PATCH, PATCH), true.shape
    assert jnp.all(jnp.isfinite(pred)) and jnp.all(jnp.isfinite(true))
    print("KERNEL_OK")
</pallas_src>

<mosaic_0001>
module attributes {stable_mosaic.version = 11 : i64} {
  func.func @_stack_kernel(%arg0: i32, %arg1: memref<10x32xf32, #tpu.memory_space<vmem>>, %arg2: memref<10x10xf32, #tpu.memory_space<vmem>>, %arg3: memref<1x32x128xf32, #tpu.memory_space<vmem>>, %arg4: memref<1x32x128xf32, #tpu.memory_space<vmem>>, %arg5: memref<1x8x128xf32, #tpu.memory_space<vmem>>, %arg6: memref<2x32xf32, #tpu.memory_space<vmem>>, %arg7: memref<32x128xf32, #tpu.memory_space<vmem>>, %arg8: memref<1x128xf32, #tpu.memory_space<vmem>>, %arg9: memref<10x128xf32, #tpu.memory_space<vmem>>, %arg10: memref<10x32xf32, #tpu.memory_space<vmem>>) attributes {dimension_semantics = [#tpu.dimension_semantics<arbitrary>], iteration_bounds = array<i64: 2>, scalar_prefetch = 0 : i64, scratch_operands = 1 : i64, tpu.core_type = #tpu.core_type<tc>, window_params = [{pipeline_mode = #tpu.pipeline_mode<synchronous>, transform_indices = @transform_0, window_bounds = array<i64: 10, 32>}, {pipeline_mode = #tpu.pipeline_mode<synchronous>, transform_indices = @transform_1, window_bounds = array<i64: 10, 10>}, {transform_indices = @transform_2, window_bounds = array<i64: 1, 32, 128>}, {transform_indices = @transform_3, window_bounds = array<i64: 1, 32, 128>}, {transform_indices = @transform_4, window_bounds = array<i64: 1, 8, 128>}, {pipeline_mode = #tpu.pipeline_mode<synchronous>, transform_indices = @transform_5, window_bounds = array<i64: 2, 32>}, {pipeline_mode = #tpu.pipeline_mode<synchronous>, transform_indices = @transform_6, window_bounds = array<i64: 32, 128>}, {pipeline_mode = #tpu.pipeline_mode<synchronous>, transform_indices = @transform_7, window_bounds = array<i64: 1, 128>}, {pipeline_mode = #tpu.pipeline_mode<synchronous>, transform_indices = @transform_8, window_bounds = array<i64: 10, 128>}]} {
    %c0_i32 = arith.constant 0 : i32
    %0 = arith.cmpi eq, %arg0, %c0_i32 : i32
    %1 = arith.extui %0 : i1 to i32
    %c0_i32_0 = arith.constant 0 : i32
    %2 = arith.cmpi ne, %1, %c0_i32_0 : i32
    scf.if %2 {
      %c0_53 = arith.constant 0 : index
      %c0_54 = arith.constant 0 : index
      %171 = vector.load %arg1[%c0_53, %c0_54] : memref<10x32xf32, #tpu.memory_space<vmem>>, vector<10x32xf32>
      %c0_55 = arith.constant 0 : index
      %c0_56 = arith.constant 0 : index
      %172 = vector.load %arg10[%c0_55, %c0_56] : memref<10x32xf32, #tpu.memory_space<vmem>>, vector<10x32xf32>
      tpu.vector_store %arg10[%c0_55, %c0_56], %171 {strides = array<i32>} : memref<10x32xf32, #tpu.memory_space<vmem>>, vector<10x32xf32>,
    } else {
    }
    %c0 = arith.constant 0 : index
    %c0_1 = arith.constant 0 : index
    %3 = vector.load %arg10[%c0, %c0_1] : memref<10x32xf32, #tpu.memory_space<vmem>>, vector<10x32xf32>
    %c0_2 = arith.constant 0 : index
    %c0_3 = arith.constant 0 : index
    %c0_4 = arith.constant 0 : index
    %4 = vector.load %arg5[%c0_2, %c0_3, %c0_4] : memref<1x8x128xf32, #tpu.memory_space<vmem>>, vector<1x8x128xf32>
    %5 = vector.shape_cast %4 : vector<1x8x128xf32> to vector<8x128xf32>
    %6 = vector.extract_strided_slice %5 {offsets = [0, 0], sizes = [1, 32], strides = [1, 1]} : vector<8x128xf32> to vector<1x32xf32>
    %7 = vector.extract_strided_slice %5 {offsets = [1, 0], sizes = [1, 32], strides = [1, 1]} : vector<8x128xf32> to vector<1x32xf32>
    %8 = vector.extract_strided_slice %5 {offsets = [2, 0], sizes = [1, 96], strides = [1, 1]} : vector<8x128xf32> to vector<1x96xf32>
    %9 = vector.extract_strided_slice %5 {offsets = [3, 0], sizes = [1, 32], strides = [1, 1]} : vector<8x128xf32> to vector<1x32xf32>
    %10 = vector.extract_strided_slice %5 {offsets = [4, 0], sizes = [1, 32], strides = [1, 1]} : vector<8x128xf32> to vector<1x32xf32>
    %11 = vector.extract_strided_slice %5 {offsets = [5, 0], sizes = [1, 32], strides = [1, 1]} : vector<8x128xf32> to vector<1x32xf32>
    %12 = vector.extract_strided_slice %5 {offsets = [6, 0], sizes = [1, 64], strides = [1, 1]} : vector<8x128xf32> to vector<1x64xf32>
    %13 = vector.extract_strided_slice %5 {offsets = [7, 0], sizes = [1, 32], strides = [1, 1]} : vector<8x128xf32> to vector<1x32xf32>
    %c0_5 = arith.constant 0 : index
    %c0_6 = arith.constant 0 : index
    %c0_7 = arith.constant 0 : index
    %14 = vector.load %arg3[%c0_5, %c0_6, %c0_7] : memref<1x32x128xf32, #tpu.memory_space<vmem>>, vector<1x32x128xf32>
    %15 = vector.shape_cast %14 : vector<1x32x128xf32> to vector<32x128xf32>
    %16 = vector.extract_strided_slice %15 {offsets = [0, 0], sizes = [32, 96], strides = [1, 1]} : vector<32x128xf32> to vector<32x96xf32>
    %17 = vector.extract_strided_slice %15 {offsets = [0, 96], sizes = [32, 32], strides = [1, 1]} : vector<32x128xf32> to vector<32x32xf32>
    %c0_8 = arith.constant 0 : index
    %c0_9 = arith.constant 0 : index
    %c0_10 = arith.constant 0 : index
    %18 = vector.load %arg4[%c0_8, %c0_9, %c0_10] : memref<1x32x128xf32, #tpu.memory_space<vmem>>, vector<1x32x128xf32>
    %19 = vector.shape_cast %18 : vector<1x32x128xf32> to vector<32x128xf32>
    %20 = vector.extract_strided_slice %19 {offsets = [0, 0], sizes = [32, 64], strides = [1, 1]} : vector<32x128xf32> to vector<32x64xf32>
    %21 = vector.extract_strided_slice %19 {offsets = [0, 64], sizes = [32, 64], strides = [1, 1]} : vector<32x128xf32> to vector<32x64xf32>
    %cst = arith.constant dense<0.000000e+00> : vector<10xf32>
    %22 = vector.multi_reduction <add>, %3, %cst [1] : vector<10x32xf32> to vector<10xf32>
    %23 = vector.shape_cast %22 : vector<10xf32> to vector<10x1xf32>
    %cst_11 = arith.constant 3.200000e+01 : f32
    %24 = vector.broadcast %cst_11 : f32 to vector<10x1xf32>
    %25 = arith.divf %23, %24 : vector<10x1xf32>
    %26 = vector.broadcast %25 : vector<10x1xf32> to vector<10x32xf32>
    %27 = arith.subf %3, %26 : vector<10x32xf32>
    %28 = arith.mulf %27, %27 : vector<10x32xf32>
    %cst_12 = arith.constant dense<0.000000e+00> : vector<10xf32>
    %29 = vector.multi_reduction <add>, %28, %cst_12 [1] : vector<10x32xf32> to vector<10xf32>
    %30 = vector.shape_cast %29 : vector<10xf32> to vector<10x1xf32>
    %cst_13 = arith.constant 3.200000e+01 : f32
    %31 = vector.broadcast %cst_13 : f32 to vector<10x1xf32>
    %32 = arith.divf %30, %31 : vector<10x1xf32>
    %33 = vector.broadcast %25 : vector<10x1xf32> to vector<10x32xf32>
    %34 = arith.subf %3, %33 : vector<10x32xf32>
    %cst_14 = arith.constant 9.99999974E-6 : f32
    %35 = vector.broadcast %cst_14 : f32 to vector<10x1xf32>
    %36 = arith.addf %32, %35 : vector<10x1xf32>
    %37 = math.rsqrt %36 : vector<10x1xf32>
    %38 = vector.broadcast %37 : vector<10x1xf32> to vector<10x32xf32>
    %39 = arith.mulf %34, %38 : vector<10x32xf32>
    %40 = vector.broadcast %6 : vector<1x32xf32> to vector<10x32xf32>
    %41 = arith.mulf %39, %40 : vector<10x32xf32>
    %42 = vector.broadcast %7 : vector<1x32xf32> to vector<10x32xf32>
    %43 = arith.addf %41, %42 : vector<10x32xf32>
    %cst_15 = arith.constant dense<0.000000e+00> : vector<10x96xf32>
    %44 = tpu.matmul %43, %16, %cst_15 {dimension_numbers = #tpu.dot_dimension_numbers<[1], [0], [0], [1], [0, 0, 1, 1], [], []>} : vector<10x32xf32>, vector<32x96xf32>, vector<10x96xf32> -> vector<10x96xf32>
    %45 = vector.broadcast %8 : vector<1x96xf32> to vector<10x96xf32>
    %46 = arith.addf %44, %45 : vector<10x96xf32>
    %c0_16 = arith.constant 0 : index
    %c0_17 = arith.constant 0 : index
    %47 = vector.load %arg2[%c0_16, %c0_17] : memref<10x10xf32, #tpu.memory_space<vmem>>, vector<10x10xf32>
    %48 = vector.extract_strided_slice %46 {offsets = [0, 0], sizes = [10, 8], strides = [1, 1]} : vector<10x96xf32> to vector<10x8xf32>
    %49 = vector.extract_strided_slice %46 {offsets = [0, 32], sizes = [10, 8], strides = [1, 1]} : vector<10x96xf32> to vector<10x8xf32>
    %50 = vector.extract_strided_slice %46 {offsets = [0, 64], sizes = [10, 8], strides = [1, 1]} : vector<10x96xf32> to vector<10x8xf32>
    %cst_18 = arith.constant dense<0.000000e+00> : vector<10x10xf32>
    %51 = tpu.matmul %48, %49, %cst_18 {dimension_numbers = #tpu.dot_dimension_numbers<[1], [1], [0], [0], [0, 0, 1, 0], [], []>} : vector<10x8xf32>, vector<10x8xf32>, vector<10x10xf32> -> vector<10x10xf32>
    %cst_19 = arith.constant 0.353553385 : f32
    %52 = vector.broadcast %cst_19 : f32 to vector<10x10xf32>
    %53 = arith.mulf %51, %52 : vector<10x10xf32>
    %54 = arith.addf %53, %47 : vector<10x10xf32>
    %cst_20 = arith.constant dense<0xFF800000> : vector<10xf32>
    %55 = vector.multi_reduction <maximumf>, %54, %cst_20 [1] : vector<10x10xf32> to vector<10xf32>
    %56 = vector.shape_cast %55 : vector<10xf32> to vector<10x1xf32>
    %57 = vector.broadcast %56 : vector<10x1xf32> to vector<10x10xf32>
    %58 = arith.subf %54, %57 : vector<10x10xf32>
    %59 = math.exp %58 : vector<10x10xf32>
    %cst_21 = arith.constant dense<0.000000e+00> : vector<10xf32>
    %60 = vector.multi_reduction <add>, %59, %cst_21 [1] : vector<10x10xf32> to vector<10xf32>
    %61 = vector.shape_cast %60 : vector<10xf32> to vector<10x1xf32>
    %62 = tpu.reciprocal %61 {approx = true} : vector<10x1xf32> -> vector<10x1xf32>
    %63 = vector.broadcast %62 : vector<10x1xf32> to vector<10x10xf32>
    %64 = arith.mulf %59, %63 : vector<10x10xf32>
    %cst_22 = arith.constant dense<0.000000e+00> : vector<10x8xf32>
    %65 = tpu.matmul %64, %50, %cst_22 {dimension_numbers = #tpu.dot_dimension_numbers<[1], [0], [0], [1], [0, 0, 1, 1], [], []>} : vector<10x10xf32>, vector<10x8xf32>, vector<10x8xf32> -> vector<10x8xf32>
    %66 = vector.extract_strided_slice %46 {offsets = [0, 8], sizes = [10, 8], strides = [1, 1]} : vector<10x96xf32> to vector<10x8xf32>
    %67 = vector.extract_strided_slice %46 {offsets = [0, 40], sizes = [10, 8], strides = [1, 1]} : vector<10x96xf32> to vector<10x8xf32>
    %68 = vector.extract_strided_slice %46 {offsets = [0, 72], sizes = [10, 8], strides = [1, 1]} : vector<10x96xf32> to vector<10x8xf32>
    %cst_23 = arith.constant dense<0.000000e+00> : vector<10x10xf32>
    %69 = tpu.matmul %66, %67, %cst_23 {dimension_numbers = #tpu.dot_dimension_numbers<[1], [1], [0], [0], [0, 0, 1, 0], [], []>} : vector<10x8xf32>, vector<10x8xf32>, vector<10x10xf32> -> vector<10x10xf32>
    %cst_24 = arith.constant 0.353553385 : f32
    %70 = vector.broadcast %cst_24 : f32 to vector<10x10xf32>
    %71 = arith.mulf %69, %70 : vector<10x10xf32>
    %72 = arith.addf %71, %47 : vector<10x10xf32>
    %cst_25 = arith.constant dense<0xFF800000> : vector<10xf32>
    %73 = vector.multi_reduction <maximumf>, %72, %cst_25 [1] : vector<10x10xf32> to vector<10xf32>
    %74 = vector.shape_cast %73 : vector<10xf32> to vector<10x1xf32>
    %75 = vector.broadcast %74 : vector<10x1xf32> to vector<10x10xf32>
    %76 = arith.subf %72, %75 : vector<10x10xf32>
    %77 = math.exp %76 : vector<10x10xf32>
    %cst_26 = arith.constant dense<0.000000e+00> : vector<10xf32>
    %78 = vector.multi_reduction <add>, %77, %cst_26 [1] : vector<10x10xf32> to vector<10xf32>
    %79 = vector.shape_cast %78 : vector<10xf32> to vector<10x1xf32>
    %80 = tpu.reciprocal %79 {approx = true} : vector<10x1xf32> -> vector<10x1xf32>
    %81 = vector.broadcast %80 : vector<10x1xf32> to vector<10x10xf32>
    %82 = arith.mulf %77, %81 : vector<10x10xf32>
    %cst_27 = arith.constant dense<0.000000e+00> : vector<10x8xf32>
    %83 = tpu.matmul %82, %68, %cst_27 {dimension_numbers = #tpu.dot_dimension_numbers<[1], [0], [0], [1], [0, 0, 1, 1], [], []>} : vector<10x10xf32>, vector<10x8xf32>, vector<10x8xf32> -> vector<10x8xf32>
    %84 = vector.extract_strided_slice %46 {offsets = [0, 16], sizes = [10, 8], strides = [1, 1]} : vector<10x96xf32> to vector<10x8xf32>
    %85 = vector.extract_strided_slice %46 {offsets = [0, 48], sizes = [10, 8], strides = [1, 1]} : vector<10x96xf32> to vector<10x8xf32>
    %86 = vector.extract_strided_slice %46 {offsets = [0, 80], sizes = [10, 8], strides = [1, 1]} : vector<10x96xf32> to vector<10x8xf32>
    %cst_28 = arith.constant dense<0.000000e+00> : vector<10x10xf32>
    %87 = tpu.matmul %84, %85, %cst_28 {dimension_numbers = #tpu.dot_dimension_numbers<[1], [1], [0], [0], [0, 0, 1, 0], [], []>} : vector<10x8xf32>, vector<10x8xf32>, vector<10x10xf32> -> vector<10x10xf32>
    %cst_29 = arith.constant 0.353553385 : f32
    %88 = vector.broadcast %cst_29 : f32 to vector<10x10xf32>
    %89 = arith.mulf %87, %88 : vector<10x10xf32>
    %90 = arith.addf %89, %47 : vector<10x10xf32>
    %cst_30 = arith.constant dense<0xFF800000> : vector<10xf32>
    %91 = vector.multi_reduction <maximumf>, %90, %cst_30 [1] : vector<10x10xf32> to vector<10xf32>
    %92 = vector.shape_cast %91 : vector<10xf32> to vector<10x1xf32>
    %93 = vector.broadcast %92 : vector<10x1xf32> to vector<10x10xf32>
    %94 = arith.subf %90, %93 : vector<10x10xf32>
    %95 = math.exp %94 : vector<10x10xf32>
    %cst_31 = arith.constant dense<0.000000e+00> : vector<10xf32>
    %96 = vector.multi_reduction <add>, %95, %cst_31 [1] : vector<10x10xf32> to vector<10xf32>
    %97 = vector.shape_cast %96 : vector<10xf32> to vector<10x1xf32>
    %98 = tpu.reciprocal %97 {approx = true} : vector<10x1xf32> -> vector<10x1xf32>
    %99 = vector.broadcast %98 : vector<10x1xf32> to vector<10x10xf32>
    %100 = arith.mulf %95, %99 : vector<10x10xf32>
    %cst_32 = arith.constant dense<0.000000e+00> : vector<10x8xf32>
    %101 = tpu.matmul %100, %86, %cst_32 {dimension_numbers = #tpu.dot_dimension_numbers<[1], [0], [0], [1], [0, 0, 1, 1], [], []>} : vector<10x10xf32>, vector<10x8xf32>, vector<10x8xf32> -> vector<10x8xf32>
    %102 = vector.extract_strided_slice %46 {offsets = [0, 24], sizes = [10, 8], strides = [1, 1]} : vector<10x96xf32> to vector<10x8xf32>
    %103 = vector.extract_strided_slice %46 {offsets = [0, 56], sizes = [10, 8], strides = [1, 1]} : vector<10x96xf32> to vector<10x8xf32>
    %104 = vector.extract_strided_slice %46 {offsets = [0, 88], sizes = [10, 8], strides = [1, 1]} : vector<10x96xf32> to vector<10x8xf32>
    %cst_33 = arith.constant dense<0.000000e+00> : vector<10x10xf32>
    %105 = tpu.matmul %102, %103, %cst_33 {dimension_numbers = #tpu.dot_dimension_numbers<[1], [1], [0], [0], [0, 0, 1, 0], [], []>} : vector<10x8xf32>, vector<10x8xf32>, vector<10x10xf32> -> vector<10x10xf32>
    %cst_34 = arith.constant 0.353553385 : f32
    %106 = vector.broadcast %cst_34 : f32 to vector<10x10xf32>
    %107 = arith.mulf %105, %106 : vector<10x10xf32>
    %108 = arith.addf %107, %47 : vector<10x10xf32>
    %cst_35 = arith.constant dense<0xFF800000> : vector<10xf32>
    %109 = vector.multi_reduction <maximumf>, %108, %cst_35 [1] : vector<10x10xf32> to vector<10xf32>
    %110 = vector.shape_cast %109 : vector<10xf32> to vector<10x1xf32>
    %111 = vector.broadcast %110 : vector<10x1xf32> to vector<10x10xf32>
    %112 = arith.subf %108, %111 : vector<10x10xf32>
    %113 = math.exp %112 : vector<10x10xf32>
    %cst_36 = arith.constant dense<0.000000e+00> : vector<10xf32>
    %114 = vector.multi_reduction <add>, %113, %cst_36 [1] : vector<10x10xf32> to vector<10xf32>
    %115 = vector.shape_cast %114 : vector<10xf32> to vector<10x1xf32>
    %116 = tpu.reciprocal %115 {approx = true} : vector<10x1xf32> -> vector<10x1xf32>
    %117 = vector.broadcast %116 : vector<10x1xf32> to vector<10x10xf32>
    %118 = arith.mulf %113, %117 : vector<10x10xf32>
    %cst_37 = arith.constant dense<0.000000e+00> : vector<10x8xf32>
    %119 = tpu.matmul %118, %104, %cst_37 {dimension_numbers = #tpu.dot_dimension_numbers<[1], [0], [0], [1], [0, 0, 1, 1], [], []>} : vector<10x10xf32>, vector<10x8xf32>, vector<10x8xf32> -> vector<10x8xf32>
    %120 = tpu.concatenate %65, %83, %101, %119 in 1 : vector<10x8xf32>, vector<10x8xf32>, vector<10x8xf32>, vector<10x8xf32> -> vector<10x32xf32>
    %cst_38 = arith.constant dense<0.000000e+00> : vector<10x32xf32>
    %121 = tpu.matmul %120, %17, %cst_38 {dimension_numbers = #tpu.dot_dimension_numbers<[1], [0], [0], [1], [0, 0, 1, 1], [], []>} : vector<10x32xf32>, vector<32x32xf32>, vector<10x32xf32> -> vector<10x32xf32>
    %122 = arith.addf %3, %121 : vector<10x32xf32>
    %123 = vector.broadcast %9 : vector<1x32xf32> to vector<10x32xf32>
    %124 = arith.addf %122, %123 : vector<10x32xf32>
    %cst_39 = arith.constant dense<0.000000e+00> : vector<10xf32>
    %125 = vector.multi_reduction <add>, %124, %cst_39 [1] : vector<10x32xf32> to vector<10xf32>
    %126 = vector.shape_cast %125 : vector<10xf32> to vector<10x1xf32>
    %cst_40 = arith.constant 3.200000e+01 : f32
    %127 = vector.broadcast %cst_40 : f32 to vector<10x1xf32>
    %128 = arith.divf %126, %127 : vector<10x1xf32>
    %129 = vector.broadcast %128 : vector<10x1xf32> to vector<10x32xf32>
    %130 = arith.subf %124, %129 : vector<10x32xf32>
    %131 = arith.mulf %130, %130 : vector<10x32xf32>
    %cst_41 = arith.constant dense<0.000000e+00> : vector<10xf32>
    %132 = vector.multi_reduction <add>, %131, %cst_41 [1] : vector<10x32xf32> to vector<10xf32>
    %133 = vector.shape_cast %132 : vector<10xf32> to vector<10x1xf32>
    %cst_42 = arith.constant 3.200000e+01 : f32
    %134 = vector.broadcast %cst_42 : f32 to vector<10x1xf32>
    %135 = arith.divf %133, %134 : vector<10x1xf32>
    %136 = vector.broadcast %128 : vector<10x1xf32> to vector<10x32xf32>
    %137 = arith.subf %124, %136 : vector<10x32xf32>
    %cst_43 = arith.constant 9.99999974E-6 : f32
    %138 = vector.broadcast %cst_43 : f32 to vector<10x1xf32>
    %139 = arith.addf %135, %138 : vector<10x1xf32>
    %140 = math.rsqrt %139 : vector<10x1xf32>
    %141 = vector.broadcast %140 : vector<10x1xf32> to vector<10x32xf32>
    %142 = arith.mulf %137, %141 : vector<10x32xf32>
    %143 = vector.broadcast %10 : vector<1x32xf32> to vector<10x32xf32>
    %144 = arith.mulf %142, %143 : vector<10x32xf32>
    %145 = vector.broadcast %11 : vector<1x32xf32> to vector<10x32xf32>
    %146 = arith.addf %144, %145 : vector<10x32xf32>
    %cst_44 = arith.constant dense<0.000000e+00> : vector<10x64xf32>
    %147 = tpu.matmul %146, %20, %cst_44 {dimension_numbers = #tpu.dot_dimension_numbers<[1], [0], [0], [1], [0, 0, 1, 1], [], []>} : vector<10x32xf32>, vector<32x64xf32>, vector<10x64xf32> -> vector<10x64xf32>
    %148 = vector.broadcast %12 : vector<1x64xf32> to vector<10x64xf32>
    %149 = arith.addf %147, %148 : vector<10x64xf32>
    %150 = arith.mulf %149, %149 : vector<10x64xf32>
    %151 = arith.mulf %149, %150 : vector<10x64xf32>
    %cst_45 = arith.constant 4.471500e-02 : f32
    %152 = vector.broadcast %cst_45 : f32 to vector<10x64xf32>
    %153 = arith.mulf %152, %151 : vector<10x64xf32>
    %154 = arith.addf %149, %153 : vector<10x64xf32>
    %cst_46 = arith.constant 0.797884583 : f32
    %155 = vector.broadcast %cst_46 : f32 to vector<10x64xf32>
    %156 = arith.mulf %155, %154 : vector<10x64xf32>
    %157 = math.tanh %156 : vector<10x64xf32>
    %cst_47 = arith.constant 1.000000e+00 : f32
    %158 = vector.broadcast %cst_47 : f32 to vector<10x64xf32>
    %159 = arith.addf %158, %157 : vector<10x64xf32>
    %cst_48 = arith.constant 5.000000e-01 : f32
    %160 = vector.broadcast %cst_48 : f32 to vector<10x64xf32>
    %161 = arith.mulf %160, %159 : vector<10x64xf32>
    %162 = arith.mulf %149, %161 : vector<10x64xf32>
    %cst_49 = arith.constant dense<0.000000e+00> : vector<10x32xf32>
    %163 = tpu.matmul %162, %21, %cst_49 {dimension_numbers = #tpu.dot_dimension_numbers<[1], [1], [0], [0], [0, 0, 1, 0], [], []>} : vector<10x64xf32>, vector<32x64xf32>, vector<10x32xf32> -> vector<10x32xf32>
    %164 = vector.broadcast %13 : vector<1x32xf32> to vector<10x32xf32>
    %165 = arith.addf %163, %164 : vector<10x32xf32>
    %166 = arith.addf %124, %165 : vector<10x32xf32>
    %c0_50 = arith.constant 0 : index
    %c0_51 = arith.constant 0 : index
    %167 = vector.load %arg10[%c0_50, %c0_51] : memref<10x32xf32, #tpu.memory_space<vmem>>, vector<10x32xf32>
    tpu.vector_store %arg10[%c0_50, %c0_51], %166 {strides = array<i32>} : memref<10x32xf32, #tpu.memory_space<vmem>>, vector<10x32xf32>,
    %c1_i32 = arith.constant 1 : i32
    %168 = arith.cmpi eq, %arg0, %c1_i32 : i32
    %169 = arith.extui %168 : i1 to i32
    %c0_i32_52 = arith.constant 0 : i32
    %170 = arith.cmpi ne, %169, %c0_i32_52 : i32
    scf.if %170 {
      %c0_53 = arith.constant 0 : index
      %c0_54 = arith.constant 0 : index
      %171 = vector.load %arg6[%c0_53, %c0_54] : memref<2x32xf32, #tpu.memory_space<vmem>>, vector<1x32xf32>
      %c1 = arith.constant 1 : index
      %c0_55 = arith.constant 0 : index
      %172 = vector.load %arg6[%c1, %c0_55] : memref<2x32xf32, #tpu.memory_space<vmem>>, vector<1x32xf32>
      %cst_56 = arith.constant dense<0.000000e+00> : vector<10xf32>
      %173 = vector.multi_reduction <add>, %166, %cst_56 [1] : vector<10x32xf32> to vector<10xf32>
      %174 = vector.shape_cast %173 : vector<10xf32> to vector<10x1xf32>
      %cst_57 = arith.constant 3.200000e+01 : f32
      %175 = vector.broadcast %cst_57 : f32 to vector<10x1xf32>
      %176 = arith.divf %174, %175 : vector<10x1xf32>
      %177 = vector.broadcast %176 : vector<10x1xf32> to vector<10x32xf32>
      %178 = arith.subf %166, %177 : vector<10x32xf32>
      %179 = arith.mulf %178, %178 : vector<10x32xf32>
      %cst_58 = arith.constant dense<0.000000e+00> : vector<10xf32>
      %180 = vector.multi_reduction <add>, %179, %cst_58 [1] : vector<10x32xf32> to vector<10xf32>
      %181 = vector.shape_cast %180 : vector<10xf32> to vector<10x1xf32>
      %cst_59 = arith.constant 3.200000e+01 : f32
      %182 = vector.broadcast %cst_59 : f32 to vector<10x1xf32>
      %183 = arith.divf %181, %182 : vector<10x1xf32>
      %184 = vector.broadcast %176 : vector<10x1xf32> to vector<10x32xf32>
      %185 = arith.subf %166, %184 : vector<10x32xf32>
      %cst_60 = arith.constant 9.99999974E-6 : f32
      %186 = vector.broadcast %cst_60 : f32 to vector<10x1xf32>
      %187 = arith.addf %183, %186 : vector<10x1xf32>
      %188 = math.rsqrt %187 : vector<10x1xf32>
      %189 = vector.broadcast %188 : vector<10x1xf32> to vector<10x32xf32>
      %190 = arith.mulf %185, %189 : vector<10x32xf32>
      %191 = vector.broadcast %171 : vector<1x32xf32> to vector<10x32xf32>
      %192 = arith.mulf %190, %191 : vector<10x32xf32>
      %193 = vector.broadcast %172 : vector<1x32xf32> to vector<10x32xf32>
      %194 = arith.addf %192, %193 : vector<10x32xf32>
      %c0_61 = arith.constant 0 : index
      %c0_62 = arith.constant 0 : index
      %195 = vector.load %arg7[%c0_61, %c0_62] : memref<32x128xf32, #tpu.memory_space<vmem>>, vector<32x128xf32>
      %cst_63 = arith.constant dense<0.000000e+00> : vector<10x128xf32>
      %196 = tpu.matmul %194, %195, %cst_63 {dimension_numbers = #tpu.dot_dimension_numbers<[1], [0], [0], [1], [0, 0, 1, 1], [], []>} : vector<10x32xf32>, vector<32x128xf32>, vector<10x128xf32> -> vector<10x128xf32>
      %c0_64 = arith.constant 0 : index
      %c0_65 = arith.constant 0 : index
      %197 = vector.load %arg8[%c0_64, %c0_65] : memref<1x128xf32, #tpu.memory_space<vmem>>, vector<1x128xf32>
      %198 = vector.broadcast %197 : vector<1x128xf32> to vector<10x128xf32>
      %199 = arith.addf %196, %198 : vector<10x128xf32>
      %c0_66 = arith.constant 0 : index
      %c0_67 = arith.constant 0 : index
      %200 = vector.load %arg9[%c0_66, %c0_67] : memref<10x128xf32, #tpu.memory_space<vmem>>, vector<10x128xf32>
      tpu.vector_store %arg9[%c0_66, %c0_67], %199 {strides = array<i32>} : memref<10x128xf32, #tpu.memory_space<vmem>>, vector<10x128xf32>,
    } else {
    }
    return
  }
  func.func @transform_0(%arg0: i32) -> (i32, i32) {
    %c0_i32 = arith.constant 0 : i32
    %c0_i32_0 = arith.constant 0 : i32
    %c0_i32_1 = arith.constant 0 : i32
    return %c0_i32, %c0_i32_0 : i32, i32
  }
  func.func @transform_1(%arg0: i32) -> (i32, i32) {
    %c0_i32 = arith.constant 0 : i32
    %c0_i32_0 = arith.constant 0 : i32
    %c0_i32_1 = arith.constant 0 : i32
    return %c0_i32, %c0_i32_0 : i32, i32
  }
  func.func @transform_2(%arg0: i32) -> (i32, i32, i32) {
    %c0_i32 = arith.constant 0 : i32
    %c0_i32_0 = arith.constant 0 : i32
    %c0_i32_1 = arith.constant 0 : i32
    return %arg0, %c0_i32, %c0_i32_0 : i32, i32, i32
  }
  func.func @transform_3(%arg0: i32) -> (i32, i32, i32) {
    %c0_i32 = arith.constant 0 : i32
    %c0_i32_0 = arith.constant 0 : i32
    %c0_i32_1 = arith.constant 0 : i32
    return %arg0, %c0_i32, %c0_i32_0 : i32, i32, i32
  }
  func.func @transform_4(%arg0: i32) -> (i32, i32, i32) {
    %c0_i32 = arith.constant 0 : i32
    %c0_i32_0 = arith.constant 0 : i32
    %c0_i32_1 = arith.constant 0 : i32
    return %arg0, %c0_i32, %c0_i32_0 : i32, i32, i32
  }
  func.func @transform_5(%arg0: i32) -> (i32, i32) {
    %c0_i32 = arith.constant 0 : i32
    %c0_i32_0 = arith.constant 0 : i32
    %c0_i32_1 = arith.constant 0 : i32
    return %c0_i32, %c0_i32_0 : i32, i32
  }
  func.func @transform_6(%arg0: i32) -> (i32, i32) {
    %c0_i32 = arith.constant 0 : i32
    %c0_i32_0 = arith.constant 0 : i32
    %c0_i32_1 = arith.constant 0 : i32
    return %c0_i32, %c0_i32_0 : i32, i32
  }
  func.func @transform_7(%arg0: i32) -> (i32, i32) {
    %c0_i32 = arith.constant 0 : i32
    %c0_i32_0 = arith.constant 0 : i32
    %c0_i32_1 = arith.constant 0 : i32
    return %c0_i32, %c0_i32_0 : i32, i32
  }
  func.func @transform_8(%arg0: i32) -> (i32, i32) {
    %c0_i32 = arith.constant 0 : i32
    %c0_i32_0 = arith.constant 0 : i32
    %c0_i32_1 = arith.constant 0 : i32
    return %c0_i32, %c0_i32_0 : i32, i32
  }
}

module attributes {stable_mosaic.version = 11 : i64} {
  func.func @_stack_kernel(%arg0: i32, %arg1: memref<34x32xf32, #tpu.memory_space<vmem>>, %arg2: memref<34x34xf32, #tpu.memory_space<vmem>>, %arg3: memref<1x32x128xf32, #tpu.memory_space<vmem>>, %arg4: memref<1x32x128xf32, #tpu.memory_space<vmem>>, %arg5: memref<1x8x128xf32, #tpu.memory_space<vmem>>, %arg6: memref<2x32xf32, #tpu.memory_space<vmem>>, %arg7: memref<32x128xf32, #tpu.memory_space<vmem>>, %arg8: memref<1x128xf32, #tpu.memory_space<vmem>>, %arg9: memref<34x128xf32, #tpu.memory_space<vmem>>, %arg10: memref<34x32xf32, #tpu.memory_space<vmem>>) attributes {dimension_semantics = [#tpu.dimension_semantics<arbitrary>], iteration_bounds = array<i64: 2>, scalar_prefetch = 0 : i64, scratch_operands = 1 : i64, tpu.core_type = #tpu.core_type<tc>, window_params = [{pipeline_mode = #tpu.pipeline_mode<synchronous>, transform_indices = @transform_0, window_bounds = array<i64: 34, 32>}, {pipeline_mode = #tpu.pipeline_mode<synchronous>, transform_indices = @transform_1, window_bounds = array<i64: 34, 34>}, {transform_indices = @transform_2, window_bounds = array<i64: 1, 32, 128>}, {transform_indices = @transform_3, window_bounds = array<i64: 1, 32, 128>}, {transform_indices = @transform_4, window_bounds = array<i64: 1, 8, 128>}, {pipeline_mode = #tpu.pipeline_mode<synchronous>, transform_indices = @transform_5, window_bounds = array<i64: 2, 32>}, {pipeline_mode = #tpu.pipeline_mode<synchronous>, transform_indices = @transform_6, window_bounds = array<i64: 32, 128>}, {pipeline_mode = #tpu.pipeline_mode<synchronous>, transform_indices = @transform_7, window_bounds = array<i64: 1, 128>}, {pipeline_mode = #tpu.pipeline_mode<synchronous>, transform_indices = @transform_8, window_bounds = array<i64: 34, 128>}]} {
    %c0_i32 = arith.constant 0 : i32
    %0 = arith.cmpi eq, %arg0, %c0_i32 : i32
    %1 = arith.extui %0 : i1 to i32
    %c0_i32_0 = arith.constant 0 : i32
    %2 = arith.cmpi ne, %1, %c0_i32_0 : i32
    scf.if %2 {
      %c0_53 = arith.constant 0 : index
      %c0_54 = arith.constant 0 : index
      %171 = vector.load %arg1[%c0_53, %c0_54] : memref<34x32xf32, #tpu.memory_space<vmem>>, vector<34x32xf32>
      %c0_55 = arith.constant 0 : index
      %c0_56 = arith.constant 0 : index
      %172 = vector.load %arg10[%c0_55, %c0_56] : memref<34x32xf32, #tpu.memory_space<vmem>>, vector<34x32xf32>
      tpu.vector_store %arg10[%c0_55, %c0_56], %171 {strides = array<i32>} : memref<34x32xf32, #tpu.memory_space<vmem>>, vector<34x32xf32>,
    } else {
    }
    %c0 = arith.constant 0 : index
    %c0_1 = arith.constant 0 : index
    %3 = vector.load %arg10[%c0, %c0_1] : memref<34x32xf32, #tpu.memory_space<vmem>>, vector<34x32xf32>
    %c0_2 = arith.constant 0 : index
    %c0_3 = arith.constant 0 : index
    %c0_4 = arith.constant 0 : index
    %4 = vector.load %arg5[%c0_2, %c0_3, %c0_4] : memref<1x8x128xf32, #tpu.memory_space<vmem>>, vector<1x8x128xf32>
    %5 = vector.shape_cast %4 : vector<1x8x128xf32> to vector<8x128xf32>
    %6 = vector.extract_strided_slice %5 {offsets = [0, 0], sizes = [1, 32], strides = [1, 1]} : vector<8x128xf32> to vector<1x32xf32>
    %7 = vector.extract_strided_slice %5 {offsets = [1, 0], sizes = [1, 32], strides = [1, 1]} : vector<8x128xf32> to vector<1x32xf32>
    %8 = vector.extract_strided_slice %5 {offsets = [2, 0], sizes = [1, 96], strides = [1, 1]} : vector<8x128xf32> to vector<1x96xf32>
    %9 = vector.extract_strided_slice %5 {offsets = [3, 0], sizes = [1, 32], strides = [1, 1]} : vector<8x128xf32> to vector<1x32xf32>
    %10 = vector.extract_strided_slice %5 {offsets = [4, 0], sizes = [1, 32], strides = [1, 1]} : vector<8x128xf32> to vector<1x32xf32>
    %11 = vector.extract_strided_slice %5 {offsets = [5, 0], sizes = [1, 32], strides = [1, 1]} : vector<8x128xf32> to vector<1x32xf32>
    %12 = vector.extract_strided_slice %5 {offsets = [6, 0], sizes = [1, 64], strides = [1, 1]} : vector<8x128xf32> to vector<1x64xf32>
    %13 = vector.extract_strided_slice %5 {offsets = [7, 0], sizes = [1, 32], strides = [1, 1]} : vector<8x128xf32> to vector<1x32xf32>
    %c0_5 = arith.constant 0 : index
    %c0_6 = arith.constant 0 : index
    %c0_7 = arith.constant 0 : index
    %14 = vector.load %arg3[%c0_5, %c0_6, %c0_7] : memref<1x32x128xf32, #tpu.memory_space<vmem>>, vector<1x32x128xf32>
    %15 = vector.shape_cast %14 : vector<1x32x128xf32> to vector<32x128xf32>
    %16 = vector.extract_strided_slice %15 {offsets = [0, 0], sizes = [32, 96], strides = [1, 1]} : vector<32x128xf32> to vector<32x96xf32>
    %17 = vector.extract_strided_slice %15 {offsets = [0, 96], sizes = [32, 32], strides = [1, 1]} : vector<32x128xf32> to vector<32x32xf32>
    %c0_8 = arith.constant 0 : index
    %c0_9 = arith.constant 0 : index
    %c0_10 = arith.constant 0 : index
    %18 = vector.load %arg4[%c0_8, %c0_9, %c0_10] : memref<1x32x128xf32, #tpu.memory_space<vmem>>, vector<1x32x128xf32>
    %19 = vector.shape_cast %18 : vector<1x32x128xf32> to vector<32x128xf32>
    %20 = vector.extract_strided_slice %19 {offsets = [0, 0], sizes = [32, 64], strides = [1, 1]} : vector<32x128xf32> to vector<32x64xf32>
    %21 = vector.extract_strided_slice %19 {offsets = [0, 64], sizes = [32, 64], strides = [1, 1]} : vector<32x128xf32> to vector<32x64xf32>
    %cst = arith.constant dense<0.000000e+00> : vector<34xf32>
    %22 = vector.multi_reduction <add>, %3, %cst [1] : vector<34x32xf32> to vector<34xf32>
    %23 = vector.shape_cast %22 : vector<34xf32> to vector<34x1xf32>
    %cst_11 = arith.constant 3.200000e+01 : f32
    %24 = vector.broadcast %cst_11 : f32 to vector<34x1xf32>
    %25 = arith.divf %23, %24 : vector<34x1xf32>
    %26 = vector.broadcast %25 : vector<34x1xf32> to vector<34x32xf32>
    %27 = arith.subf %3, %26 : vector<34x32xf32>
    %28 = arith.mulf %27, %27 : vector<34x32xf32>
    %cst_12 = arith.constant dense<0.000000e+00> : vector<34xf32>
    %29 = vector.multi_reduction <add>, %28, %cst_12 [1] : vector<34x32xf32> to vector<34xf32>
    %30 = vector.shape_cast %29 : vector<34xf32> to vector<34x1xf32>
    %cst_13 = arith.constant 3.200000e+01 : f32
    %31 = vector.broadcast %cst_13 : f32 to vector<34x1xf32>
    %32 = arith.divf %30, %31 : vector<34x1xf32>
    %33 = vector.broadcast %25 : vector<34x1xf32> to vector<34x32xf32>
    %34 = arith.subf %3, %33 : vector<34x32xf32>
    %cst_14 = arith.constant 9.99999974E-6 : f32
    %35 = vector.broadcast %cst_14 : f32 to vector<34x1xf32>
    %36 = arith.addf %32, %35 : vector<34x1xf32>
    %37 = math.rsqrt %36 : vector<34x1xf32>
    %38 = vector.broadcast %37 : vector<34x1xf32> to vector<34x32xf32>
    %39 = arith.mulf %34, %38 : vector<34x32xf32>
    %40 = vector.broadcast %6 : vector<1x32xf32> to vector<34x32xf32>
    %41 = arith.mulf %39, %40 : vector<34x32xf32>
    %42 = vector.broadcast %7 : vector<1x32xf32> to vector<34x32xf32>
    %43 = arith.addf %41, %42 : vector<34x32xf32>
    %cst_15 = arith.constant dense<0.000000e+00> : vector<34x96xf32>
    %44 = tpu.matmul %43, %16, %cst_15 {dimension_numbers = #tpu.dot_dimension_numbers<[1], [0], [0], [1], [0, 0, 1, 1], [], []>} : vector<34x32xf32>, vector<32x96xf32>, vector<34x96xf32> -> vector<34x96xf32>
    %45 = vector.broadcast %8 : vector<1x96xf32> to vector<34x96xf32>
    %46 = arith.addf %44, %45 : vector<34x96xf32>
    %c0_16 = arith.constant 0 : index
    %c0_17 = arith.constant 0 : index
    %47 = vector.load %arg2[%c0_16, %c0_17] : memref<34x34xf32, #tpu.memory_space<vmem>>, vector<34x34xf32>
    %48 = vector.extract_strided_slice %46 {offsets = [0, 0], sizes = [34, 8], strides = [1, 1]} : vector<34x96xf32> to vector<34x8xf32>
    %49 = vector.extract_strided_slice %46 {offsets = [0, 32], sizes = [34, 8], strides = [1, 1]} : vector<34x96xf32> to vector<34x8xf32>
    %50 = vector.extract_strided_slice %46 {offsets = [0, 64], sizes = [34, 8], strides = [1, 1]} : vector<34x96xf32> to vector<34x8xf32>
    %cst_18 = arith.constant dense<0.000000e+00> : vector<34x34xf32>
    %51 = tpu.matmul %48, %49, %cst_18 {dimension_numbers = #tpu.dot_dimension_numbers<[1], [1], [0], [0], [0, 0, 1, 0], [], []>} : vector<34x8xf32>, vector<34x8xf32>, vector<34x34xf32> -> vector<34x34xf32>
    %cst_19 = arith.constant 0.353553385 : f32
    %52 = vector.broadcast %cst_19 : f32 to vector<34x34xf32>
    %53 = arith.mulf %51, %52 : vector<34x34xf32>
    %54 = arith.addf %53, %47 : vector<34x34xf32>
    %cst_20 = arith.constant dense<0xFF800000> : vector<34xf32>
    %55 = vector.multi_reduction <maximumf>, %54, %cst_20 [1] : vector<34x34xf32> to vector<34xf32>
    %56 = vector.shape_cast %55 : vector<34xf32> to vector<34x1xf32>
    %57 = vector.broadcast %56 : vector<34x1xf32> to vector<34x34xf32>
    %58 = arith.subf %54, %57 : vector<34x34xf32>
    %59 = math.exp %58 : vector<34x34xf32>
    %cst_21 = arith.constant dense<0.000000e+00> : vector<34xf32>
    %60 = vector.multi_reduction <add>, %59, %cst_21 [1] : vector<34x34xf32> to vector<34xf32>
    %61 = vector.shape_cast %60 : vector<34xf32> to vector<34x1xf32>
    %62 = tpu.reciprocal %61 {approx = true} : vector<34x1xf32> -> vector<34x1xf32>
    %63 = vector.broadcast %62 : vector<34x1xf32> to vector<34x34xf32>
    %64 = arith.mulf %59, %63 : vector<34x34xf32>
    %cst_22 = arith.constant dense<0.000000e+00> : vector<34x8xf32>
    %65 = tpu.matmul %64, %50, %cst_22 {dimension_numbers = #tpu.dot_dimension_numbers<[1], [0], [0], [1], [0, 0, 1, 1], [], []>} : vector<34x34xf32>, vector<34x8xf32>, vector<34x8xf32> -> vector<34x8xf32>
    %66 = vector.extract_strided_slice %46 {offsets = [0, 8], sizes = [34, 8], strides = [1, 1]} : vector<34x96xf32> to vector<34x8xf32>
    %67 = vector.extract_strided_slice %46 {offsets = [0, 40], sizes = [34, 8], strides = [1, 1]} : vector<34x96xf32> to vector<34x8xf32>
    %68 = vector.extract_strided_slice %46 {offsets = [0, 72], sizes = [34, 8], strides = [1, 1]} : vector<34x96xf32> to vector<34x8xf32>
    %cst_23 = arith.constant dense<0.000000e+00> : vector<34x34xf32>
    %69 = tpu.matmul %66, %67, %cst_23 {dimension_numbers = #tpu.dot_dimension_numbers<[1], [1], [0], [0], [0, 0, 1, 0], [], []>} : vector<34x8xf32>, vector<34x8xf32>, vector<34x34xf32> -> vector<34x34xf32>
    %cst_24 = arith.constant 0.353553385 : f32
    %70 = vector.broadcast %cst_24 : f32 to vector<34x34xf32>
    %71 = arith.mulf %69, %70 : vector<34x34xf32>
    %72 = arith.addf %71, %47 : vector<34x34xf32>
    %cst_25 = arith.constant dense<0xFF800000> : vector<34xf32>
    %73 = vector.multi_reduction <maximumf>, %72, %cst_25 [1] : vector<34x34xf32> to vector<34xf32>
    %74 = vector.shape_cast %73 : vector<34xf32> to vector<34x1xf32>
    %75 = vector.broadcast %74 : vector<34x1xf32> to vector<34x34xf32>
    %76 = arith.subf %72, %75 : vector<34x34xf32>
    %77 = math.exp %76 : vector<34x34xf32>
    %cst_26 = arith.constant dense<0.000000e+00> : vector<34xf32>
    %78 = vector.multi_reduction <add>, %77, %cst_26 [1] : vector<34x34xf32> to vector<34xf32>
    %79 = vector.shape_cast %78 : vector<34xf32> to vector<34x1xf32>
    %80 = tpu.reciprocal %79 {approx = true} : vector<34x1xf32> -> vector<34x1xf32>
    %81 = vector.broadcast %80 : vector<34x1xf32> to vector<34x34xf32>
    %82 = arith.mulf %77, %81 : vector<34x34xf32>
    %cst_27 = arith.constant dense<0.000000e+00> : vector<34x8xf32>
    %83 = tpu.matmul %82, %68, %cst_27 {dimension_numbers = #tpu.dot_dimension_numbers<[1], [0], [0], [1], [0, 0, 1, 1], [], []>} : vector<34x34xf32>, vector<34x8xf32>, vector<34x8xf32> -> vector<34x8xf32>
    %84 = vector.extract_strided_slice %46 {offsets = [0, 16], sizes = [34, 8], strides = [1, 1]} : vector<34x96xf32> to vector<34x8xf32>
    %85 = vector.extract_strided_slice %46 {offsets = [0, 48], sizes = [34, 8], strides = [1, 1]} : vector<34x96xf32> to vector<34x8xf32>
    %86 = vector.extract_strided_slice %46 {offsets = [0, 80], sizes = [34, 8], strides = [1, 1]} : vector<34x96xf32> to vector<34x8xf32>
    %cst_28 = arith.constant dense<0.000000e+00> : vector<34x34xf32>
    %87 = tpu.matmul %84, %85, %cst_28 {dimension_numbers = #tpu.dot_dimension_numbers<[1], [1], [0], [0], [0, 0, 1, 0], [], []>} : vector<34x8xf32>, vector<34x8xf32>, vector<34x34xf32> -> vector<34x34xf32>
    %cst_29 = arith.constant 0.353553385 : f32
    %88 = vector.broadcast %cst_29 : f32 to vector<34x34xf32>
    %89 = arith.mulf %87, %88 : vector<34x34xf32>
    %90 = arith.addf %89, %47 : vector<34x34xf32>
    %cst_30 = arith.constant dense<0xFF800000> : vector<34xf32>
    %91 = vector.multi_reduction <maximumf>, %90, %cst_30 [1] : vector<34x34xf32> to vector<34xf32>
    %92 = vector.shape_cast %91 : vector<34xf32> to vector<34x1xf32>
    %93 = vector.broadcast %92 : vector<34x1xf32> to vector<34x34xf32>
    %94 = arith.subf %90, %93 : vector<34x34xf32>
    %95 = math.exp %94 : vector<34x34xf32>
    %cst_31 = arith.constant dense<0.000000e+00> : vector<34xf32>
    %96 = vector.multi_reduction <add>, %95, %cst_31 [1] : vector<34x34xf32> to vector<34xf32>
    %97 = vector.shape_cast %96 : vector<34xf32> to vector<34x1xf32>
    %98 = tpu.reciprocal %97 {approx = true} : vector<34x1xf32> -> vector<34x1xf32>
    %99 = vector.broadcast %98 : vector<34x1xf32> to vector<34x34xf32>
    %100 = arith.mulf %95, %99 : vector<34x34xf32>
    %cst_32 = arith.constant dense<0.000000e+00> : vector<34x8xf32>
    %101 = tpu.matmul %100, %86, %cst_32 {dimension_numbers = #tpu.dot_dimension_numbers<[1], [0], [0], [1], [0, 0, 1, 1], [], []>} : vector<34x34xf32>, vector<34x8xf32>, vector<34x8xf32> -> vector<34x8xf32>
    %102 = vector.extract_strided_slice %46 {offsets = [0, 24], sizes = [34, 8], strides = [1, 1]} : vector<34x96xf32> to vector<34x8xf32>
    %103 = vector.extract_strided_slice %46 {offsets = [0, 56], sizes = [34, 8], strides = [1, 1]} : vector<34x96xf32> to vector<34x8xf32>
    %104 = vector.extract_strided_slice %46 {offsets = [0, 88], sizes = [34, 8], strides = [1, 1]} : vector<34x96xf32> to vector<34x8xf32>
    %cst_33 = arith.constant dense<0.000000e+00> : vector<34x34xf32>
    %105 = tpu.matmul %102, %103, %cst_33 {dimension_numbers = #tpu.dot_dimension_numbers<[1], [1], [0], [0], [0, 0, 1, 0], [], []>} : vector<34x8xf32>, vector<34x8xf32>, vector<34x34xf32> -> vector<34x34xf32>
    %cst_34 = arith.constant 0.353553385 : f32
    %106 = vector.broadcast %cst_34 : f32 to vector<34x34xf32>
    %107 = arith.mulf %105, %106 : vector<34x34xf32>
    %108 = arith.addf %107, %47 : vector<34x34xf32>
    %cst_35 = arith.constant dense<0xFF800000> : vector<34xf32>
    %109 = vector.multi_reduction <maximumf>, %108, %cst_35 [1] : vector<34x34xf32> to vector<34xf32>
    %110 = vector.shape_cast %109 : vector<34xf32> to vector<34x1xf32>
    %111 = vector.broadcast %110 : vector<34x1xf32> to vector<34x34xf32>
    %112 = arith.subf %108, %111 : vector<34x34xf32>
    %113 = math.exp %112 : vector<34x34xf32>
    %cst_36 = arith.constant dense<0.000000e+00> : vector<34xf32>
    %114 = vector.multi_reduction <add>, %113, %cst_36 [1] : vector<34x34xf32> to vector<34xf32>
    %115 = vector.shape_cast %114 : vector<34xf32> to vector<34x1xf32>
    %116 = tpu.reciprocal %115 {approx = true} : vector<34x1xf32> -> vector<34x1xf32>
    %117 = vector.broadcast %116 : vector<34x1xf32> to vector<34x34xf32>
    %118 = arith.mulf %113, %117 : vector<34x34xf32>
    %cst_37 = arith.constant dense<0.000000e+00> : vector<34x8xf32>
    %119 = tpu.matmul %118, %104, %cst_37 {dimension_numbers = #tpu.dot_dimension_numbers<[1], [0], [0], [1], [0, 0, 1, 1], [], []>} : vector<34x34xf32>, vector<34x8xf32>, vector<34x8xf32> -> vector<34x8xf32>
    %120 = tpu.concatenate %65, %83, %101, %119 in 1 : vector<34x8xf32>, vector<34x8xf32>, vector<34x8xf32>, vector<34x8xf32> -> vector<34x32xf32>
    %cst_38 = arith.constant dense<0.000000e+00> : vector<34x32xf32>
    %121 = tpu.matmul %120, %17, %cst_38 {dimension_numbers = #tpu.dot_dimension_numbers<[1], [0], [0], [1], [0, 0, 1, 1], [], []>} : vector<34x32xf32>, vector<32x32xf32>, vector<34x32xf32> -> vector<34x32xf32>
    %122 = arith.addf %3, %121 : vector<34x32xf32>
    %123 = vector.broadcast %9 : vector<1x32xf32> to vector<34x32xf32>
    %124 = arith.addf %122, %123 : vector<34x32xf32>
    %cst_39 = arith.constant dense<0.000000e+00> : vector<34xf32>
    %125 = vector.multi_reduction <add>, %124, %cst_39 [1] : vector<34x32xf32> to vector<34xf32>
    %126 = vector.shape_cast %125 : vector<34xf32> to vector<34x1xf32>
    %cst_40 = arith.constant 3.200000e+01 : f32
    %127 = vector.broadcast %cst_40 : f32 to vector<34x1xf32>
    %128 = arith.divf %126, %127 : vector<34x1xf32>
    %129 = vector.broadcast %128 : vector<34x1xf32> to vector<34x32xf32>
    %130 = arith.subf %124, %129 : vector<34x32xf32>
    %131 = arith.mulf %130, %130 : vector<34x32xf32>
    %cst_41 = arith.constant dense<0.000000e+00> : vector<34xf32>
    %132 = vector.multi_reduction <add>, %131, %cst_41 [1] : vector<34x32xf32> to vector<34xf32>
    %133 = vector.shape_cast %132 : vector<34xf32> to vector<34x1xf32>
    %cst_42 = arith.constant 3.200000e+01 : f32
    %134 = vector.broadcast %cst_42 : f32 to vector<34x1xf32>
    %135 = arith.divf %133, %134 : vector<34x1xf32>
    %136 = vector.broadcast %128 : vector<34x1xf32> to vector<34x32xf32>
    %137 = arith.subf %124, %136 : vector<34x32xf32>
    %cst_43 = arith.constant 9.99999974E-6 : f32
    %138 = vector.broadcast %cst_43 : f32 to vector<34x1xf32>
    %139 = arith.addf %135, %138 : vector<34x1xf32>
    %140 = math.rsqrt %139 : vector<34x1xf32>
    %141 = vector.broadcast %140 : vector<34x1xf32> to vector<34x32xf32>
    %142 = arith.mulf %137, %141 : vector<34x32xf32>
    %143 = vector.broadcast %10 : vector<1x32xf32> to vector<34x32xf32>
    %144 = arith.mulf %142, %143 : vector<34x32xf32>
    %145 = vector.broadcast %11 : vector<1x32xf32> to vector<34x32xf32>
    %146 = arith.addf %144, %145 : vector<34x32xf32>
    %cst_44 = arith.constant dense<0.000000e+00> : vector<34x64xf32>
    %147 = tpu.matmul %146, %20, %cst_44 {dimension_numbers = #tpu.dot_dimension_numbers<[1], [0], [0], [1], [0, 0, 1, 1], [], []>} : vector<34x32xf32>, vector<32x64xf32>, vector<34x64xf32> -> vector<34x64xf32>
    %148 = vector.broadcast %12 : vector<1x64xf32> to vector<34x64xf32>
    %149 = arith.addf %147, %148 : vector<34x64xf32>
    %150 = arith.mulf %149, %149 : vector<34x64xf32>
    %151 = arith.mulf %149, %150 : vector<34x64xf32>
    %cst_45 = arith.constant 4.471500e-02 : f32
    %152 = vector.broadcast %cst_45 : f32 to vector<34x64xf32>
    %153 = arith.mulf %152, %151 : vector<34x64xf32>
    %154 = arith.addf %149, %153 : vector<34x64xf32>
    %cst_46 = arith.constant 0.797884583 : f32
    %155 = vector.broadcast %cst_46 : f32 to vector<34x64xf32>
    %156 = arith.mulf %155, %154 : vector<34x64xf32>
    %157 = math.tanh %156 : vector<34x64xf32>
    %cst_47 = arith.constant 1.000000e+00 : f32
    %158 = vector.broadcast %cst_47 : f32 to vector<34x64xf32>
    %159 = arith.addf %158, %157 : vector<34x64xf32>
    %cst_48 = arith.constant 5.000000e-01 : f32
    %160 = vector.broadcast %cst_48 : f32 to vector<34x64xf32>
    %161 = arith.mulf %160, %159 : vector<34x64xf32>
    %162 = arith.mulf %149, %161 : vector<34x64xf32>
    %cst_49 = arith.constant dense<0.000000e+00> : vector<34x32xf32>
    %163 = tpu.matmul %162, %21, %cst_49 {dimension_numbers = #tpu.dot_dimension_numbers<[1], [1], [0], [0], [0, 0, 1, 0], [], []>} : vector<34x64xf32>, vector<32x64xf32>, vector<34x32xf32> -> vector<34x32xf32>
    %164 = vector.broadcast %13 : vector<1x32xf32> to vector<34x32xf32>
    %165 = arith.addf %163, %164 : vector<34x32xf32>
    %166 = arith.addf %124, %165 : vector<34x32xf32>
    %c0_50 = arith.constant 0 : index
    %c0_51 = arith.constant 0 : index
    %167 = vector.load %arg10[%c0_50, %c0_51] : memref<34x32xf32, #tpu.memory_space<vmem>>, vector<34x32xf32>
    tpu.vector_store %arg10[%c0_50, %c0_51], %166 {strides = array<i32>} : memref<34x32xf32, #tpu.memory_space<vmem>>, vector<34x32xf32>,
    %c1_i32 = arith.constant 1 : i32
    %168 = arith.cmpi eq, %arg0, %c1_i32 : i32
    %169 = arith.extui %168 : i1 to i32
    %c0_i32_52 = arith.constant 0 : i32
    %170 = arith.cmpi ne, %169, %c0_i32_52 : i32
    scf.if %170 {
      %c0_53 = arith.constant 0 : index
      %c0_54 = arith.constant 0 : index
      %171 = vector.load %arg6[%c0_53, %c0_54] : memref<2x32xf32, #tpu.memory_space<vmem>>, vector<1x32xf32>
      %c1 = arith.constant 1 : index
      %c0_55 = arith.constant 0 : index
      %172 = vector.load %arg6[%c1, %c0_55] : memref<2x32xf32, #tpu.memory_space<vmem>>, vector<1x32xf32>
      %cst_56 = arith.constant dense<0.000000e+00> : vector<34xf32>
      %173 = vector.multi_reduction <add>, %166, %cst_56 [1] : vector<34x32xf32> to vector<34xf32>
      %174 = vector.shape_cast %173 : vector<34xf32> to vector<34x1xf32>
      %cst_57 = arith.constant 3.200000e+01 : f32
      %175 = vector.broadcast %cst_57 : f32 to vector<34x1xf32>
      %176 = arith.divf %174, %175 : vector<34x1xf32>
      %177 = vector.broadcast %176 : vector<34x1xf32> to vector<34x32xf32>
      %178 = arith.subf %166, %177 : vector<34x32xf32>
      %179 = arith.mulf %178, %178 : vector<34x32xf32>
      %cst_58 = arith.constant dense<0.000000e+00> : vector<34xf32>
      %180 = vector.multi_reduction <add>, %179, %cst_58 [1] : vector<34x32xf32> to vector<34xf32>
      %181 = vector.shape_cast %180 : vector<34xf32> to vector<34x1xf32>
      %cst_59 = arith.constant 3.200000e+01 : f32
      %182 = vector.broadcast %cst_59 : f32 to vector<34x1xf32>
      %183 = arith.divf %181, %182 : vector<34x1xf32>
      %184 = vector.broadcast %176 : vector<34x1xf32> to vector<34x32xf32>
      %185 = arith.subf %166, %184 : vector<34x32xf32>
      %cst_60 = arith.constant 9.99999974E-6 : f32
      %186 = vector.broadcast %cst_60 : f32 to vector<34x1xf32>
      %187 = arith.addf %183, %186 : vector<34x1xf32>
      %188 = math.rsqrt %187 : vector<34x1xf32>
      %189 = vector.broadcast %188 : vector<34x1xf32> to vector<34x32xf32>
      %190 = arith.mulf %185, %189 : vector<34x32xf32>
      %191 = vector.broadcast %171 : vector<1x32xf32> to vector<34x32xf32>
      %192 = arith.mulf %190, %191 : vector<34x32xf32>
      %193 = vector.broadcast %172 : vector<1x32xf32> to vector<34x32xf32>
      %194 = arith.addf %192, %193 : vector<34x32xf32>
      %c0_61 = arith.constant 0 : index
      %c0_62 = arith.constant 0 : index
      %195 = vector.load %arg7[%c0_61, %c0_62] : memref<32x128xf32, #tpu.memory_space<vmem>>, vector<32x128xf32>
      %cst_63 = arith.constant dense<0.000000e+00> : vector<34x128xf32>
      %196 = tpu.matmul %194, %195, %cst_63 {dimension_numbers = #tpu.dot_dimension_numbers<[1], [0], [0], [1], [0, 0, 1, 1], [], []>} : vector<34x32xf32>, vector<32x128xf32>, vector<34x128xf32> -> vector<34x128xf32>
      %c0_64 = arith.constant 0 : index
      %c0_65 = arith.constant 0 : index
      %197 = vector.load %arg8[%c0_64, %c0_65] : memref<1x128xf32, #tpu.memory_space<vmem>>, vector<1x128xf32>
      %198 = vector.broadcast %197 : vector<1x128xf32> to vector<34x128xf32>
      %199 = arith.addf %196, %198 : vector<34x128xf32>
      %c0_66 = arith.constant 0 : index
      %c0_67 = arith.constant 0 : index
      %200 = vector.load %arg9[%c0_66, %c0_67] : memref<34x128xf32, #tpu.memory_space<vmem>>, vector<34x128xf32>
      tpu.vector_store %arg9[%c0_66, %c0_67], %199 {strides = array<i32>} : memref<34x128xf32, #tpu.memory_space<vmem>>, vector<34x128xf32>,
    } else {
    }
    return
  }
  func.func @transform_0(%arg0: i32) -> (i32, i32) {
    %c0_i32 = arith.constant 0 : i32
    %c0_i32_0 = arith.constant 0 : i32
    %c0_i32_1 = arith.constant 0 : i32
    return %c0_i32, %c0_i32_0 : i32, i32
  }
  func.func @transform_1(%arg0: i32) -> (i32, i32) {
    %c0_i32 = arith.constant 0 : i32
    %c0_i32_0 = arith.constant 0 : i32
    %c0_i32_1 = arith.constant 0 : i32
    return %c0_i32, %c0_i32_0 : i32, i32
  }
  func.func @transform_2(%arg0: i32) -> (i32, i32, i32) {
    %c0_i32 = arith.constant 0 : i32
    %c0_i32_0 = arith.constant 0 : i32
    %c0_i32_1 = arith.constant 0 : i32
    return %arg0, %c0_i32, %c0_i32_0 : i32, i32, i32
  }
  func.func @transform_3(%arg0: i32) -> (i32, i32, i32) {
    %c0_i32 = arith.constant 0 : i32
    %c0_i32_0 = arith.constant 0 : i32
    %c0_i32_1 = arith.constant 0 : i32
    return %arg0, %c0_i32, %c0_i32_0 : i32, i32, i32
  }
  func.func @transform_4(%arg0: i32) -> (i32, i32, i32) {
    %c0_i32 = arith.constant 0 : i32
    %c0_i32_0 = arith.constant 0 : i32
    %c0_i32_1 = arith.constant 0 : i32
    return %arg0, %c0_i32, %c0_i32_0 : i32, i32, i32
  }
  func.func @transform_5(%arg0: i32) -> (i32, i32) {
    %c0_i32 = arith.constant 0 : i32
    %c0_i32_0 = arith.constant 0 : i32
    %c0_i32_1 = arith.constant 0 : i32
    return %c0_i32, %c0_i32_0 : i32, i32
  }
  func.func @transform_6(%arg0: i32) -> (i32, i32) {
    %c0_i32 = arith.constant 0 : i32
    %c0_i32_0 = arith.constant 0 : i32
    %c0_i32_1 = arith.constant 0 : i32
    return %c0_i32, %c0_i32_0 : i32, i32
  }
  func.func @transform_7(%arg0: i32) -> (i32, i32) {
    %c0_i32 = arith.constant 0 : i32
    %c0_i32_0 = arith.constant 0 : i32
    %c0_i32_1 = arith.constant 0 : i32
    return %c0_i32, %c0_i32_0 : i32, i32
  }
  func.func @transform_8(%arg0: i32) -> (i32, i32) {
    %c0_i32 = arith.constant 0 : i32
    %c0_i32_0 = arith.constant 0 : i32
    %c0_i32_1 = arith.constant 0 : i32
    return %c0_i32, %c0_i32_0 : i32, i32
  }
}

</mosaic_0001>

<bundles_post_ra>
// kernel: mae_forward.2
= control target key start
LH: loop header
LB: loop body
LE: loop exit
PB: predicated region body
PF: predicated region fallthrough
CT: control target
= control target key end

     0   :  { %s1445_s27 = smov 0   ;;  %s1721_s0 = inlined_call_operand.vmem [shape: f32[10,32], index: 0, kind: input, shape index: {}]   ;;  %s1722_s1 = inlined_call_operand.vmem [shape: f32[10,10], index: 1, kind: input, shape index: {}]   ;;  %s1723_s2 = inlined_call_operand.vmem [shape: f32[2,32,128], index: 2, kind: input, shape index: {}]   ;;  %s1724_s3 = inlined_call_operand.vmem [shape: f32[2,32,128], index: 3, kind: input, shape index: {}]   ;;  %s1725_s4 = inlined_call_operand.vmem [shape: f32[2,8,128], index: 4, kind: input, shape index: {}]   ;;  %s1726_s5 = inlined_call_operand.vmem [shape: f32[2,32], index: 5, kind: input, shape index: {}]   ;;  %s1727_s6 = inlined_call_operand.vmem [shape: f32[32,128], index: 6, kind: input, shape index: {}]   ;;  %s1728_s7 = inlined_call_operand.vmem [shape: f32[1,128], index: 7, kind: input, shape index: {}]   ;;  %s1729_s8 = inlined_call_operand.vmem [shape: f32[10,128], index: 8, kind: output, shape index: {}]  }
   0x1 LB: > { %s1451_s28 = sadd.s32 4294967295, %s1382_s27   ;;  %p1231_p0 = scmp.ge.s32.totalorder %s1382_s27, 1  ;;  %s1382_s27 = sphi %s1445_s27, %s18_s27  }
   0x2   : > { %p276_p1 = scmp.lt.s32.totalorder %s1382_s27, 3 }
   0x4   : > { %p277_p2 = pnand %p1231_p0, %p276_p1 }
   0x5   : > { %p314_p3 = scmp.lt.s32.totalorder (!%p277_p2), %s1451_s28, 1  ;;  %p1237_p4 = scmp.ne.s32.totalorder (!%p277_p2), %s1451_s28, 0 }
   0x6   : > { %280 = sbr.rel (%p277_p2) target bundleno = 2370 (0x942), region = 52 }
   0xb   : > { %s315_s29 = scalar_select %p314_p3, %s1451_s28, 1 }
   0xc   : > { %331 = sbr.rel (%p1237_p4) target bundleno = 20 (0x14), region = 56 }
   0xd   : > { %s1283_s30 = sshll.u32 %s315_s29, 5  ;;  %s1236_s9 = sshll.u32 %s315_s29, 3 }
   0xe   : > { %s1460_s12 = scalar_lea.vmem %s1723_s2, %s1283_s30  ;;  %s1465_s15 = scalar_lea.vmem %s1724_s3, %s1283_s30 }
   0xf   : > { %s1470_s18 = scalar_lea.vmem %s1725_s4, %s1236_s9 }
  0x11   : > { %v332_v0 = vld [vmem:[%s1721_s0] sm:$0xff]  ;;  %vm334_vm0 = vcmask 261120   ;;  %v333_v1 = vld [vmem:[%s1721_s0 + $0x8] sm:$0x3]  ;;  %vm336_vm1 = vcmask 254976  }
  0x12   : > { %335 = vst.msk [vmem:[#allocation2] sm:$0xff] %vm334_vm0, %v332_v0 }
  0x13   : > { %337 = vst.msk [vmem:[#allocation2 + $0x8] sm:$0x3] %vm336_vm1, %v333_v1 }
  0x14 PF: > { %vm349_vm2 = vcmask 261120   ;;  %vm353_vm3 = vcmask 254976   ;;  %v1384_v6 = vmov 32.0   ;;  %v1496_v23 = vld [vmem:[%s1460_s12 + $0x18] sm:$0xff]  ;;  %v1500_v24 = vld [vmem:[%s1460_s12 + $0x10] sm:$0xff]  ;;  %v1504_v25 = vld [vmem:[%s1460_s12 + $0x8] sm:$0xff] }
  0x15   : > { %1323 = vrcp.f32 %v1384_v6  ;;  %427 = vmatpush.msra.mxu0 %v1496_v23  ;;  %v1508_v26 = vld [vmem:[%s1460_s12] sm:$0xff]  ;;  %v1313_v27 = vpack.i.bf16 %v1500_v24, %v1496_v23  ;;  %s1385_s23 = smov 88   ;;  %s1386_s24 = smov 80   ;;  %vm446_vm11 = vcmask 64512   ;;  %vm482_vm12 = vcmask 80896  }
  0x16   : > { %v1318_v28 = vpack.i.bf16 %v1508_v26, %v1504_v25  ;;  %v1518_v40 = vld [vmem:[%s1470_s18] sm:$0xff]  ;;  %s1387_s25 = smov 96   ;;  %s1388_s26 = smov 112   ;;  %vm486_vm13 = vcmask 74752   ;;  %vm517_vm14 = vcmask 1041408   ;;  %vm872_vm15 = vcmask 130048  }
  0x17   : > { %428 = vmatpush.msra.mxu0 %v1500_v24  ;;  %v402_v44 = vperm.slane %v1518_v40, 0  ;;  %v405_v48 = vperm.slane %v1518_v40, 1  ;;  %v408_v58 = vperm.slane %v1518_v40, 2  ;;  %s1389_s29 = smov 72   ;;  %s1390_s30 = smov 120   ;;  %vm875_vm0 = vcmask 195584  }
  0x18   : > { %s1391_s9 = smov 64   ;;  %s1392_s10 = smov 104  }
  0x19   : > { %v1479_v2 = vld [vmem:[#allocation2] sm:$0xff]  ;;  %429 = vmatpush.msra.mxu0 %v1504_v25  ;;  %s1393_s16 = smov 56   ;;  %s1394_s17 = smov 40  }
  0x1a   : > { %v350_v3 = vsel %vm349_vm2, %v1479_v2, 0.0  ;;  %v1483_v4 = vld [vmem:[#allocation2 + $0x8] sm:$0x3]  ;;  %s1395_s18 = smov 48   ;;  %s1396_s19 = smov 32  }
  0x1b   : > { %351 = vadd.xlane.f32.xlu0 %v350_v3  ;;  %v354_v5 = vsel %vm353_vm3, %v1483_v4, 0.0  ;;  %v1324_v7 = vpop.eup %1323  ;;  %430 = vmatpush.msra.mxu0 %v1508_v26  ;;  %s1397_s20 = smov 24   ;;  %s1398_s21 = smov 16  }
  0x1c   : > { %v358_v8 = vmul.f32 32.0, %v1324_v7  ;;  %vm362_vm4 = vweird.f32 %v1324_v7  ;;  %s1399_s22 = smov 8   ;;  %p1278_p5 = scmp.ne.s32.totalorder %s1451_s28, 1 }
  0x1e   : > { %v359_v9 = vsub.f32 1.0, %v358_v8 }
  0x20   : > { %v360_v10 = vmul.f32 %v1324_v7, %v359_v9 }
  0x22   : > { %v361_v11 = vadd.f32 %v1324_v7, %v360_v10 }
  0x23   : > { %355 = vadd.xlane.f32.xlu0 %v354_v5 }
  0x24   : > { %v1487_v12 = vsel %vm362_vm4, %v1324_v7, %v361_v11 }
  0x8e   : > { %v352_v13 = vpop.xlane.xlu0 %351 }
  0x8f   : > { %v364_v14 = vmul.f32 %v1487_v12, %v352_v13 }
  0x91   : > { %v366_v15 = vsub.f32 %v1479_v2, %v364_v14 }
  0x93   : > { %v368_v16 = vmul.f32 %v366_v15, %v366_v15 }
  0x95   : > { %v370_v17 = vsel %vm349_vm2, %v368_v16, 0.0 }
  0x96   : > { %371 = vadd.xlane.f32.xlu1 %v370_v17  ;;  %v356_v18 = vpop.xlane.xlu0 %355  ;;  %v438_v17 = vld [vmem:[%s1722_s1] sm:$0xff] }
  0x97   : > { %v365_v19 = vmul.f32 %v1487_v12, %v356_v18 }
  0x99   : > { %v367_v20 = vsub.f32 %v1483_v4, %v365_v19 }
  0x9b   : > { %v369_v21 = vmul.f32 %v367_v20, %v367_v20 }
  0x9d   : > { %v373_v22 = vsel %vm353_vm3, %v369_v21, 0.0 }
  0x9e   : > { %374 = vadd.xlane.f32.xlu1 %v373_v22  ;;  %v439_v22 = vld [vmem:[%s1722_s1 + $0x8] sm:$0x3] }
 0x109   : > { %v372_v29 = vpop.xlane.xlu1 %371 }
 0x10a   : > { %v376_v30 = vmul.f32 %v372_v29, %v1487_v12 }
 0x10c   : > { %v378_v31 = vadd.f32 1e-05, %v376_v30 }
 0x10e   : > { %1325 = vrsqrt.f32 %v378_v31  ;;  %vm386_vm6 = vweird.f32 %v378_v31 }
 0x111   : > { %v375_v32 = vpop.xlane.xlu1 %374 }
 0x112   : > { %v377_v33 = vmul.f32 %v375_v32, %v1487_v12 }
 0x114   : > { %v1326_v34 = vpop.eup %1325  ;;  %v379_v35 = vadd.f32 1e-05, %v377_v33 }
 0x115   : > { %v381_v36 = vmul.f32 %v1326_v34, %v378_v31  ;;  %vm387_vm5 = vweird.f32 %v1326_v34 }
 0x116   : > { %1327 = vrsqrt.f32 %v379_v35  ;;  %vm388_vm7 = vmor %vm386_vm6, %vm387_vm5  ;;  %vm396_vm9 = vweird.f32 %v379_v35 }
 0x117   : > { %v382_v37 = vmul.f32 %v1326_v34, %v381_v36 }
 0x119   : > { %v383_v38 = vmul.f32 0.5, %v382_v37 }
 0x11b   : > { %v384_v39 = vsub.f32 1.5, %v383_v38 }
 0x11c   : > { %v1328_v41 = vpop.eup %1327 }
 0x11d   : > { %v385_v42 = vmul.f32 %v1326_v34, %v384_v39  ;;  %v391_v43 = vmul.f32 %v1328_v41, %v379_v35  ;;  %vm397_vm8 = vweird.f32 %v1328_v41 }
 0x11e   : > { %vm398_vm10 = vmor %vm396_vm9, %vm397_vm8  ;;  %vm1039_vm9 = vcmask 523264  }
 0x11f   : > { %v389_v45 = vsel %vm388_vm7, %v1326_v34, %v385_v42  ;;  %v392_v46 = vmul.f32 %v1328_v41, %v391_v43 }
 0x120   : > { %v400_v47 = vmul.f32 %v389_v45, %v366_v15 }
 0x121   : > { %v393_v49 = vmul.f32 0.5, %v392_v46 }
 0x122   : > { %v403_v50 = vmul.f32 %v402_v44, %v400_v47 }
 0x123   : > { %v394_v51 = vsub.f32 1.5, %v393_v49 }
 0x124   : > { %v406_v52 = vadd.f32 %v405_v48, %v403_v50 }
 0x125   : > { %v395_v53 = vmul.f32 %v1328_v41, %v394_v51 }
 0x126   : > { %1238 = vmatmul.msk.f32.vlgmr.msra.gmra.mxu0 %vm349_vm2, %v406_v52 }
 0x127   : > { %v399_v54 = vsel %vm398_vm10, %v1328_v41, %v395_v53 }
 0x128   : > { %v401_v55 = vmul.f32 %v399_v54, %v367_v20 }
 0x12a   : > { %v404_v56 = vmul.f32 %v402_v44, %v401_v55 }
 0x12c   : > { %v407_v57 = vadd.f32 %v405_v48, %v404_v56 }
 0x12e   : > { %1239 = vmatmul.msk.f32.gmra.mxu0 %vm349_vm2, %v407_v57 }
 0x1a3   : > { %v432_v59 = vpop.f32.mrf.mxu0 }
 0x1a4   : > { %v1525_v60 = vadd.f32 %v432_v59, %v408_v58 }
 0x1a6   : > { %547 = vrot.lane.b32.xlu1 %v1525_v60, %s1385_s23 }
 0x1ab   : > { %v435_v61 = vpop.f32.mrf.mxu0 }
 0x1ac   : > { %v1528_v62 = vadd.f32 %v435_v61, %v408_v58 }
 0x1ae   : > { %650 = vrot.lane.b32.xlu1 %v1528_v62, %s1386_s24  ;;  %549 = vrot.lane.b32.xlu0 %v1528_v62, %s1385_s23 }
 0x1af   : > { %444 = vrot.lane.b32.xlu2 %v1528_v62, %s1387_s25 }
 0x1b6   : > { %644 = vrot.lane.b32.xlu1 %v1525_v60, %s1388_s26  ;;  %749 = vrot.lane.b32.xlu0 %v1525_v60, %s1389_s29 }
 0x1b7   : > { %442 = vrot.lane.b32.xlu2 %v1525_v60, %s1387_s25 }
 0x1be   : > { %648 = vrot.lane.b32.xlu0 %v1525_v60, %s1386_s24 }
 0x1bf   : > { %543 = vrot.lane.b32.xlu2 %v1525_v60, %s1390_s30 }
 0x1c6   : > { %646 = vrot.lane.b32.xlu0 %v1528_v62, %s1388_s26 }
 0x1c7   : > { %545 = vrot.lane.b32.xlu2 %v1528_v62, %s1390_s30 }
 0x1ce   : > { %506 = vrot.lane.b32.xlu0 %v1525_v60, %s1391_s9 }
 0x1cf   : > { %751 = vrot.lane.b32.xlu2 %v1528_v62, %s1389_s29 }
 0x1d7   : > { %745 = vrot.lane.b32.xlu2 %v1525_v60, %s1392_s10 }
 0x1df   : > { %747 = vrot.lane.b32.xlu2 %v1528_v62, %s1392_s10 }
 0x209   : > { %v445_v63 = vpop.permute.xlu2 %444 }
 0x20a   : > { %1240 = vmatpush.xpose.msk.msra.mxu1 %vm446_vm11, %v445_v63 }
 0x211   : > { %v443_v0 = vpop.permute.xlu2 %442 }
 0x212   : > { %1241 = vmatpush.xpose.msk.msra.mxu1 %vm446_vm11, %v443_v0 }
 0x215   : > { %1242 = vmatmul.msk.f32.vlgmr.msra.gmra.mxu1 %vm446_vm11, %v1525_v60 }
 0x218   : > { %v548_v1 = vpop.permute.xlu1 %547 }
 0x219   : > { %v544_v3 = vpop.permute.xlu2 %543 }
 0x21d   : > { %1243 = vmatmul.msk.f32.gmra.mxu1 %vm446_vm11, %v1528_v62 }
 0x220   : > { %v550_v5 = vpop.permute.xlu0 %549  ;;  %v651_v6 = vpop.permute.xlu1 %650 }
 0x221   : > { %v546_v7 = vpop.permute.xlu2 %545  ;;  %1247 = vmatpush.xpose.msk.msra.mxu3 %vm446_vm11, %v550_v5  ;;  %1254 = vmatpush.xpose.msk.msrb.mxu0 %vm446_vm11, %v651_v6 }
 0x225   : > { %1248 = vmatpush.xpose.msk.msra.mxu3 %vm446_vm11, %v548_v1 }
 0x228   : > { %v750_v8 = vpop.permute.xlu0 %749  ;;  %1249 = vmatmul.msk.f32.vlgmr.msra.gmra.mxu3 %vm446_vm11, %v544_v3  ;;  %v645_v11 = vpop.permute.xlu1 %644 }
 0x229   : > { %v752_v9 = vpop.permute.xlu2 %751 }
 0x22a   : > { %1261 = vmatpush.xpose.msk.msrb.mxu3 %vm446_vm11, %v752_v9 }
 0x22e   : > { %1262 = vmatpush.xpose.msk.msrb.mxu3 %vm446_vm11, %v750_v8 }
 0x230   : > { %v649_v10 = vpop.permute.xlu0 %648  ;;  %1250 = vmatmul.msk.f32.gmra.mxu3 %vm446_vm11, %v546_v7 }
 0x231   : > { %1255 = vmatpush.xpose.msk.msrb.mxu0 %vm446_vm11, %v649_v10  ;;  %v746_v13 = vpop.permute.xlu2 %745 }
 0x234   : > { %1256 = vmatmul.msk.f32.vlgmr.msrb.gmra.mxu0 %vm446_vm11, %v645_v11 }
 0x238   : > { %1263 = vmatmul.msk.f32.vlgmr.msrb.gmra.mxu3 %vm446_vm11, %v746_v13  ;;  %v647_v14 = vpop.permute.xlu0 %646 }
 0x239   : > { %v748_v15 = vpop.permute.xlu2 %747 }
 0x23c   : > { %1257 = vmatmul.msk.f32.gmra.mxu0 %vm446_vm11, %v647_v14 }
 0x240   : > { %1264 = vmatmul.msk.f32.gmra.mxu3 %vm446_vm11, %v748_v15  ;;  %v507_v63 = vpop.permute.xlu0 %506 }
 0x292   : > { %v472_v16 = vpop.f32.mrf.mxu1 }
 0x293   : > { %v478_v18 = vmul.f32 0.35355338, %v472_v16 }
 0x295   : > { %v480_v19 = vadd.f32 %v478_v18, %v438_v17 }
 0x297   : > { %v483_v20 = vsel %vm482_vm12, %v480_v19, -inf }
 0x298   : > { %484 = vmax.xlane.f32.xlu2 %v483_v20 }
 0x29a   : > { %v475_v21 = vpop.f32.mrf.mxu1 }
 0x29b   : > { %v479_v29 = vmul.f32 0.35355338, %v475_v21 }
 0x29d   : > { %v1570_v30 = vadd.f32 %v479_v29, %v439_v22 }
 0x29f   : > { %v487_v31 = vsel %vm486_vm13, %v1570_v30, -inf }
 0x2a0   : > { %488 = vmax.xlane.f32.xlu1 %v487_v31 }
 0x2ab   : > { %v576_v34 = vpop.f32.mrf.mxu3 }
 0x2ac   : > { %v582_v36 = vmul.f32 0.35355338, %v576_v34 }
 0x2ae   : > { %v584_v38 = vadd.f32 %v582_v36, %v438_v17 }
 0x2b0   : > { %508 = vrot.lane.b32.xlu2 %v1528_v62, %s1391_s9  ;;  %v586_v39 = vsel %vm482_vm12, %v584_v38, -inf }
 0x2b1   : > { %v677_v32 = vpop.f32.mrf.mxu0 }
 0x2b2   : > { %v683_v33 = vmul.f32 0.35355338, %v677_v32 }
 0x2b3   : > { %v579_v41 = vpop.f32.mrf.mxu3 }
 0x2b4   : > { %v685_v35 = vadd.f32 %v683_v33, %v438_v17  ;;  %v583_v43 = vmul.f32 0.35355338, %v579_v41 }
 0x2b6   : > { %v687_v37 = vsel %vm482_vm12, %v685_v35, -inf  ;;  %v585_v44 = vadd.f32 %v583_v43, %v439_v22 }
 0x2b7   : > { %688 = vmax.xlane.f32.xlu0 %v687_v37 }
 0x2b8   : > { %v589_v48 = vsel %vm486_vm13, %v585_v44, -inf }
 0x2b9   : > { %610 = vrot.lane.b32.xlu1 %v1528_v62, %s1393_s16  ;;  %v680_v46 = vpop.f32.mrf.mxu0 }
 0x2ba   : > { %v684_v49 = vmul.f32 0.35355338, %v680_v46 }
 0x2bb   : > { %v778_v42 = vpop.f32.mrf.mxu3 }
 0x2bc   : > { %v1583_v51 = vadd.f32 %v684_v49, %v439_v22  ;;  %v784_v53 = vmul.f32 0.35355338, %v778_v42 }
 0x2be   : > { %v690_v54 = vsel %vm486_vm13, %v1583_v51, -inf  ;;  %v786_v55 = vadd.f32 %v784_v53, %v438_v17 }
 0x2bf   : > { %587 = vmax.xlane.f32.xlu0 %v586_v39 }
 0x2c0   : > { %v788_v56 = vsel %vm482_vm12, %v786_v55, -inf }
 0x2c3   : > { %v781_v45 = vpop.f32.mrf.mxu3 }
 0x2c4   : > { %v785_v47 = vmul.f32 0.35355338, %v781_v45 }
 0x2c6   : > { %v1581_v50 = vadd.f32 %v785_v47, %v439_v22 }
 0x2c8   : > { %v791_v52 = vsel %vm486_vm13, %v1581_v50, -inf }
 0x2d3   : > { %608 = vrot.lane.b32.xlu0 %v1525_v60, %s1393_s16 }
 0x2d9   : > { %590 = vmax.xlane.f32.xlu2 %v589_v48 }
 0x2e1   : > { %792 = vmax.xlane.f32.xlu2 %v791_v52 }
 0x2e3   : > { %691 = vmax.xlane.f32.xlu1 %v690_v54 }
 0x2eb   : > { %789 = vmax.xlane.f32.xlu1 %v788_v56 }
 0x30b   : > { %v485_v57 = vpop.xlane.xlu2 %484 }
 0x30c   : > { %v490_v58 = vsub.f32 %v480_v19, %v485_v57 }
 0x30e   : > { %v492_v59 = vmul.f32 1.442695, %v490_v58 }
 0x310   : > { %1329 = vpow2.f32 %v492_v59 }
 0x313   : > { %v509_v61 = vpop.permute.xlu2 %508  ;;  %v489_v3 = vpop.xlane.xlu1 %488 }
 0x314   : > { %1244 = vmatpush.msk.msra.mxu2 %vm517_vm14, %v509_v61  ;;  %v491_v13 = vsub.f32 %v1570_v30, %v489_v3 }
 0x316   : > { %v1591_v0 = vpop.eup %1329  ;;  %535 = vmatpush.msra.mxu2 %v507_v63  ;;  %v494_v16 = vmul.f32 1.442695, %v491_v13 }
 0x317   : > { %v496_v1 = vsel %vm482_vm12, %v1591_v0, 0.0 }
 0x318   : > { %497 = vadd.xlane.f32.xlu0 %v496_v1 }
 0x32a   : > { %v689_v5 = vpop.xlane.xlu0 %688 }
 0x32b   : > { %v693_v6 = vsub.f32 %v685_v35, %v689_v5  ;;  %v611_v7 = vpop.permute.xlu1 %610 }
 0x32c   : > { %810 = vrot.lane.b32.xlu0 %v1525_v60, %s1394_s17  ;;  %1251 = vmatpush.msk.msrb.mxu2 %vm517_vm14, %v611_v7 }
 0x32d   : > { %v695_v8 = vmul.f32 1.442695, %v693_v6 }
 0x32f   : > { %1331 = vpow2.f32 %v695_v8 }
 0x332   : > { %v588_v9 = vpop.xlane.xlu0 %587 }
 0x333   : > { %v592_v10 = vsub.f32 %v584_v38, %v588_v9 }
 0x335   : > { %v1598_v11 = vpop.eup %1331  ;;  %v594_v14 = vmul.f32 1.442695, %v592_v10 }
 0x336   : > { %v699_v15 = vsel %vm482_vm12, %v1598_v11, 0.0 }
 0x337   : > { %1333 = vpow2.f32 %v594_v14  ;;  %700 = vadd.xlane.f32.xlu1 %v699_v15 }
 0x338   : > { %1335 = vpow2.f32 %v494_v16 }
 0x33d   : > { %v1334_v17 = vpop.eup %1333 }
 0x33e   : > { %v598_v18 = vsel %vm482_vm12, %v1334_v17, 0.0  ;;  %v1336_v19 = vpop.eup %1335 }
 0x33f   : > { %599 = vadd.xlane.f32.xlu1 %v598_v18  ;;  %v499_v21 = vsel %vm486_vm13, %v1336_v19, 0.0 }
 0x345   : > { %v609_v20 = vpop.permute.xlu0 %608 }
 0x346   : > { %636 = vmatpush.msrb.mxu2 %v609_v20 }
 0x347   : > { %500 = vadd.xlane.f32.xlu1 %v499_v21 }
 0x34c   : > { %v591_v22 = vpop.xlane.xlu2 %590 }
 0x34d   : > { %v593_v29 = vsub.f32 %v585_v44, %v591_v22 }
 0x34f   : > { %v596_v30 = vmul.f32 1.442695, %v593_v29 }
 0x351   : > { %1337 = vpow2.f32 %v596_v30 }
 0x354   : > { %v793_v34 = vpop.xlane.xlu2 %792 }
 0x355   : > { %v795_v37 = vsub.f32 %v1581_v50, %v793_v34 }
 0x356   : > { %v692_v31 = vpop.xlane.xlu1 %691 }
 0x357   : > { %v1338_v32 = vpop.eup %1337  ;;  %v798_v39 = vmul.f32 1.442695, %v795_v37  ;;  %v694_v45 = vsub.f32 %v1583_v51, %v692_v31 }
 0x358   : > { %v601_v33 = vsel %vm486_vm13, %v1338_v32, 0.0 }
 0x359   : > { %602 = vadd.xlane.f32.xlu2 %v601_v33  ;;  %v697_v47 = vmul.f32 1.442695, %v694_v45 }
 0x35e   : > { %v790_v35 = vpop.xlane.xlu1 %789 }
 0x35f   : > { %v794_v36 = vsub.f32 %v786_v55, %v790_v35 }
 0x360   : > { %711 = vrot.lane.b32.xlu1 %v1528_v62, %s1395_s18 }
 0x361   : > { %v796_v38 = vmul.f32 1.442695, %v794_v36 }
 0x363   : > { %1339 = vpow2.f32 %v796_v38 }
 0x364   : > { %1341 = vpow2.f32 %v798_v39 }
 0x368   : > { %1314 = vrot.lane.b32.xlu1 %v1313_v27, %s1396_s19 }
 0x369   : > { %v1340_v41 = vpop.eup %1339 }
 0x36a   : > { %v800_v42 = vsel %vm482_vm12, %v1340_v41, 0.0  ;;  %v1342_v43 = vpop.eup %1341 }
 0x36b   : > { %801 = vadd.xlane.f32.xlu0 %v800_v42  ;;  %v803_v44 = vsel %vm486_vm13, %v1342_v43, 0.0 }
 0x370   : > { %1319 = vrot.lane.b32.xlu1 %v1318_v28, %s1396_s19 }
 0x371   : > { %812 = vrot.lane.b32.xlu2 %v1528_v62, %s1394_s17 }
 0x373   : > { %804 = vadd.xlane.f32.xlu0 %v803_v44 }
 0x387   : > { %709 = vrot.lane.b32.xlu0 %v1525_v60, %s1395_s18 }
 0x38b   : > { %v498_v46 = vpop.xlane.xlu0 %497 }
 0x38c   : > { %1343 = vrcp.f32 %v498_v46 }
 0x38d   : > { %1345 = vpow2.f32 %v697_v47 }
 0x392   : > { %v1344_v48 = vpop.eup %1343 }
 0x393   : > { %v504_v49 = vmul.f32 %v1344_v48, %v1591_v0  ;;  %v1346_v50 = vpop.eup %1345 }
 0x394   : > { %v702_v52 = vsel %vm486_vm13, %v1346_v50, 0.0 }
 0x395   : > { %1245 = vmatmul.msk.f32.vlgmr.msra.gmra.mxu2 %vm482_vm12, %v504_v49 }
 0x39a   : > { %703 = vadd.xlane.f32.xlu2 %v702_v52 }
 0x39e   : > { %v811_v0 = vpop.permute.xlu0 %810 }
 0x3aa   : > { %v701_v62 = vpop.xlane.xlu1 %700 }
 0x3b2   : > { %v600_v53 = vpop.xlane.xlu1 %599 }
 0x3ba   : > { %v501_v54 = vpop.xlane.xlu1 %500 }
 0x3bb   : > { %1347 = vrcp.f32 %v501_v54 }
 0x3bc   : > { %1349 = vrcp.f32 %v600_v53 }
 0x3c1   : > { %v1348_v60 = vpop.eup %1347 }
 0x3c2   : > { %v505_v51 = vmul.f32 %v1348_v60, %v1336_v19  ;;  %v1350_v55 = vpop.eup %1349 }
 0x3c3   : > { %v606_v56 = vmul.f32 %v1350_v55, %v1334_v17 }
 0x3c4   : > { %1246 = vmatmul.msk.f32.gmra.mxu2 %vm482_vm12, %v505_v51 }
 0x3cc   : > { %v603_v57 = vpop.xlane.xlu2 %602  ;;  %1252 = vmatmul.msk.f32.vlgmr.msrb.gmra.mxu2 %vm482_vm12, %v606_v56 }
 0x3cd   : > { %1351 = vrcp.f32 %v603_v57 }
 0x3d2   : > { %v712_v58 = vpop.permute.xlu1 %711 }
 0x3d3   : > { %v1352_v59 = vpop.eup %1351  ;;  %1258 = vmatpush.msk.msrb.mxu1 %vm517_vm14, %v712_v58  ;;  %v348_v58 = vld [vmem:[%s1465_s15 + $0x18] sm:$0xff] }
 0x3d4   : > { %v813_v61 = vpop.permute.xlu2 %812  ;;  %v607_v63 = vmul.f32 %v1352_v59, %v1338_v32  ;;  %v347_v59 = vld [vmem:[%s1465_s15 + $0x10] sm:$0xff] }
 0x3d5   : > { %1265 = vmatpush.msk.msra.mxu2 %vm517_vm14, %v813_v61  ;;  %v346_v61 = vld [vmem:[%s1465_s15 + $0x8] sm:$0xff] }
 0x3d6   : > { %1253 = vmatmul.msk.f32.gmra.mxu2 %vm482_vm12, %v607_v63  ;;  %v345_v63 = vld [vmem:[%s1465_s15] sm:$0xff] }
 0x3d7   : > { %838 = vmatpush.msra.mxu2 %v811_v0 }
 0x3da   : > { %v1315_v17 = vpop.permute.xlu1 %1314 }
 0x3db   : > { %v1316_v18 = vunpack.i.l.bf16 %v1315_v17 }
 0x3dd   : > { %912 = vmatpush.msra.mxu0 %v1316_v18 }
 0x3de   : > { %v802_v1 = vpop.xlane.xlu0 %801 }
 0x3df   : > { %1353 = vrcp.f32 %v802_v1 }
 0x3e2   : > { %v1320_v20 = vpop.permute.xlu1 %1319 }
 0x3e3   : > { %v1322_v21 = vunpack.i.h.bf16 %v1320_v20  ;;  %v1321_v22 = vunpack.i.l.bf16 %v1320_v20 }
 0x3e5   : > { %v1354_v3 = vpop.eup %1353 }
 0x3e6   : > { %v808_v5 = vmul.f32 %v1354_v3, %v1340_v41  ;;  %v805_v6 = vpop.xlane.xlu0 %804 }
 0x3e7   : > { %1355 = vrcp.f32 %v805_v6 }
 0x3e8   : > { %1266 = vmatmul.msk.f32.vlgmr.msra.gmra.mxu2 %vm482_vm12, %v808_v5  ;;  %1357 = vrcp.f32 %v701_v62 }
 0x3ed   : > { %v1356_v7 = vpop.eup %1355 }
 0x3ee   : > { %v809_v8 = vmul.f32 %v1356_v7, %v1342_v43  ;;  %v1358_v9 = vpop.eup %1357  ;;  %v925_v43 = vperm.slane %v1518_v40, 3 }
 0x3ef   : > { %v707_v24 = vmul.f32 %v1358_v9, %v1598_v11  ;;  %v1317_v11 = vunpack.i.h.bf16 %v1315_v17 }
 0x3f0   : > { %1267 = vmatmul.msk.f32.gmra.mxu2 %vm482_vm12, %v809_v8 }
 0x3f1   : > { %913 = vmatpush.msra.mxu0 %v1317_v11 }
 0x3f3   : > { %914 = vmatpush.msra.mxu0 %v1321_v22 }
 0x3f5   : > { %915 = vmatpush.msra.mxu0 %v1322_v21 }
 0x3f9   : > { %v710_v23 = vpop.permute.xlu0 %709 }
 0x3fa   : > { %737 = vmatpush.msrb.mxu1 %v710_v23 }
 0x3fb   : > { %1259 = vmatmul.msk.f32.vlgmr.msrb.gmra.mxu1 %vm482_vm12, %v707_v24 }
 0x3fc   : > { %997 = vmatpush.msra.mxu1 %v348_v58 }
 0x3fe   : > { %998 = vmatpush.msra.mxu1 %v347_v59 }
 0x400   : > { %999 = vmatpush.msra.mxu1 %v346_v61 }
 0x402   : > { %1000 = vmatpush.msra.mxu1 %v345_v63 }
 0x40d   : > { %v704_v25 = vpop.xlane.xlu2 %703 }
 0x40e   : > { %1359 = vrcp.f32 %v704_v25 }
 0x414   : > { %v1360_v26 = vpop.eup %1359 }
 0x415   : > { %v708_v27 = vmul.f32 %v1360_v26, %v1346_v50 }
 0x417   : > { %1260 = vmatmul.msk.f32.gmra.mxu1 %vm482_vm12, %v708_v27 }
 0x418   : > { %v537_v28 = vpop.f32.mrf.mxu2 }
 0x447   : > { %v540_v10 = vpop.f32.mrf.mxu2 }
 0x44f   : > { %v638_v13 = vpop.f32.mrf.mxu2 }
 0x459   : > { %v641_v14 = vpop.f32.mrf.mxu2 }
 0x46b   : > { %v840_v15 = vpop.f32.mrf.mxu2 }
 0x46c   : > { %864 = vrot.lane.b32.xlu1 %v840_v15, %s1397_s20 }
 0x473   : > { %v843_v16 = vpop.f32.mrf.mxu2 }
 0x474   : > { %866 = vrot.lane.b32.xlu1 %v843_v16, %s1397_s20  ;;  %v975_v16 = vperm.slane %v1518_v40, 5 }
 0x478   : > { %v739_v19 = vpop.f32.mrf.mxu1 }
 0x479   : > { %856 = vrot.lane.b32.xlu0 %v739_v19, %s1398_s21 }
 0x481   : > { %848 = vrot.lane.b32.xlu0 %v638_v13, %s1399_s22 }
 0x489   : > { %850 = vrot.lane.b32.xlu0 %v641_v14, %s1399_s22 }
 0x494   : > { %v742_v29 = vpop.f32.mrf.mxu1 }
 0x495   : > { %858 = vrot.lane.b32.xlu2 %v742_v29, %s1398_s21 }
 0x4de   : > { %v865_v31 = vpop.permute.xlu1 %864 }
 0x4e6   : > { %v867_v39 = vpop.permute.xlu1 %866 }
 0x4eb   : > { %v857_v30 = vpop.permute.xlu0 %856 }
 0x4ef   : > { %v859_v37 = vpop.permute.xlu2 %858 }
 0x4f3   : > { %v849_v32 = vpop.permute.xlu0 %848 }
 0x4f4   : > { %v870_v33 = vsel %vm446_vm11, %v537_v28, %v849_v32 }
 0x4f5   : > { %v873_v34 = vsel %vm872_vm15, %v870_v33, %v857_v30 }
 0x4f6   : > { %v876_v35 = vsel %vm875_vm0, %v873_v34, %v865_v31 }
 0x4f7   : > { %1268 = vmatmul.msk.f32.vlgmr.msra.gmra.mxu0 %vm349_vm2, %v876_v35  ;;  %v978_v35 = vperm.slane %v1518_v40, 6 }
 0x4fb   : > { %v851_v36 = vpop.permute.xlu0 %850 }
 0x4fc   : > { %v871_v38 = vsel %vm446_vm11, %v540_v10, %v851_v36  ;;  %v972_v10 = vperm.slane %v1518_v40, 4 }
 0x4fd   : > { %v874_v41 = vsel %vm872_vm15, %v871_v38, %v859_v37 }
 0x4fe   : > { %v877_v42 = vsel %vm875_vm0, %v874_v41, %v867_v39 }
 0x4ff   : > { %1269 = vmatmul.msk.f32.gmra.mxu0 %vm349_vm2, %v877_v42 }
 0x574   : > { %v917_v44 = vpop.f32.mrf.mxu0 }
 0x575   : > { %v923_v45 = vadd.f32 %v917_v44, %v1479_v2 }
 0x577   : > { %v1639_v46 = vadd.f32 %v925_v43, %v923_v45 }
 0x579   : > { %v928_v47 = vsel %vm349_vm2, %v1639_v46, 0.0 }
 0x57a   : > { %929 = vadd.xlane.f32.xlu0 %v928_v47 }
 0x57c   : > { %v920_v48 = vpop.f32.mrf.mxu0 }
 0x57d   : > { %v924_v49 = vadd.f32 %v920_v48, %v1483_v4 }
 0x57f   : > { %v1644_v50 = vadd.f32 %v925_v43, %v924_v49 }
 0x581   : > { %v931_v52 = vsel %vm353_vm3, %v1644_v50, 0.0 }
 0x582   : > { %932 = vadd.xlane.f32.xlu1 %v931_v52 }
 0x59b   : > { %1037 = vrot.lane.b32.xlu1 %v348_v58, %s1391_s9 }
 0x5ed   : > { %v930_v62 = vpop.xlane.xlu0 %929 }
 0x5ee   : > { %v934_v2 = vmul.f32 %v930_v62, %v1487_v12 }
 0x5f0   : > { %v936_v53 = vsub.f32 %v1639_v46, %v934_v2 }
 0x5f2   : > { %v938_v54 = vmul.f32 %v936_v53, %v936_v53 }
 0x5f4   : > { %v940_v60 = vsel %vm349_vm2, %v938_v54, 0.0 }
 0x5f5   : > { %941 = vadd.xlane.f32.xlu2 %v940_v60  ;;  %v933_v4 = vpop.xlane.xlu1 %932 }
 0x5f6   : > { %v935_v51 = vmul.f32 %v933_v4, %v1487_v12 }
 0x5f8   : > { %v937_v55 = vsub.f32 %v1644_v50, %v935_v51 }
 0x5fa   : > { %v939_v56 = vmul.f32 %v937_v55, %v937_v55 }
 0x5fc   : > { %v943_v57 = vsel %vm353_vm3, %v939_v56, 0.0 }
 0x5fd   : > { %944 = vadd.xlane.f32.xlu0 %v943_v57  ;;  %v1026_v57 = vperm.slane %v1518_v40, 7 }
 0x60d   : > { %1033 = vrot.lane.b32.xlu2 %v346_v61, %s1391_s9  ;;  %v1038_v31 = vpop.permute.xlu1 %1037 }
 0x60e   : > { %1272 = vmatpush.xpose.msk.msra.mxu3 %vm1039_vm9, %v1038_v31 }
 0x611   : > { %1035 = vrot.lane.b32.xlu0 %v347_v59, %s1391_s9 }
 0x619   : > { %1031 = vrot.lane.b32.xlu0 %v345_v63, %s1391_s9 }
 0x668   : > { %v942_v0 = vpop.xlane.xlu2 %941 }
 0x669   : > { %v946_v1 = vmul.f32 %v942_v0, %v1487_v12 }
 0x66b   : > { %v948_v3 = vadd.f32 1e-05, %v946_v1 }
 0x66d   : > { %1361 = vrsqrt.f32 %v948_v3  ;;  %vm956_vm4 = vweird.f32 %v948_v3 }
 0x670   : > { %v945_v5 = vpop.xlane.xlu0 %944  ;;  %v1034_v33 = vpop.permute.xlu2 %1033 }
 0x671   : > { %v947_v6 = vmul.f32 %v945_v5, %v1487_v12 }
 0x673   : > { %v1362_v7 = vpop.eup %1361  ;;  %v949_v8 = vadd.f32 1e-05, %v947_v6 }
 0x674   : > { %v951_v9 = vmul.f32 %v1362_v7, %v948_v3  ;;  %vm957_vm1 = vweird.f32 %v1362_v7 }
 0x675   : > { %1363 = vrsqrt.f32 %v949_v8  ;;  %vm958_vm5 = vmor %vm956_vm4, %vm957_vm1  ;;  %vm966_vm7 = vweird.f32 %v949_v8 }
 0x676   : > { %v952_v23 = vmul.f32 %v1362_v7, %v951_v9 }
 0x678   : > { %v953_v24 = vmul.f32 0.5, %v952_v23 }
 0x67a   : > { %v954_v25 = vsub.f32 1.5, %v953_v24 }
 0x67b   : > { %v1364_v26 = vpop.eup %1363 }
 0x67c   : > { %v955_v27 = vmul.f32 %v1362_v7, %v954_v25  ;;  %v961_v28 = vmul.f32 %v1364_v26, %v949_v8  ;;  %vm967_vm6 = vweird.f32 %v1364_v26 }
 0x67d   : > { %vm968_vm8 = vmor %vm966_vm7, %vm967_vm6 }
 0x67e   : > { %v959_v13 = vsel %vm958_vm5, %v1362_v7, %v955_v27  ;;  %v962_v14 = vmul.f32 %v1364_v26, %v961_v28 }
 0x67f   : > { %v970_v15 = vmul.f32 %v959_v13, %v936_v53 }
 0x680   : > { %v963_v17 = vmul.f32 0.5, %v962_v14 }
 0x681   : > { %v973_v11 = vmul.f32 %v972_v10, %v970_v15 }
 0x682   : > { %v964_v18 = vsub.f32 1.5, %v963_v17 }
 0x683   : > { %v976_v19 = vadd.f32 %v975_v16, %v973_v11  ;;  %v1036_v32 = vpop.permute.xlu0 %1035 }
 0x684   : > { %v965_v20 = vmul.f32 %v1364_v26, %v964_v18  ;;  %1273 = vmatpush.xpose.msk.msra.mxu3 %vm1039_vm9, %v1036_v32 }
 0x685   : > { %1270 = vmatmul.msk.f32.vlgmr.msra.gmra.mxu1 %vm349_vm2, %v976_v19 }
 0x686   : > { %v969_v21 = vsel %vm968_vm8, %v1364_v26, %v965_v20 }
 0x687   : > { %v971_v22 = vmul.f32 %v969_v21, %v937_v55 }
 0x688   : > { %1274 = vmatpush.xpose.msk.msra.mxu3 %vm1039_vm9, %v1034_v33 }
 0x689   : > { %v974_v29 = vmul.f32 %v972_v10, %v971_v22 }
 0x68b   : > { %v977_v30 = vadd.f32 %v975_v16, %v974_v29  ;;  %v1032_v34 = vpop.permute.xlu0 %1031 }
 0x68c   : > { %1275 = vmatpush.xpose.msk.msra.mxu3 %vm1039_vm9, %v1032_v34 }
 0x68d   : > { %1271 = vmatmul.msk.f32.gmra.mxu1 %vm349_vm2, %v977_v30 }
 0x702   : > { %v1002_v36 = vpop.f32.mrf.mxu1 }
 0x703   : > { %v1003_v37 = vadd.f32 %v1002_v36, %v978_v35 }
 0x705   : > { %v1008_v38 = vmul.f32 %v1003_v37, %v1003_v37 }
 0x707   : > { %v1010_v39 = vmul.f32 %v1008_v38, %v1003_v37 }
 0x709   : > { %v1012_v41 = vmul.f32 0.044715, %v1010_v39 }
 0x70a   : > { %v1005_v42 = vpop.f32.mrf.mxu1 }
 0x70b   : > { %v1014_v43 = vadd.f32 %v1012_v41, %v1003_v37  ;;  %v1006_v44 = vadd.f32 %v1005_v42, %v978_v35 }
 0x70d   : > { %v1016_v45 = vmul.f32 0.7978846, %v1014_v43  ;;  %v1009_v47 = vmul.f32 %v1006_v44, %v1006_v44 }
 0x70f   : > { %1365 = vtanh.f32 %v1016_v45  ;;  %v1011_v48 = vmul.f32 %v1009_v47, %v1006_v44 }
 0x711   : > { %v1013_v49 = vmul.f32 0.044715, %v1011_v48 }
 0x713   : > { %v1015_v52 = vadd.f32 %v1013_v49, %v1006_v44 }
 0x715   : > { %v1366_v62 = vpop.eup %1365  ;;  %v1017_v2 = vmul.f32 0.7978846, %v1015_v52 }
 0x716   : > { %v1020_v53 = vadd.f32 1.0, %v1366_v62 }
 0x717   : > { %1367 = vtanh.f32 %v1017_v2 }
 0x718   : > { %v1022_v54 = vmul.f32 0.5, %v1020_v53 }
 0x71a   : > { %v1024_v60 = vmul.f32 %v1022_v54, %v1003_v37 }
 0x71c   : > { %1276 = vmatmul.msk.f32.vlgmr.msra.gmra.mxu3 %vm1039_vm9, %v1024_v60 }
 0x71d   : > { %v1368_v4 = vpop.eup %1367 }
 0x71e   : > { %v1021_v51 = vadd.f32 1.0, %v1368_v4 }
 0x720   : > { %v1023_v55 = vmul.f32 0.5, %v1021_v51 }
 0x722   : > { %v1025_v56 = vmul.f32 %v1023_v55, %v1006_v44 }
 0x724   : > { %1277 = vmatmul.msk.f32.gmra.mxu3 %vm1039_vm9, %v1025_v56 }
 0x79f   : > { %v1071_v58 = vpop.f32.mrf.mxu3 }
 0x7a0   : > { %v1072_v59 = vadd.f32 %v1071_v58, %v1026_v57 }
 0x7a2   : > { %v1077_v61 = vadd.f32 %v1072_v59, %v1639_v46 }
 0x7a4   : > { %1079 = vst.msk [vmem:[#allocation2] sm:$0xff] %vm349_vm2, %v1077_v61 }
 0x7a7   : > { %v1074_v63 = vpop.f32.mrf.mxu3 }
 0x7a8   : > { %v1075_v0 = vadd.f32 %v1074_v63, %v1026_v57  ;;  %1084 = sbr.rel (%p1278_p5) target bundleno = 2370 (0x942), region = 60 }
 0x7aa   : > { %v1078_v1 = vadd.f32 %v1075_v0, %v1644_v50 }
 0x7ac   : > { %1080 = vst.msk [vmem:[#allocation2 + $0x8] sm:$0x3] %vm353_vm3, %v1078_v1 }
 0x7ad   : > { %v1087_v3 = vsel %vm349_vm2, %v1077_v61, 0.0  ;;  %v1090_v40 = vsel %vm353_vm3, %v1078_v1, 0.0  ;;  %v1140_v26 = vld [vmem:[%s1727_s6 + $0x18] sm:$0xff]  ;;  %v1139_v27 = vld [vmem:[%s1727_s6 + $0x10] sm:$0xff]  ;;  %v1138_v28 = vld [vmem:[%s1727_s6 + $0x8] sm:$0xff] }
 0x7ae   : > { %1088 = vadd.xlane.f32.xlu0 %v1087_v3  ;;  %1163 = vmatpush.msra.mxu0 %v1140_v26  ;;  %v1137_v10 = vld [vmem:[%s1727_s6] sm:$0xff] }
 0x7af   : > { %1285 = vmatpush.msra.mxu1 %v1140_v26  ;;  %v1369_v32 = vld [vmem:[%s1726_s5] ss:$0 sm:$0xff]  ;;  %v1370_v35 = vld [vmem:[%s1726_s5 + $0x1] ss:$0 sm:$0xff] }
 0x7b0   : > { %1164 = vmatpush.msra.mxu0 %v1139_v27  ;;  %v1371_v47 = vld [vmem:[%s1728_s7] ss:$0 sm:$0xff] }
 0x7b1   : > { %1286 = vmatpush.msra.mxu1 %v1139_v27 }
 0x7b2   : > { %1165 = vmatpush.msra.mxu0 %v1138_v28 }
 0x7b3   : > { %1287 = vmatpush.msra.mxu1 %v1138_v28 }
 0x7b4   : > { %1166 = vmatpush.msra.mxu0 %v1137_v10 }
 0x7b5   : > { %1288 = vmatpush.msra.mxu1 %v1137_v10 }
 0x7b6   : > { %1091 = vadd.xlane.f32.xlu0 %v1090_v40 }
 0x821   : > { %v1089_v5 = vpop.xlane.xlu0 %1088 }
 0x822   : > { %v1093_v46 = vmul.f32 %v1089_v5, %v1487_v12 }
 0x824   : > { %v1095_v6 = vsub.f32 %v1077_v61, %v1093_v46 }
 0x826   : > { %v1097_v7 = vmul.f32 %v1095_v6, %v1095_v6 }
 0x828   : > { %v1099_v8 = vsel %vm349_vm2, %v1097_v7, 0.0 }
 0x829   : > { %1100 = vadd.xlane.f32.xlu1 %v1099_v8  ;;  %v1092_v50 = vpop.xlane.xlu0 %1091 }
 0x82a   : > { %v1094_v9 = vmul.f32 %v1092_v50, %v1487_v12 }
 0x82c   : > { %v1096_v23 = vsub.f32 %v1078_v1, %v1094_v9 }
 0x82e   : > { %v1098_v24 = vmul.f32 %v1096_v23, %v1096_v23 }
 0x830   : > { %v1102_v25 = vsel %vm353_vm3, %v1098_v24, 0.0 }
 0x831   : > { %1103 = vadd.xlane.f32.xlu1 %v1102_v25 }
 0x89c   : > { %v1101_v13 = vpop.xlane.xlu1 %1100 }
 0x89d   : > { %v1105_v14 = vmul.f32 %v1101_v13, %v1487_v12 }
 0x89f   : > { %v1107_v15 = vadd.f32 1e-05, %v1105_v14 }
 0x8a1   : > { %1372 = vrsqrt.f32 %v1107_v15  ;;  %vm1115_vm10 = vweird.f32 %v1107_v15 }
 0x8a4   : > { %v1104_v16 = vpop.xlane.xlu1 %1103 }
 0x8a5   : > { %v1106_v17 = vmul.f32 %v1104_v16, %v1487_v12 }
 0x8a7   : > { %v1373_v11 = vpop.eup %1372  ;;  %v1108_v18 = vadd.f32 1e-05, %v1106_v17 }
 0x8a8   : > { %v1110_v19 = vmul.f32 %v1373_v11, %v1107_v15  ;;  %vm1116_vm3 = vweird.f32 %v1373_v11 }
 0x8a9   : > { %1374 = vrsqrt.f32 %v1108_v18  ;;  %vm1117_vm11 = vmor %vm1115_vm10, %vm1116_vm3  ;;  %vm1125_vm13 = vweird.f32 %v1108_v18 }
 0x8aa   : > { %v1111_v20 = vmul.f32 %v1373_v11, %v1110_v19 }
 0x8ac   : > { %v1112_v21 = vmul.f32 0.5, %v1111_v20 }
 0x8ae   : > { %v1113_v22 = vsub.f32 1.5, %v1112_v21 }
 0x8af   : > { %v1375_v29 = vpop.eup %1374 }
 0x8b0   : > { %v1114_v30 = vmul.f32 %v1373_v11, %v1113_v22  ;;  %v1120_v31 = vmul.f32 %v1375_v29, %v1108_v18  ;;  %vm1126_vm12 = vweird.f32 %v1375_v29 }
 0x8b1   : > { %vm1127_vm14 = vmor %vm1125_vm13, %vm1126_vm12 }
 0x8b2   : > { %v1121_v33 = vmul.f32 %v1375_v29, %v1120_v31  ;;  %v1118_v34 = vsel %vm1117_vm11, %v1373_v11, %v1114_v30 }
 0x8b3   : > { %v1129_v12 = vmul.f32 %v1118_v34, %v1095_v6 }
 0x8b4   : > { %v1122_v36 = vmul.f32 0.5, %v1121_v33 }
 0x8b5   : > { %v1132_v37 = vmul.f32 %v1369_v32, %v1129_v12 }
 0x8b6   : > { %v1123_v38 = vsub.f32 1.5, %v1122_v36 }
 0x8b7   : > { %v1135_v39 = vadd.f32 %v1370_v35, %v1132_v37 }
 0x8b8   : > { %v1124_v41 = vmul.f32 %v1375_v29, %v1123_v38 }
 0x8b9   : > { %1279 = vmatmul.msk.f32.vlgmr.msra.gmra.mxu0 %vm349_vm2, %v1135_v39 }
 0x8ba   : > { %v1128_v42 = vsel %vm1127_vm14, %v1375_v29, %v1124_v41 }
 0x8bb   : > { %v1130_v43 = vmul.f32 %v1128_v42, %v1096_v23 }
 0x8bd   : > { %v1133_v44 = vmul.f32 %v1369_v32, %v1130_v43 }
 0x8bf   : > { %v1136_v45 = vadd.f32 %v1370_v35, %v1133_v44 }
 0x8c1   : > { %1280 = vmatmul.msk.f32.vlgmr.msra.gmra.mxu1 %vm349_vm2, %v1136_v45 }
 0x936   : > { %v1168_v48 = vpop.f32.mrf.mxu0 }
 0x937   : > { %v1169_v49 = vadd.f32 %v1371_v47, %v1168_v48 }
 0x939   : > { %1174 = vst [vmem:[%s1729_s8] sm:$0xff] %v1169_v49 }
 0x93e   : > { %v1171_v52 = vpop.f32.mrf.mxu1 }
 0x93f   : > { %v1172_v62 = vadd.f32 %v1371_v47, %v1171_v52 }
 0x941   : > { %1175 = vst [vmem:[%s1729_s8 + $0x8] sm:$0x3] %v1172_v62 }
 0x942 PF: > { %s18_s27 = sadd.s32 1, %s1382_s27  }
 0x943   : > { %p15_p6 = scmp.ge.s32.totalorder %s18_s27, 4  }
 0x945   :  { %17 = sbr.rel (!%p15_p6) target bundleno = 1 (0x1), region = 92 }

// kernel: mae_forward.3
= control target key start
LH: loop header
LB: loop body
LE: loop exit
PB: predicated region body
PF: predicated region fallthrough
CT: control target
= control target key end

     0   :  { %s2420_s27 = smov 0   ;;  %s3168_s0 = inlined_call_operand.vmem [shape: f32[34,32], index: 0, kind: input, shape index: {}]   ;;  %s3169_s1 = inlined_call_operand.vmem [shape: f32[34,34], index: 1, kind: input, shape index: {}]   ;;  %s3170_s2 = inlined_call_operand.vmem [shape: f32[2,32,128], index: 2, kind: input, shape index: {}]   ;;  %s3171_s3 = inlined_call_operand.vmem [shape: f32[2,32,128], index: 3, kind: input, shape index: {}]   ;;  %s3172_s4 = inlined_call_operand.vmem [shape: f32[2,8,128], index: 4, kind: input, shape index: {}]   ;;  %s3173_s5 = inlined_call_operand.vmem [shape: f32[2,32], index: 5, kind: input, shape index: {}]   ;;  %s3174_s6 = inlined_call_operand.vmem [shape: f32[32,128], index: 6, kind: input, shape index: {}]   ;;  %s3175_s7 = inlined_call_operand.vmem [shape: f32[1,128], index: 7, kind: input, shape index: {}]   ;;  %s3176_s8 = inlined_call_operand.vmem [shape: f32[34,128], index: 8, kind: output, shape index: {}]  }
   0x1 LB: > { %s2426_s28 = sadd.s32 4294967295, %s2357_s27   ;;  %p2029_p0 = scmp.ge.s32.totalorder %s2357_s27, 1  ;;  %s2357_s27 = sphi %s2420_s27, %s18_s27  }
   0x2   : > { %p276_p1 = scmp.lt.s32.totalorder %s2357_s27, 3 }
   0x4   : > { %p277_p2 = pnand %p2029_p0, %p276_p1 }
   0x5   : > { %p314_p3 = scmp.lt.s32.totalorder (!%p277_p2), %s2426_s28, 1  ;;  %p2035_p4 = scmp.ne.s32.totalorder (!%p277_p2), %s2426_s28, 0 }
   0x6   : > { %280 = sbr.rel (%p277_p2) target bundleno = 2907 (0xb5b), region = 52 }
   0xb   : > { %s315_s29 = scalar_select %p314_p3, %s2426_s28, 1 }
   0xc   : > { %331 = sbr.rel (%p2035_p4) target bundleno = 23 (0x17), region = 56 }
   0xd   : > { %s2132_s30 = sshll.u32 %s315_s29, 5  ;;  %s2034_s9 = sshll.u32 %s315_s29, 3 }
   0xe   : > { %s2435_s12 = scalar_lea.vmem %s3170_s2, %s2132_s30  ;;  %s2440_s15 = scalar_lea.vmem %s3171_s3, %s2132_s30 }
   0xf   : > { %s2445_s18 = scalar_lea.vmem %s3172_s4, %s2034_s9 }
  0x11   : > { %v332_v0 = vld [vmem:[%s3168_s0] sm:$0xff]  ;;  %vm337_vm0 = vcmask 261120   ;;  %v333_v1 = vld [vmem:[%s3168_s0 + $0x8] sm:$0xff]  ;;  %v334_v2 = vld [vmem:[%s3168_s0 + $0x10] sm:$0xff]  ;;  %vm342_vm1 = vcmask 254976  }
  0x12   : > { %338 = vst.msk [vmem:[#allocation2] sm:$0xff] %vm337_vm0, %v332_v0  ;;  %v335_v3 = vld [vmem:[%s3168_s0 + $0x18] sm:$0xff]  ;;  %v336_v4 = vld [vmem:[%s3168_s0 + $0x20] sm:$0x3] }
  0x13   : > { %339 = vst.msk [vmem:[#allocation2 + $0x8] sm:$0xff] %vm337_vm0, %v333_v1 }
  0x14   : > { %340 = vst.msk [vmem:[#allocation2 + $0x10] sm:$0xff] %vm337_vm0, %v334_v2 }
  0x15   : > { %341 = vst.msk [vmem:[#allocation2 + $0x18] sm:$0xff] %vm337_vm0, %v335_v3 }
  0x16   : > { %343 = vst.msk [vmem:[#allocation2 + $0x20] sm:$0x3] %vm342_vm1, %v336_v4 }
  0x17 PF: > { %vm358_vm2 = vcmask 261120   ;;  %vm371_vm3 = vcmask 254976   ;;  %v2359_v15 = vmov 32.0   ;;  %v2501_v47 = vld [vmem:[%s2435_s12 + $0x18] sm:$0xff]  ;;  %v2505_v48 = vld [vmem:[%s2435_s12 + $0x10] sm:$0xff]  ;;  %v2509_v49 = vld [vmem:[%s2435_s12 + $0x8] sm:$0xff] }
  0x18   : > { %2220 = vrcp.f32 %v2359_v15  ;;  %517 = vmatpush.msra.mxu0 %v2501_v47  ;;  %v2513_v50 = vld [vmem:[%s2435_s12] sm:$0xff]  ;;  %v2210_v57 = vpack.i.bf16 %v2505_v48, %v2501_v47  ;;  %s2360_s9 = smov 96   ;;  %s2361_s10 = smov 88  }
  0x19   : > { %v344_v6 = vld [vmem:[#allocation2] sm:$0xff]  ;;  %v2215_v58 = vpack.i.bf16 %v2513_v50, %v2509_v49  ;;  %s2362_s11 = smov 80   ;;  %s2363_s12 = smov 120  }
  0x1a   : > { %v359_v8 = vsel %vm358_vm2, %v344_v6, 0.0  ;;  %v345_v12 = vld [vmem:[#allocation2 + $0x8] sm:$0xff]  ;;  %518 = vmatpush.msra.mxu0 %v2505_v48  ;;  %s2364_s13 = smov 64   ;;  %s2365_s14 = smov 72  }
  0x1b   : > { %v346_v5 = vld [vmem:[#allocation2 + $0x10] sm:$0xff]  ;;  %360 = vadd.xlane.f32.xlu0 %v359_v8  ;;  %v362_v14 = vsel %vm358_vm2, %v345_v12, 0.0  ;;  %s2366_s16 = smov 104   ;;  %s2367_s17 = smov 112  }
  0x1c   : > { %v365_v7 = vsel %vm358_vm2, %v346_v5, 0.0  ;;  %v347_v11 = vld [vmem:[#allocation2 + $0x18] sm:$0xff]  ;;  %519 = vmatpush.msra.mxu0 %v2509_v49  ;;  %p2124_p5 = scmp.ne.s32.totalorder %s2426_s28, 1 }
  0x1d   : > { %v348_v9 = vld [vmem:[#allocation2 + $0x20] sm:$0x3]  ;;  %366 = vadd.xlane.f32.xlu1 %v365_v7  ;;  %v368_v13 = vsel %vm358_vm2, %v347_v11, 0.0 }
  0x1e   : > { %v372_v10 = vsel %vm371_vm3, %v348_v9, 0.0  ;;  %v2221_v16 = vpop.eup %2220  ;;  %520 = vmatpush.msra.mxu0 %v2513_v50 }
  0x1f   : > { %373 = vadd.xlane.f32.xlu2 %v372_v10  ;;  %v376_v17 = vmul.f32 32.0, %v2221_v16  ;;  %vm380_vm4 = vweird.f32 %v2221_v16 }
  0x21   : > { %v377_v18 = vsub.f32 1.0, %v376_v17 }
  0x23   : > { %363 = vadd.xlane.f32.xlu0 %v362_v14  ;;  %v378_v19 = vmul.f32 %v2221_v16, %v377_v18 }
  0x25   : > { %369 = vadd.xlane.f32.xlu1 %v368_v13  ;;  %v379_v20 = vadd.f32 %v2221_v16, %v378_v19  ;;  %v2526_v13 = vld [vmem:[%s2445_s18] sm:$0xff] }
  0x26   : > { %v477_v19 = vperm.slane %v2526_v13, 0 }
  0x27   : > { %v2468_v21 = vsel %vm380_vm4, %v2221_v16, %v379_v20 }
  0x8e   : > { %v361_v23 = vpop.xlane.xlu0 %360 }
  0x8f   : > { %v382_v25 = vmul.f32 %v2468_v21, %v361_v23 }
  0x90   : > { %v367_v22 = vpop.xlane.xlu1 %366 }
  0x91   : > { %v384_v24 = vmul.f32 %v2468_v21, %v367_v22  ;;  %v2474_v27 = vsub.f32 %v344_v6, %v382_v25 }
  0x92   : > { %v374_v30 = vpop.xlane.xlu2 %373 }
  0x93   : > { %v2472_v26 = vsub.f32 %v346_v5, %v384_v24  ;;  %v392_v29 = vmul.f32 %v2474_v27, %v2474_v27  ;;  %v386_v37 = vmul.f32 %v2468_v21, %v374_v30  ;;  %v483_v24 = vperm.slane %v2526_v13, 1 }
  0x95   : > { %v394_v28 = vmul.f32 %v2472_v26, %v2472_v26  ;;  %v397_v32 = vsel %vm358_vm2, %v392_v29, 0.0  ;;  %v2489_v40 = vsub.f32 %v348_v9, %v386_v37 }
  0x96   : > { %398 = vadd.xlane.f32.xlu2 %v397_v32  ;;  %v364_v34 = vpop.xlane.xlu0 %363 }
  0x97   : > { %v403_v31 = vsel %vm358_vm2, %v394_v28, 0.0  ;;  %v383_v36 = vmul.f32 %v2468_v21, %v364_v34  ;;  %v396_v45 = vmul.f32 %v2489_v40, %v2489_v40 }
  0x98   : > { %404 = vadd.xlane.f32.xlu1 %v403_v31  ;;  %v370_v33 = vpop.xlane.xlu1 %369 }
  0x99   : > { %v385_v35 = vmul.f32 %v2468_v21, %v370_v33  ;;  %v2487_v39 = vsub.f32 %v345_v12, %v383_v36  ;;  %v409_v46 = vsel %vm371_vm3, %v396_v45, 0.0 }
  0x9b   : > { %v2485_v38 = vsub.f32 %v347_v11, %v385_v35  ;;  %v393_v42 = vmul.f32 %v2487_v39, %v2487_v39 }
  0x9d   : > { %v395_v41 = vmul.f32 %v2485_v38, %v2485_v38  ;;  %v400_v44 = vsel %vm358_vm2, %v393_v42, 0.0 }
  0x9e   : > { %401 = vadd.xlane.f32.xlu0 %v400_v44 }
  0x9f   : > { %v406_v43 = vsel %vm358_vm2, %v395_v41, 0.0 }
  0xa0   : > { %407 = vadd.xlane.f32.xlu2 %v406_v43 }
  0xa6   : > { %410 = vadd.xlane.f32.xlu0 %v409_v46 }
 0x109   : > { %v399_v52 = vpop.xlane.xlu2 %398 }
 0x10a   : > { %v412_v54 = vmul.f32 %v399_v52, %v2468_v21 }
 0x10b   : > { %v405_v51 = vpop.xlane.xlu1 %404 }
 0x10c   : > { %v414_v53 = vmul.f32 %v405_v51, %v2468_v21  ;;  %v417_v56 = vadd.f32 1e-05, %v412_v54 }
 0x10e   : > { %v419_v55 = vadd.f32 1e-05, %v414_v53  ;;  %vm428_vm6 = vweird.f32 %v417_v56 }
 0x110   : > { %2222 = vrsqrt.f32 %v419_v55  ;;  %vm448_vm8 = vweird.f32 %v419_v55 }
 0x111   : > { %2224 = vrsqrt.f32 %v417_v56  ;;  %v402_v60 = vpop.xlane.xlu0 %401 }
 0x112   : > { %v413_v62 = vmul.f32 %v402_v60, %v2468_v21 }
 0x113   : > { %v408_v59 = vpop.xlane.xlu2 %407 }
 0x114   : > { %v415_v61 = vmul.f32 %v408_v59, %v2468_v21  ;;  %v418_v1 = vadd.f32 1e-05, %v413_v62 }
 0x116   : > { %v2223_v63 = vpop.eup %2222  ;;  %v420_v0 = vadd.f32 1e-05, %v415_v61  ;;  %vm438_vm11 = vweird.f32 %v418_v1 }
 0x117   : > { %v2225_v2 = vpop.eup %2224  ;;  %v443_v3 = vmul.f32 %v2223_v63, %v419_v55  ;;  %vm449_vm9 = vweird.f32 %v2223_v63 }
 0x118   : > { %v423_v4 = vmul.f32 %v2225_v2, %v417_v56  ;;  %2226 = vrsqrt.f32 %v420_v0  ;;  %vm429_vm5 = vweird.f32 %v2225_v2  ;;  %vm450_vm12 = vmor %vm448_vm8, %vm449_vm9  ;;  %vm458_vm14 = vweird.f32 %v420_v0 }
 0x119   : > { %2228 = vrsqrt.f32 %v418_v1  ;;  %v444_v6 = vmul.f32 %v2223_v63, %v443_v3  ;;  %v411_v7 = vpop.xlane.xlu0 %410  ;;  %vm430_vm7 = vmor %vm428_vm6, %vm429_vm5  ;;  %vm557_vm6 = vcmask 64512   ;;  %vm620_vm8 = vcmask 277504  }
 0x11a   : > { %v424_v5 = vmul.f32 %v2225_v2, %v423_v4  ;;  %v416_v9 = vmul.f32 %v411_v7, %v2468_v21  ;;  %v489_v4 = vperm.slane %v2526_v13, 2  ;;  %vm633_vm9 = vcmask 271360  }
 0x11b   : > { %v445_v15 = vmul.f32 0.5, %v444_v6 }
 0x11c   : > { %v425_v8 = vmul.f32 0.5, %v424_v5  ;;  %v421_v12 = vadd.f32 1e-05, %v416_v9 }
 0x11d   : > { %v446_v25 = vsub.f32 1.5, %v445_v15 }
 0x11e   : > { %v2227_v10 = vpop.eup %2226  ;;  %v426_v11 = vsub.f32 1.5, %v425_v8  ;;  %2230 = vrsqrt.f32 %v421_v12  ;;  %vm468_vm1 = vweird.f32 %v421_v12 }
 0x11f   : > { %v2229_v14 = vpop.eup %2228  ;;  %v453_v17 = vmul.f32 %v2227_v10, %v420_v0  ;;  %v447_v34 = vmul.f32 %v2223_v63, %v446_v25  ;;  %vm459_vm15 = vweird.f32 %v2227_v10 }
 0x120   : > { %v427_v16 = vmul.f32 %v2225_v2, %v426_v11  ;;  %v433_v18 = vmul.f32 %v2229_v14, %v418_v1  ;;  %vm439_vm10 = vweird.f32 %v2229_v14  ;;  %vm460_vm0 = vmor %vm458_vm14, %vm459_vm15 }
 0x121   : > { %v454_v28 = vmul.f32 %v2227_v10, %v453_v17  ;;  %vm440_vm13 = vmor %vm438_vm11, %vm439_vm10  ;;  %v451_v42 = vsel %vm450_vm12, %v2223_v63, %v447_v34  ;;  %vm1406_vm10 = vcmask 130048   ;;  %vm1412_vm11 = vcmask 195584  }
 0x122   : > { %v431_v20 = vsel %vm430_vm7, %v2225_v2, %v427_v16  ;;  %v434_v22 = vmul.f32 %v2229_v14, %v433_v18  ;;  %v474_v51 = vmul.f32 %v451_v42, %v2472_v26  ;;  %vm706_vm7 = vcmask 1041408  }
 0x123   : > { %v472_v23 = vmul.f32 %v431_v20, %v2474_v27  ;;  %v455_v35 = vmul.f32 0.5, %v454_v28 }
 0x124   : > { %v435_v29 = vmul.f32 0.5, %v434_v22  ;;  %v2231_v31 = vpop.eup %2230  ;;  %v480_v54 = vmul.f32 %v477_v19, %v474_v51 }
 0x125   : > { %v478_v30 = vmul.f32 %v477_v19, %v472_v23  ;;  %v463_v37 = vmul.f32 %v2231_v31, %v421_v12  ;;  %v456_v43 = vsub.f32 1.5, %v455_v35  ;;  %vm469_vm4 = vweird.f32 %v2231_v31 }
 0x126   : > { %v436_v32 = vsub.f32 1.5, %v435_v29  ;;  %vm470_vm5 = vmor %vm468_vm1, %vm469_vm4 }
 0x127   : > { %v484_v33 = vadd.f32 %v483_v24, %v478_v30  ;;  %v464_v44 = vmul.f32 %v2231_v31, %v463_v37  ;;  %v457_v52 = vmul.f32 %v2227_v10, %v456_v43 }
 0x128   : > { %v437_v36 = vmul.f32 %v2229_v14, %v436_v32 }
 0x129   : > { %2036 = vmatmul.msk.f32.vlgmr.msra.gmra.mxu0 %vm358_vm2, %v484_v33  ;;  %v465_v53 = vmul.f32 0.5, %v464_v44  ;;  %v461_v55 = vsel %vm460_vm0, %v2227_v10, %v457_v52 }
 0x12a   : > { %v441_v27 = vsel %vm440_vm13, %v2229_v14, %v437_v36  ;;  %v475_v59 = vmul.f32 %v461_v55, %v2485_v38 }
 0x12b   : > { %v473_v41 = vmul.f32 %v441_v27, %v2487_v39  ;;  %v466_v56 = vsub.f32 1.5, %v465_v53  ;;  %v486_v39 = vadd.f32 %v483_v24, %v480_v54 }
 0x12c   : > { %v481_v61 = vmul.f32 %v477_v19, %v475_v59 }
 0x12d   : > { %v479_v45 = vmul.f32 %v477_v19, %v473_v41  ;;  %v467_v60 = vmul.f32 %v2231_v31, %v466_v56 }
 0x12e   : > { %v487_v26 = vadd.f32 %v483_v24, %v481_v61 }
 0x12f   : > { %v485_v46 = vadd.f32 %v483_v24, %v479_v45  ;;  %v471_v62 = vsel %vm470_vm5, %v2231_v31, %v467_v60  ;;  %v2625_v60 = vld [vmem:[%s3169_s1] sm:$0xff] }
 0x130   : > { %v476_v63 = vmul.f32 %v471_v62, %v2489_v40 }
 0x131   : > { %2037 = vmatmul.msk.f32.gmra.mxu0 %vm358_vm2, %v485_v46 }
 0x132   : > { %v482_v0 = vmul.f32 %v477_v19, %v476_v63 }
 0x134   : > { %v488_v1 = vadd.f32 %v483_v24, %v482_v0  ;;  %v2633_v0 = vld [vmem:[%s3169_s1 + $0x8] sm:$0xff] }
 0x139   : > { %2038 = vmatmul.msk.f32.gmra.mxu0 %vm358_vm2, %v486_v39 }
 0x141   : > { %2039 = vmatmul.msk.f32.gmra.mxu0 %vm358_vm2, %v487_v26 }
 0x149   : > { %2040 = vmatmul.msk.f32.gmra.mxu0 %vm358_vm2, %v488_v1 }
 0x1a6   : > { %v522_v2 = vpop.f32.mrf.mxu0 }
 0x1a7   : > { %v523_v10 = vadd.f32 %v522_v2, %v489_v4 }
 0x1ae   : > { %v525_v3 = vpop.f32.mrf.mxu0 }
 0x1af   : > { %v526_v8 = vadd.f32 %v525_v3, %v489_v4 }
 0x1b1   : > { %v2564_v12 = vpack.i.bf16 %v523_v10, %v526_v8 }
 0x1b6   : > { %v528_v38 = vpop.f32.mrf.mxu0 }
 0x1b7   : > { %v2541_v5 = vadd.f32 %v528_v38, %v489_v4  ;;  %v2640_v38 = vld [vmem:[%s3169_s1 + $0x10] sm:$0xff] }
 0x1b9   : > { %551 = vrot.lane.b32.xlu0 %v2541_v5, %s2360_s9 }
 0x1be   : > { %v531_v6 = vpop.f32.mrf.mxu0 }
 0x1bf   : > { %v2544_v7 = vadd.f32 %v531_v6, %v489_v4 }
 0x1c1   : > { %553 = vrot.lane.b32.xlu2 %v2544_v7, %s2360_s9  ;;  %757 = vrot.lane.b32.xlu0 %v2544_v7, %s2361_s10  ;;  %v2558_v11 = vpack.i.bf16 %v2541_v5, %v2544_v7 }
 0x1c6   : > { %v534_v40 = vpop.f32.mrf.mxu0 }
 0x1c7   : > { %v2549_v9 = vadd.f32 %v534_v40, %v489_v4 }
 0x1c9   : > { %753 = vrot.lane.b32.xlu0 %v526_v8, %s2361_s10  ;;  %549 = vrot.lane.b32.xlu2 %v526_v8, %s2360_s9 }
 0x1ca   : > { %555 = vrot.lane.b32.xlu1 %v2549_v9, %s2360_s9 }
 0x1d1   : > { %751 = vrot.lane.b32.xlu0 %v523_v10, %s2361_s10  ;;  %755 = vrot.lane.b32.xlu2 %v2541_v5, %s2361_s10 }
 0x1d2   : > { %547 = vrot.lane.b32.xlu1 %v523_v10, %s2360_s9  ;;  %s2368_s9 = smov 56  }
 0x1d9   : > { %957 = vrot.lane.b32.xlu0 %v2544_v7, %s2362_s11  ;;  %745 = vrot.lane.b32.xlu2 %v2541_v5, %s2363_s12 }
 0x1da   : > { %2171 = vrot.lane.b32.xlu1 %v2558_v11, %s2364_s13 }
 0x1e1   : > { %955 = vrot.lane.b32.xlu0 %v2541_v5, %s2362_s11  ;;  %1157 = vrot.lane.b32.xlu2 %v2544_v7, %s2365_s14 }
 0x1e2   : > { %2176 = vrot.lane.b32.xlu1 %v2564_v12, %s2364_s13 }
 0x1e9   : > { %951 = vrot.lane.b32.xlu0 %v523_v10, %s2362_s11  ;;  %1155 = vrot.lane.b32.xlu2 %v2541_v5, %s2365_s14 }
 0x1ea   : > { %741 = vrot.lane.b32.xlu1 %v523_v10, %s2363_s12 }
 0x1f1   : > { %1141 = vrot.lane.b32.xlu0 %v523_v10, %s2366_s16  ;;  %953 = vrot.lane.b32.xlu2 %v526_v8, %s2362_s11 }
 0x1f2   : > { %743 = vrot.lane.b32.xlu1 %v526_v8, %s2363_s12 }
 0x1f9   : > { %1151 = vrot.lane.b32.xlu2 %v523_v10, %s2365_s14  ;;  %685 = vrot.lane.b32.xlu0 %v2549_v9, %s2364_s13 }
 0x1fa   : > { %747 = vrot.lane.b32.xlu1 %v2544_v7, %s2363_s12 }
 0x201   : > { %943 = vrot.lane.b32.xlu2 %v526_v8, %s2367_s17  ;;  %959 = vrot.lane.b32.xlu0 %v2549_v9, %s2362_s11  ;;  %s2370_s11 = smov 40  }
 0x202   : > { %1153 = vrot.lane.b32.xlu1 %v526_v8, %s2365_s14 }
 0x209   : > { %1159 = vrot.lane.b32.xlu2 %v2549_v9, %s2365_s14  ;;  %749 = vrot.lane.b32.xlu0 %v2549_v9, %s2363_s12  ;;  %s2371_s12 = smov 32   ;;  %s2372_s14 = smov 8  }
 0x20a   : > { %941 = vrot.lane.b32.xlu1 %v523_v10, %s2367_s17 }
 0x212   : > { %1143 = vrot.lane.b32.xlu1 %v526_v8, %s2366_s16 }
 0x21a   : > { %759 = vrot.lane.b32.xlu1 %v2549_v9, %s2361_s10  ;;  %s2369_s10 = smov 48  }
 0x21b   : > { %v554_v17 = vpop.permute.xlu2 %553 }
 0x223   : > { %v550_v20 = vpop.permute.xlu2 %549 }
 0x22b   : > { %v552_v13 = vpop.permute.xlu0 %551  ;;  %v756_v28 = vpop.permute.xlu2 %755 }
 0x233   : > { %v758_v14 = vpop.permute.xlu0 %757  ;;  %v746_v31 = vpop.permute.xlu2 %745 }
 0x23b   : > { %v754_v15 = vpop.permute.xlu0 %753  ;;  %v1158_v34 = vpop.permute.xlu2 %1157 }
 0x23c   : > { %v556_v16 = vpop.permute.xlu1 %555 }
 0x23d   : > { %2041 = vmatpush.xpose.msk.msra.mxu1 %vm557_vm6, %v556_v16 }
 0x241   : > { %2042 = vmatpush.xpose.msk.msra.mxu1 %vm557_vm6, %v554_v17 }
 0x243   : > { %v752_v18 = vpop.permute.xlu0 %751  ;;  %v1156_v45 = vpop.permute.xlu2 %1155 }
 0x244   : > { %v548_v19 = vpop.permute.xlu1 %547 }
 0x245   : > { %2043 = vmatpush.xpose.msk.msra.mxu1 %vm557_vm6, %v552_v13  ;;  %v2647_v13 = vld [vmem:[%s3169_s1 + $0x18] sm:$0xff] }
 0x249   : > { %2044 = vmatpush.xpose.msk.msra.mxu1 %vm557_vm6, %v550_v20 }
 0x24b   : > { %v958_v22 = vpop.permute.xlu0 %957  ;;  %v954_v51 = vpop.permute.xlu2 %953 }
 0x24c   : > { %v2172_v23 = vpop.permute.xlu1 %2171 }
 0x24d   : > { %2045 = vmatpush.xpose.msk.msra.mxu1 %vm557_vm6, %v548_v19  ;;  %v2173_v37 = vunpack.i.l.bf16 %v2172_v23  ;;  %v2174_v27 = vunpack.i.h.bf16 %v2172_v23  ;;  %v2660_v19 = vld [vmem:[%s3169_s1 + $0x20] sm:$0x3] }
 0x250   : > { %2046 = vmatmul.msk.f32.vlgmr.msra.gmra.mxu1 %vm557_vm6, %v523_v10 }
 0x253   : > { %v956_v24 = vpop.permute.xlu0 %955  ;;  %v1152_v53 = vpop.permute.xlu2 %1151 }
 0x254   : > { %v2177_v25 = vpop.permute.xlu1 %2176 }
 0x255   : > { %v2178_v41 = vunpack.i.l.bf16 %v2177_v25  ;;  %v2179_v42 = vunpack.i.h.bf16 %v2177_v25 }
 0x258   : > { %2047 = vmatmul.msk.f32.gmra.mxu1 %vm557_vm6, %v526_v8 }
 0x25b   : > { %v952_v29 = vpop.permute.xlu0 %951  ;;  %v2606_v55 = vpop.permute.xlu2 %943 }
 0x25c   : > { %v742_v30 = vpop.permute.xlu1 %741 }
 0x260   : > { %2048 = vmatmul.msk.f32.gmra.mxu1 %vm557_vm6, %v2541_v5 }
 0x263   : > { %v1142_v32 = vpop.permute.xlu0 %1141  ;;  %v1160_v56 = vpop.permute.xlu2 %1159 }
 0x264   : > { %v744_v33 = vpop.permute.xlu1 %743 }
 0x268   : > { %2049 = vmatmul.msk.f32.gmra.mxu1 %vm557_vm6, %v2544_v7 }
 0x26b   : > { %v686_v35 = vpop.permute.xlu0 %685 }
 0x26c   : > { %v748_v36 = vpop.permute.xlu1 %747  ;;  %2051 = vmatpush.msk.msra.mxu2 %vm706_vm7, %v686_v35 }
 0x26e   : > { %721 = vmatpush.msra.mxu2 %v2173_v37 }
 0x270   : > { %2050 = vmatmul.msk.f32.gmra.mxu1 %vm557_vm6, %v2549_v9  ;;  %722 = vmatpush.msra.mxu2 %v2174_v27 }
 0x272   : > { %723 = vmatpush.msra.mxu2 %v2178_v41 }
 0x273   : > { %v960_v43 = vpop.permute.xlu0 %959 }
 0x274   : > { %v1154_v44 = vpop.permute.xlu1 %1153  ;;  %724 = vmatpush.msra.mxu2 %v2179_v42 }
 0x276   : > { %2073 = vmatpush.xpose.msk.msrb.mxu2 %vm557_vm6, %v960_v43 }
 0x27a   : > { %2074 = vmatpush.xpose.msk.msrb.mxu2 %vm557_vm6, %v958_v22 }
 0x27b   : > { %v750_v39 = vpop.permute.xlu0 %749 }
 0x27c   : > { %v2599_v46 = vpop.permute.xlu1 %941 }
 0x27e   : > { %2075 = vmatpush.xpose.msk.msrb.mxu2 %vm557_vm6, %v956_v24 }
 0x282   : > { %2076 = vmatpush.xpose.msk.msrb.mxu2 %vm557_vm6, %v954_v51 }
 0x284   : > { %v1144_v52 = vpop.permute.xlu1 %1143 }
 0x286   : > { %2077 = vmatpush.xpose.msk.msrb.mxu2 %vm557_vm6, %v952_v29 }
 0x28c   : > { %v760_v54 = vpop.permute.xlu1 %759 }
 0x28d   : > { %2057 = vmatpush.xpose.msk.msra.mxu3 %vm557_vm6, %v760_v54 }
 0x291   : > { %2058 = vmatpush.xpose.msk.msra.mxu3 %vm557_vm6, %v758_v14 }
 0x295   : > { %2059 = vmatpush.xpose.msk.msra.mxu3 %vm557_vm6, %v756_v28 }
 0x299   : > { %2060 = vmatpush.xpose.msk.msra.mxu3 %vm557_vm6, %v754_v15 }
 0x29d   : > { %2061 = vmatpush.xpose.msk.msra.mxu3 %vm557_vm6, %v752_v18 }
 0x2a0   : > { %2062 = vmatmul.msk.f32.vlgmr.msra.gmra.mxu3 %vm557_vm6, %v742_v30 }
 0x2a1   : > { %2089 = vmatpush.xpose.msk.msrb.mxu3 %vm557_vm6, %v1160_v56 }
 0x2a5   : > { %2090 = vmatpush.xpose.msk.msrb.mxu3 %vm557_vm6, %v1158_v34 }
 0x2a8   : > { %2063 = vmatmul.msk.f32.gmra.mxu3 %vm557_vm6, %v744_v33 }
 0x2a9   : > { %2091 = vmatpush.xpose.msk.msrb.mxu3 %vm557_vm6, %v1156_v45 }
 0x2ad   : > { %2092 = vmatpush.xpose.msk.msrb.mxu3 %vm557_vm6, %v1154_v44 }
 0x2b0   : > { %2064 = vmatmul.msk.f32.gmra.mxu3 %vm557_vm6, %v746_v31 }
 0x2b1   : > { %2093 = vmatpush.xpose.msk.msrb.mxu3 %vm557_vm6, %v1152_v53 }
 0x2b8   : > { %2065 = vmatmul.msk.f32.gmra.mxu3 %vm557_vm6, %v748_v36 }
 0x2c0   : > { %2066 = vmatmul.msk.f32.gmra.mxu3 %vm557_vm6, %v750_v39 }
 0x2c8   : > { %2094 = vmatmul.msk.f32.vlgmr.msrb.gmra.mxu3 %vm557_vm6, %v1142_v32 }
 0x2cd   : > { %v595_v59 = vpop.f32.mrf.mxu1 }
 0x2ce   : > { %v610_v61 = vmul.f32 0.35355338, %v595_v59 }
 0x2d0   : > { %2095 = vmatmul.msk.f32.gmra.mxu3 %vm557_vm6, %v1144_v52  ;;  %v615_v62 = vadd.f32 %v610_v61, %v2625_v60 }
 0x2d2   : > { %v621_v26 = vsel %vm620_vm8, %v615_v62, -inf }
 0x2d3   : > { %622 = vmax.xlane.f32.xlu0 %v621_v26 }
 0x2d5   : > { %v598_v63 = vpop.f32.mrf.mxu1 }
 0x2d6   : > { %v611_v1 = vmul.f32 0.35355338, %v598_v63 }
 0x2d8   : > { %v616_v2 = vadd.f32 %v611_v1, %v2633_v0 }
 0x2da   : > { %v624_v3 = vsel %vm620_vm8, %v616_v2, -inf }
 0x2db   : > { %625 = vmax.xlane.f32.xlu2 %v624_v3 }
 0x2dd   : > { %v601_v4 = vpop.f32.mrf.mxu1 }
 0x2de   : > { %v612_v6 = vmul.f32 0.35355338, %v601_v4 }
 0x2e0   : > { %v617_v40 = vadd.f32 %v612_v6, %v2640_v38 }
 0x2e2   : > { %v627_v8 = vsel %vm620_vm8, %v617_v40, -inf }
 0x2e3   : > { %628 = vmax.xlane.f32.xlu1 %v627_v8 }
 0x2e5   : > { %v604_v10 = vpop.f32.mrf.mxu1 }
 0x2e6   : > { %v613_v14 = vmul.f32 0.35355338, %v604_v10 }
 0x2e8   : > { %v618_v15 = vadd.f32 %v613_v14, %v2647_v13 }
 0x2ea   : > { %v630_v16 = vsel %vm620_vm8, %v618_v15, -inf }
 0x2eb   : > { %631 = vmax.xlane.f32.xlu0 %v630_v16 }
 0x2ed   : > { %v607_v17 = vpop.f32.mrf.mxu1 }
 0x2ee   : > { %v614_v18 = vmul.f32 0.35355338, %v607_v17 }
 0x2f0   : > { %v619_v20 = vadd.f32 %v614_v18, %v2660_v19 }
 0x2f2   : > { %v634_v22 = vsel %vm633_vm9, %v619_v20, -inf }
 0x2f3   : > { %1145 = vrot.lane.b32.xlu2 %v2541_v5, %s2366_s16 }
 0x2fc   : > { %947 = vrot.lane.b32.xlu1 %v2544_v7, %s2367_s17 }
 0x2ff   : > { %945 = vrot.lane.b32.xlu0 %v2541_v5, %s2367_s17 }
 0x31c   : > { %635 = vmax.xlane.f32.xlu2 %v634_v22 }
 0x323   : > { %v798_v52 = vpop.f32.mrf.mxu3 }
 0x324   : > { %v813_v63 = vmul.f32 0.35355338, %v798_v52 }
 0x326   : > { %v818_v6 = vadd.f32 %v813_v63, %v2625_v60 }
 0x328   : > { %v823_v10 = vsel %vm620_vm8, %v818_v6, -inf }
 0x32b   : > { %v801_v53 = vpop.f32.mrf.mxu3 }
 0x333   : > { %v804_v54 = vpop.f32.mrf.mxu3 }
 0x33b   : > { %v807_v56 = vpop.f32.mrf.mxu3 }
 0x33c   : > { %v816_v8 = vmul.f32 0.35355338, %v807_v56 }
 0x343   : > { %v810_v1 = vpop.f32.mrf.mxu3 }
 0x344   : > { %v817_v3 = vmul.f32 0.35355338, %v810_v1 }
 0x346   : > { %v623_v23 = vpop.xlane.xlu0 %622 }
 0x347   : > { %v637_v24 = vsub.f32 %v615_v62, %v623_v23  ;;  %v814_v62 = vmul.f32 0.35355338, %v801_v53 }
 0x349   : > { %v642_v25 = vmul.f32 1.442695, %v637_v24  ;;  %v2686_v26 = vadd.f32 %v814_v62, %v2633_v0 }
 0x34b   : > { %2232 = vpow2.f32 %v642_v25  ;;  %v826_v4 = vsel %vm620_vm8, %v2686_v26, -inf  ;;  %v1198_v16 = vpop.f32.mrf.mxu3 }
 0x34c   : > { %v1213_v17 = vmul.f32 0.35355338, %v1198_v16 }
 0x34e   : > { %v626_v28 = vpop.xlane.xlu2 %625 }
 0x34f   : > { %v638_v29 = vsub.f32 %v616_v2, %v626_v28 }
 0x351   : > { %v2664_v5 = vpop.eup %2232  ;;  %v644_v30 = vmul.f32 1.442695, %v638_v29 }
 0x352   : > { %v652_v31 = vsel %vm620_vm8, %v2664_v5, 0.0 }
 0x353   : > { %2234 = vpow2.f32 %v644_v30  ;;  %653 = vadd.xlane.f32.xlu2 %v652_v31  ;;  %v815_v31 = vmul.f32 0.35355338, %v804_v54 }
 0x356   : > { %v1146_v32 = vpop.permute.xlu2 %1145  ;;  %v629_v33 = vpop.xlane.xlu1 %628 }
 0x357   : > { %v639_v34 = vsub.f32 %v617_v40, %v629_v33  ;;  %2096 = vmatmul.msk.f32.gmra.mxu3 %vm557_vm6, %v1146_v32  ;;  %v2696_v40 = vadd.f32 %v817_v3, %v2660_v19 }
 0x359   : > { %v2669_v35 = vpop.eup %2234  ;;  %v646_v36 = vmul.f32 1.442695, %v639_v34  ;;  %v835_v14 = vsel %vm633_vm9, %v2696_v40, -inf }
 0x35a   : > { %v655_v37 = vsel %vm620_vm8, %v2669_v35, 0.0 }
 0x35b   : > { %2236 = vpow2.f32 %v646_v36  ;;  %656 = vadd.xlane.f32.xlu2 %v655_v37  ;;  %v2724_v36 = vadd.f32 %v815_v31, %v2640_v38  ;;  %v1201_v37 = vpop.f32.mrf.mxu3 }
 0x35e   : > { %v632_v27 = vpop.xlane.xlu0 %631 }
 0x35f   : > { %v640_v41 = vsub.f32 %v618_v15, %v632_v27  ;;  %v2702_v15 = vadd.f32 %v816_v8, %v2647_v13 }
 0x361   : > { %v2673_v42 = vpop.eup %2236  ;;  %v648_v43 = vmul.f32 1.442695, %v640_v41  ;;  %v832_v18 = vsel %vm620_vm8, %v2702_v15, -inf  ;;  %v1214_v41 = vmul.f32 0.35355338, %v1201_v37 }
 0x362   : > { %v658_v44 = vsel %vm620_vm8, %v2673_v42, 0.0 }
 0x363   : > { %2238 = vpow2.f32 %v648_v43  ;;  %659 = vadd.xlane.f32.xlu0 %v658_v44  ;;  %v829_v43 = vsel %vm620_vm8, %v2724_v36, -inf }
 0x369   : > { %v2677_v45 = vpop.eup %2238 }
 0x36a   : > { %v661_v51 = vsel %vm620_vm8, %v2677_v45, 0.0 }
 0x36b   : > { %662 = vadd.xlane.f32.xlu1 %v661_v51 }
 0x36e   : > { %v2719_v32 = vpop.permute.xlu1 %947 }
 0x371   : > { %v2715_v25 = vpop.permute.xlu0 %945 }
 0x373   : > { %949 = vrot.lane.b32.xlu2 %v2549_v9, %s2367_s17  ;;  %s2374_s17 = smov 16  }
 0x377   : > { %1147 = vrot.lane.b32.xlu0 %v2544_v7, %s2366_s16 }
 0x38f   : > { %v636_v39 = vpop.xlane.xlu2 %635 }
 0x390   : > { %v641_v59 = vsub.f32 %v619_v20, %v636_v39  ;;  %v2707_v20 = vadd.f32 %v1213_v17, %v2625_v60 }
 0x392   : > { %v650_v61 = vmul.f32 1.442695, %v641_v59  ;;  %v1223_v22 = vsel %vm620_vm8, %v2707_v20, -inf }
 0x394   : > { %2240 = vpow2.f32 %v650_v61 }
 0x39a   : > { %v2688_v2 = vpop.eup %2240 }
 0x39b   : > { %v664_v7 = vsel %vm633_vm9, %v2688_v2, 0.0 }
 0x39c   : > { %827 = vmax.xlane.f32.xlu2 %v826_v4  ;;  %665 = vadd.xlane.f32.xlu1 %v664_v7 }
 0x3a1   : > { %824 = vmax.xlane.f32.xlu0 %v823_v10 }
 0x3a4   : > { %836 = vmax.xlane.f32.xlu2 %v835_v14 }
 0x3a9   : > { %833 = vmax.xlane.f32.xlu0 %v832_v18 }
 0x3b1   : > { %1224 = vmax.xlane.f32.xlu0 %v1223_v22 }
 0x3b5   : > { %1149 = vrot.lane.b32.xlu1 %v2549_v9, %s2366_s16  ;;  %s2373_s16 = smov 24  }
 0x3bc   : > { %886 = vrot.lane.b32.xlu2 %v2549_v9, %s2368_s9 }
 0x3c6   : > { %v654_v23 = vpop.xlane.xlu2 %653 }
 0x3c7   : > { %2242 = vrcp.f32 %v654_v23 }
 0x3cd   : > { %v2243_v24 = vpop.eup %2242 }
 0x3ce   : > { %v657_v28 = vpop.xlane.xlu2 %656  ;;  %v672_v29 = vmul.f32 %v2243_v24, %v2664_v5 }
 0x3cf   : > { %2244 = vrcp.f32 %v657_v28 }
 0x3d0   : > { %2052 = vmatmul.msk.f32.vlgmr.msra.gmra.mxu2 %vm620_vm8, %v672_v29 }
 0x3d5   : > { %v2245_v30 = vpop.eup %2244 }
 0x3d6   : > { %v660_v33 = vpop.xlane.xlu0 %659  ;;  %v673_v34 = vmul.f32 %v2245_v30, %v2669_v35  ;;  %v2731_v35 = vadd.f32 %v1214_v41, %v2633_v0 }
 0x3d7   : > { %2246 = vrcp.f32 %v660_v33 }
 0x3d8   : > { %2053 = vmatmul.msk.f32.gmra.mxu2 %vm620_vm8, %v673_v34  ;;  %v1226_v52 = vsel %vm620_vm8, %v2731_v35, -inf }
 0x3da   : > { %v1204_v10 = vpop.f32.mrf.mxu3 }
 0x3db   : > { %v1215_v18 = vmul.f32 0.35355338, %v1204_v10 }
 0x3dd   : > { %v2247_v27 = vpop.eup %2246  ;;  %v2758_v22 = vadd.f32 %v1215_v18, %v2640_v38 }
 0x3de   : > { %v663_v5 = vpop.xlane.xlu1 %662  ;;  %v674_v44 = vmul.f32 %v2247_v27, %v2673_v42  ;;  %v950_v42 = vpop.permute.xlu2 %949 }
 0x3df   : > { %2248 = vrcp.f32 %v663_v5  ;;  %830 = vmax.xlane.f32.xlu1 %v829_v43  ;;  %v1229_v24 = vsel %vm620_vm8, %v2758_v22, -inf }
 0x3e0   : > { %2054 = vmatmul.msk.f32.gmra.mxu2 %vm620_vm8, %v674_v44 }
 0x3e5   : > { %v2249_v51 = vpop.eup %2248 }
 0x3e6   : > { %v675_v53 = vmul.f32 %v2249_v51, %v2677_v45 }
 0x3e7   : > { %1227 = vmax.xlane.f32.xlu1 %v1226_v52 }
 0x3e8   : > { %2055 = vmatmul.msk.f32.gmra.mxu2 %vm620_vm8, %v675_v53 }
 0x3e9   : > { %v1148_v54 = vpop.permute.xlu0 %1147 }
 0x3ea   : > { %2097 = vmatmul.msk.f32.gmra.mxu3 %vm557_vm6, %v1148_v54 }
 0x400   : > { %2181 = vrot.lane.b32.xlu1 %v2558_v11, %s2368_s9 }
 0x40f   : > { %v828_v56 = vpop.xlane.xlu2 %827  ;;  %v666_v39 = vpop.xlane.xlu1 %665 }
 0x410   : > { %v839_v59 = vsub.f32 %v2686_v26, %v828_v56  ;;  %2250 = vrcp.f32 %v666_v39 }
 0x412   : > { %v845_v61 = vmul.f32 1.442695, %v839_v59 }
 0x414   : > { %2252 = vpow2.f32 %v845_v61  ;;  %v825_v62 = vpop.xlane.xlu0 %824 }
 0x415   : > { %v838_v63 = vsub.f32 %v818_v6, %v825_v62 }
 0x416   : > { %v2251_v45 = vpop.eup %2250 }
 0x417   : > { %v843_v1 = vmul.f32 1.442695, %v838_v63  ;;  %v2741_v3 = vpop.xlane.xlu2 %836  ;;  %v676_v4 = vmul.f32 %v2251_v45, %v2688_v2 }
 0x419   : > { %2254 = vpow2.f32 %v843_v1  ;;  %2056 = vmatmul.msk.f32.gmra.mxu2 %vm620_vm8, %v676_v4 }
 0x41a   : > { %v2745_v7 = vpop.eup %2252 }
 0x41b   : > { %v856_v8 = vsel %vm620_vm8, %v2745_v7, 0.0 }
 0x41c   : > { %857 = vadd.xlane.f32.xlu2 %v856_v8  ;;  %v834_v26 = vpop.xlane.xlu0 %833 }
 0x41d   : > { %v841_v14 = vsub.f32 %v2702_v15, %v834_v26 }
 0x41f   : > { %v2750_v6 = vpop.eup %2254  ;;  %v849_v16 = vmul.f32 1.442695, %v841_v14  ;;  %v887_v17 = vpop.permute.xlu2 %886 }
 0x420   : > { %2067 = vmatpush.msk.msrb.mxu0 %vm706_vm7, %v887_v17  ;;  %v853_v2 = vsel %vm620_vm8, %v2750_v6, 0.0 }
 0x421   : > { %2256 = vpow2.f32 %v849_v16  ;;  %2078 = vmatmul.msk.f32.vlgmr.msrb.gmra.mxu2 %vm557_vm6, %v2599_v46  ;;  %854 = vadd.xlane.f32.xlu0 %v853_v2 }
 0x424   : > { %v2800_v52 = vpop.xlane.xlu0 %1224 }
 0x427   : > { %v2760_v23 = vpop.eup %2256  ;;  %v1150_v15 = vpop.permute.xlu1 %1149 }
 0x428   : > { %2098 = vmatmul.msk.f32.gmra.mxu3 %vm557_vm6, %v1150_v15  ;;  %v862_v28 = vsel %vm620_vm8, %v2760_v23, 0.0 }
 0x429   : > { %2079 = vmatmul.msk.f32.gmra.mxu2 %vm557_vm6, %v2606_v55  ;;  %1230 = vmax.xlane.f32.xlu0 %v1229_v24 }
 0x42a   : > { %863 = vadd.xlane.f32.xlu1 %v862_v28 }
 0x431   : > { %2080 = vmatmul.msk.f32.gmra.mxu2 %vm557_vm6, %v2715_v25 }
 0x439   : > { %2081 = vmatmul.msk.f32.gmra.mxu2 %vm557_vm6, %v2719_v32 }
 0x43d   : > { %2186 = vrot.lane.b32.xlu0 %v2564_v12, %s2368_s9 }
 0x441   : > { %2082 = vmatmul.msk.f32.gmra.mxu2 %vm557_vm6, %v950_v42 }
 0x443   : > { %1086 = vrot.lane.b32.xlu1 %v2549_v9, %s2369_s10 }
 0x452   : > { %v831_v46 = vpop.xlane.xlu1 %830 }
 0x453   : > { %v840_v55 = vsub.f32 %v2724_v36, %v831_v46  ;;  %v2790_v5 = vpop.f32.mrf.mxu2 }
 0x455   : > { %v847_v29 = vmul.f32 1.442695, %v840_v55 }
 0x457   : > { %2258 = vpow2.f32 %v847_v29 }
 0x45a   : > { %v2783_v31 = vpop.xlane.xlu1 %1227 }
 0x45b   : > { %v2792_v43 = vpop.f32.mrf.mxu2 }
 0x45d   : > { %v2779_v30 = vpop.eup %2258 }
 0x45e   : > { %v859_v25 = vsel %vm620_vm8, %v2779_v30, 0.0 }
 0x45f   : > { %860 = vadd.xlane.f32.xlu2 %v859_v25 }
 0x463   : > { %v2796_v44 = vpop.f32.mrf.mxu2 }
 0x46b   : > { %v2798_v51 = vpop.f32.mrf.mxu2 }
 0x46d   : > { %v1207_v32 = vpop.f32.mrf.mxu3 }
 0x46e   : > { %v1216_v33 = vmul.f32 0.35355338, %v1207_v32 }
 0x470   : > { %v2786_v34 = vadd.f32 %v1216_v33, %v2647_v13 }
 0x472   : > { %v2182_v37 = vpop.permute.xlu1 %2181  ;;  %v1232_v27 = vsel %vm620_vm8, %v2786_v34, -inf }
 0x473   : > { %1233 = vmax.xlane.f32.xlu0 %v1232_v27  ;;  %v2183_v36 = vunpack.i.l.bf16 %v2182_v37  ;;  %v2184_v41 = vunpack.i.h.bf16 %v2182_v37 }
 0x475   : > { %921 = vmatpush.msrb.mxu0 %v2183_v36  ;;  %v842_v36 = vsub.f32 %v2696_v40, %v2741_v3 }
 0x477   : > { %922 = vmatpush.msrb.mxu0 %v2184_v41 }
 0x487   : > { %1286 = vrot.lane.b32.xlu0 %v2549_v9, %s2370_s11 }
 0x48f   : > { %v858_v4 = vpop.xlane.xlu2 %857 }
 0x494   : > { %v855_v54 = vpop.xlane.xlu0 %854 }
 0x495   : > { %2260 = vrcp.f32 %v855_v54  ;;  %v851_v54 = vmul.f32 1.442695, %v842_v36 }
 0x496   : > { %2262 = vrcp.f32 %v858_v4 }
 0x49b   : > { %v2261_v26 = vpop.eup %2260 }
 0x49c   : > { %v2802_v53 = vpop.f32.mrf.mxu2  ;;  %v2804_v39 = vpop.xlane.xlu0 %1230  ;;  %v873_v16 = vmul.f32 %v2261_v26, %v2750_v6 }
 0x49d   : > { %v864_v45 = vpop.xlane.xlu1 %863  ;;  %v2263_v24 = vpop.eup %2262  ;;  %v1240_v47 = vsub.f32 %v2758_v22, %v2804_v39 }
 0x49e   : > { %v874_v46 = vmul.f32 %v2263_v24, %v2745_v7 }
 0x4a4   : > { %v998_v42 = vpop.f32.mrf.mxu2 }
 0x4a5   : > { %v1013_v56 = vmul.f32 0.35355338, %v998_v42 }
 0x4a7   : > { %v2807_v59 = vadd.f32 %v1013_v56, %v2625_v60 }
 0x4a9   : > { %v1023_v61 = vsel %vm620_vm8, %v2807_v59, -inf }
 0x4aa   : > { %1024 = vmax.xlane.f32.xlu1 %v1023_v61 }
 0x4ab   : > { %v1210_v9 = vpop.f32.mrf.mxu3 }
 0x4ac   : > { %v1217_v62 = vmul.f32 0.35355338, %v1210_v9  ;;  %v1001_v63 = vpop.f32.mrf.mxu2 }
 0x4ae   : > { %v2812_v1 = vadd.f32 %v1217_v62, %v2660_v19 }
 0x4af   : > { %v2187_v8 = vpop.permute.xlu0 %2186 }
 0x4b0   : > { %v1235_v10 = vsel %vm633_vm9, %v2812_v1, -inf  ;;  %v2188_v60 = vunpack.i.l.bf16 %v2187_v8  ;;  %v2189_v14 = vunpack.i.h.bf16 %v2187_v8 }
 0x4b1   : > { %1236 = vmax.xlane.f32.xlu2 %v1235_v10 }
 0x4b2   : > { %923 = vmatpush.msrb.mxu0 %v2188_v60 }
 0x4b4   : > { %924 = vmatpush.msrb.mxu0 %v2189_v14  ;;  %v1004_v17 = vpop.f32.mrf.mxu2 }
 0x4b5   : > { %v1015_v18 = vmul.f32 0.35355338, %v1004_v17  ;;  %v1087_v2 = vpop.permute.xlu1 %1086  ;;  %2068 = vmatmul.msk.f32.vlgmr.msrb.gmra.mxu0 %vm620_vm8, %v873_v16 }
 0x4b6   : > { %2083 = vmatpush.msk.msrb.mxu1 %vm706_vm7, %v1087_v2 }
 0x4b7   : > { %v2820_v15 = vadd.f32 %v1015_v18, %v2640_v38 }
 0x4b9   : > { %v1029_v28 = vsel %vm620_vm8, %v2820_v15, -inf }
 0x4ba   : > { %1030 = vmax.xlane.f32.xlu0 %v1029_v28 }
 0x4bc   : > { %v1007_v55 = vpop.f32.mrf.mxu2 }
 0x4bd   : > { %v1016_v6 = vmul.f32 0.35355338, %v1007_v55  ;;  %2069 = vmatmul.msk.f32.gmra.mxu0 %vm620_vm8, %v874_v46 }
 0x4bf   : > { %v2827_v29 = vadd.f32 %v1016_v6, %v2647_v13 }
 0x4c1   : > { %v1032_v25 = vsel %vm620_vm8, %v2827_v29, -inf }
 0x4c2   : > { %1033 = vmax.xlane.f32.xlu1 %v1032_v25 }
 0x4c4   : > { %v1010_v38 = vpop.f32.mrf.mxu2 }
 0x4c5   : > { %v1017_v32 = vmul.f32 0.35355338, %v1010_v38 }
 0x4c7   : > { %v2832_v33 = vadd.f32 %v1017_v32, %v2660_v19 }
 0x4c9   : > { %2191 = vrot.lane.b32.xlu2 %v2558_v11, %s2369_s10  ;;  %v1035_v7 = vsel %vm633_vm9, %v2832_v33, -inf }
 0x4ca   : > { %1036 = vmax.xlane.f32.xlu1 %v1035_v7 }
 0x4ce   : > { %2196 = vrot.lane.b32.xlu0 %v2558_v11, %s2370_s11  ;;  %v1238_v11 = vsub.f32 %v2707_v20, %v2800_v52  ;;  %v1239_v20 = vsub.f32 %v2731_v35, %v2783_v31 }
 0x4d0   : > { %v1243_v42 = vmul.f32 1.442695, %v1238_v11  ;;  %v1245_v62 = vmul.f32 1.442695, %v1239_v20 }
 0x4d2   : > { %v861_v13 = vpop.xlane.xlu2 %860 }
 0x4d3   : > { %2264 = vrcp.f32 %v861_v13 }
 0x4d4   : > { %2266 = vrcp.f32 %v864_v45 }
 0x4d5   : > { %2268 = vpow2.f32 %v851_v54 }
 0x4d6   : > { %2270 = vpow2.f32 %v1243_v42 }
 0x4d7   : > { %2272 = vpow2.f32 %v1245_v62 }
 0x4d9   : > { %v2265_v37 = vpop.eup %2264 }
 0x4da   : > { %v875_v27 = vmul.f32 %v2265_v37, %v2779_v30  ;;  %v2267_v19 = vpop.eup %2266 }
 0x4db   : > { %v876_v41 = vmul.f32 %v2267_v19, %v2760_v23  ;;  %v2850_v30 = vpop.eup %2268  ;;  %v1014_v23 = vmul.f32 0.35355338, %v1001_v63 }
 0x4dc   : > { %2070 = vmatmul.msk.f32.gmra.mxu0 %vm620_vm8, %v875_v27  ;;  %v865_v40 = vsel %vm633_vm9, %v2850_v30, 0.0  ;;  %v2854_v3 = vpop.eup %2270 }
 0x4dd   : > { %v1253_v9 = vsel %vm620_vm8, %v2854_v3, 0.0  ;;  %v2862_v52 = vadd.f32 %v1014_v23, %v2633_v0  ;;  %v2866_v63 = vpop.eup %2272 }
 0x4de   : > { %v1256_v4 = vsel %vm620_vm8, %v2866_v63, 0.0 }
 0x4df   : > { %v1026_v45 = vsel %vm620_vm8, %v2862_v52, -inf }
 0x4e3   : > { %2201 = vrot.lane.b32.xlu1 %v2564_v12, %s2369_s10 }
 0x4e4   : > { %2071 = vmatmul.msk.f32.gmra.mxu0 %vm620_vm8, %v876_v41 }
 0x4e6   : > { %v1234_v56 = vpop.xlane.xlu0 %1233 }
 0x4e7   : > { %v1241_v46 = vsub.f32 %v2786_v34, %v1234_v56 }
 0x4e9   : > { %v1249_v6 = vmul.f32 1.442695, %v1241_v46 }
 0x4f2   : > { %866 = vadd.xlane.f32.xlu2 %v865_v40 }
 0x4f9   : > { %v1287_v61 = vpop.permute.xlu0 %1286 }
 0x4fa   : > { %1254 = vadd.xlane.f32.xlu2 %v1253_v9  ;;  %2099 = vmatpush.msk.msra.mxu0 %vm706_vm7, %v1287_v61 }
 0x502   : > { %1027 = vmax.xlane.f32.xlu2 %v1026_v45 }
 0x50d   : > { %1257 = vadd.xlane.f32.xlu1 %v1256_v4 }
 0x51a   : > { %2206 = vrot.lane.b32.xlu2 %v2564_v12, %s2370_s11 }
 0x51d   : > { %v1025_v8 = vpop.xlane.xlu1 %1024 }
 0x51e   : > { %v1038_v35 = vsub.f32 %v2807_v59, %v1025_v8 }
 0x520   : > { %v1043_v0 = vmul.f32 1.442695, %v1038_v35 }
 0x522   : > { %2274 = vpow2.f32 %v1043_v0 }
 0x524   : > { %v1237_v31 = vpop.xlane.xlu2 %1236 }
 0x525   : > { %v1242_v24 = vsub.f32 %v2812_v1, %v1237_v31 }
 0x527   : > { %v1251_v55 = vmul.f32 1.442695, %v1242_v24 }
 0x528   : > { %v2873_v26 = vpop.eup %2274 }
 0x529   : > { %v1053_v10 = vsel %vm620_vm8, %v2873_v26, 0.0 }
 0x52a   : > { %1054 = vadd.xlane.f32.xlu0 %v1053_v10 }
 0x52c   : > { %v2192_v60 = vpop.permute.xlu2 %2191 }
 0x52d   : > { %v2193_v14 = vunpack.i.l.bf16 %v2192_v60  ;;  %v1031_v16 = vpop.xlane.xlu0 %1030  ;;  %v2194_v17 = vunpack.i.h.bf16 %v2192_v60 }
 0x52e   : > { %v1040_v18 = vsub.f32 %v2820_v15, %v1031_v16 }
 0x52f   : > { %1121 = vmatpush.msrb.mxu1 %v2193_v14 }
 0x530   : > { %v1047_v12 = vmul.f32 1.442695, %v1040_v18 }
 0x531   : > { %1122 = vmatpush.msrb.mxu1 %v2194_v17 }
 0x532   : > { %2276 = vpow2.f32 %v1047_v12  ;;  %v926_v11 = vpop.f32.mrf.mxu0 }
 0x535   : > { %v1034_v2 = vpop.xlane.xlu1 %1033 }
 0x536   : > { %v1041_v59 = vsub.f32 %v2827_v29, %v1034_v2 }
 0x538   : > { %v1049_v28 = vmul.f32 1.442695, %v1041_v59  ;;  %v2881_v25 = vpop.eup %2276 }
 0x539   : > { %v1059_v1 = vsel %vm620_vm8, %v2881_v25, 0.0 }
 0x53a   : > { %2278 = vpow2.f32 %v1049_v28  ;;  %v929_v56 = vpop.f32.mrf.mxu0 }
 0x53b   : > { %2280 = vpow2.f32 %v1251_v55 }
 0x53c   : > { %2282 = vpow2.f32 %v1249_v6 }
 0x53d   : > { %v1037_v19 = vpop.xlane.xlu1 %1036 }
 0x53e   : > { %v1042_v4 = vsub.f32 %v2832_v33, %v1037_v19 }
 0x540   : > { %v2883_v38 = vpop.eup %2278  ;;  %v2197_v15 = vpop.permute.xlu0 %2196  ;;  %v1051_v39 = vmul.f32 1.442695, %v1042_v4 }
 0x541   : > { %v2198_v32 = vunpack.i.l.bf16 %v2197_v15  ;;  %v1062_v29 = vsel %vm620_vm8, %v2883_v38, 0.0  ;;  %v2199_v34 = vunpack.i.h.bf16 %v2197_v15  ;;  %v2889_v7 = vpop.eup %2280 }
 0x542   : > { %1063 = vadd.xlane.f32.xlu1 %v1062_v29  ;;  %v2891_v13 = vpop.eup %2282  ;;  %v1265_v37 = vsel %vm633_vm9, %v2889_v7, 0.0 }
 0x543   : > { %1060 = vadd.xlane.f32.xlu2 %v1059_v1  ;;  %1321 = vmatpush.msra.mxu0 %v2198_v32  ;;  %v1262_v27 = vsel %vm620_vm8, %v2891_v13, 0.0 }
 0x545   : > { %1322 = vmatpush.msra.mxu0 %v2199_v34 }
 0x54a   : > { %1266 = vadd.xlane.f32.xlu1 %v1265_v37 }
 0x54b   : > { %1263 = vadd.xlane.f32.xlu2 %v1262_v27 }
 0x555   : > { %v2202_v36 = vpop.permute.xlu1 %2201 }
 0x556   : > { %v2203_v41 = vunpack.i.l.bf16 %v2202_v36  ;;  %v2204_v54 = vunpack.i.h.bf16 %v2202_v36 }
 0x558   : > { %1123 = vmatpush.msrb.mxu1 %v2203_v41 }
 0x559   : > { %v932_v9 = vpop.f32.mrf.mxu0 }
 0x55a   : > { %1124 = vmatpush.msrb.mxu1 %v2204_v54 }
 0x563   : > { %2216 = vrot.lane.b32.xlu1 %v2215_v58, %s2371_s12  ;;  %2211 = vrot.lane.b32.xlu2 %v2210_v57, %s2371_s12  ;;  %v935_v57 = vpop.f32.mrf.mxu0  ;;  %v1247_v58 = vmul.f32 1.442695, %v1240_v47 }
 0x565   : > { %v867_v42 = vpop.xlane.xlu2 %866 }
 0x566   : > { %2284 = vrcp.f32 %v867_v42 }
 0x56b   : > { %1348 = vrot.lane.b32.xlu1 %v929_v56, %s2372_s14 }
 0x56c   : > { %v2285_v40 = vpop.eup %2284 }
 0x56d   : > { %v1255_v23 = vpop.xlane.xlu2 %1254  ;;  %v877_v61 = vmul.f32 %v2285_v40, %v2850_v30 }
 0x56e   : > { %2286 = vrcp.f32 %v1255_v23 }
 0x56f   : > { %2072 = vmatmul.msk.f32.gmra.mxu0 %vm620_vm8, %v877_v61 }
 0x573   : > { %1350 = vrot.lane.b32.xlu1 %v932_v9, %s2372_s14 }
 0x574   : > { %v2287_v30 = vpop.eup %2286 }
 0x575   : > { %v1028_v49 = vpop.xlane.xlu2 %1027 }
 0x576   : > { %v1039_v50 = vsub.f32 %v2862_v52, %v1028_v49  ;;  %v1273_v52 = vmul.f32 %v2287_v30, %v2854_v3 }
 0x578   : > { %v1045_v48 = vmul.f32 1.442695, %v1039_v50 }
 0x57a   : > { %2288 = vpow2.f32 %v1045_v48 }
 0x57b   : > { %1352 = vrot.lane.b32.xlu1 %v935_v57, %s2372_s14  ;;  %2290 = vpow2.f32 %v1247_v58 }
 0x57d   : > { %v2207_v20 = vpop.permute.xlu2 %2206 }
 0x57e   : > { %v2208_v62 = vunpack.i.l.bf16 %v2207_v20  ;;  %v2209_v8 = vunpack.i.h.bf16 %v2207_v20 }
 0x580   : > { %v2289_v45 = vpop.eup %2288  ;;  %v1258_v35 = vpop.xlane.xlu1 %1257  ;;  %1323 = vmatpush.msra.mxu0 %v2208_v62 }
 0x581   : > { %2292 = vrcp.f32 %v1258_v35  ;;  %v1056_v22 = vsel %vm620_vm8, %v2289_v45, 0.0  ;;  %v2291_v0 = vpop.eup %2290 }
 0x582   : > { %1057 = vadd.xlane.f32.xlu0 %v1056_v22  ;;  %1324 = vmatpush.msra.mxu0 %v2209_v8  ;;  %2294 = vpow2.f32 %v1051_v39  ;;  %v1259_v33 = vsel %vm620_vm8, %v2291_v0, 0.0 }
 0x583   : > { %2100 = vmatmul.msk.f32.vlgmr.msra.gmra.mxu0 %vm620_vm8, %v1273_v52 }
 0x587   : > { %v2293_v31 = vpop.eup %2292 }
 0x588   : > { %v1274_v10 = vmul.f32 %v2293_v31, %v2866_v63  ;;  %v2295_v60 = vpop.eup %2294 }
 0x589   : > { %v1065_v3 = vsel %vm633_vm9, %v2295_v60, 0.0 }
 0x58a   : > { %1260 = vadd.xlane.f32.xlu0 %v1259_v33 }
 0x58b   : > { %2101 = vmatmul.msk.f32.gmra.mxu0 %vm620_vm8, %v1274_v10 }
 0x592   : > { %1066 = vadd.xlane.f32.xlu0 %v1065_v3 }
 0x59d   : > { %v1055_v14 = vpop.xlane.xlu0 %1054 }
 0x59e   : > { %2296 = vrcp.f32 %v1055_v14 }
 0x5a4   : > { %v2297_v16 = vpop.eup %2296 }
 0x5a5   : > { %v1073_v17 = vmul.f32 %v2297_v16, %v2873_v26 }
 0x5a6   : > { %1346 = vrot.lane.b32.xlu0 %v926_v11, %s2372_s14 }
 0x5a7   : > { %2084 = vmatmul.msk.f32.vlgmr.msrb.gmra.mxu1 %vm620_vm8, %v1073_v17 }
 0x5b5   : > { %v1064_v12 = vpop.xlane.xlu1 %1063 }
 0x5b6   : > { %v1061_v63 = vpop.xlane.xlu2 %1060 }
 0x5bd   : > { %v1267_v55 = vpop.xlane.xlu1 %1266 }
 0x5be   : > { %v1264_v24 = vpop.xlane.xlu2 %1263 }
 0x5c6   : > { %v2212_v1 = vpop.permute.xlu2 %2211 }
 0x5c7   : > { %v2214_v34 = vunpack.i.h.bf16 %v2212_v1  ;;  %v2213_v37 = vunpack.i.l.bf16 %v2212_v1 }
 0x5c9   : > { %1461 = vmatpush.msra.mxu2 %v2213_v37 }
 0x5cb   : > { %1462 = vmatpush.msra.mxu2 %v2214_v34 }
 0x5d5   : > { %v2217_v27 = vpop.permute.xlu1 %2216 }
 0x5d6   : > { %v2218_v19 = vunpack.i.l.bf16 %v2217_v27  ;;  %v2219_v42 = vunpack.i.h.bf16 %v2217_v27 }
 0x5d8   : > { %1463 = vmatpush.msra.mxu2 %v2218_v19  ;;  %v2335_v19 = vld [vmem:[#allocation2 + $0x10] sm:$0xff] }
 0x5da   : > { %1464 = vmatpush.msra.mxu2 %v2219_v42  ;;  %v2336_v42 = vld [vmem:[#allocation2 + $0x18] sm:$0xff] }
 0x5dd   : > { %v1349_v8 = vpop.permute.xlu1 %1348 }
 0x5de   : > { %v1402_v52 = vsel %vm557_vm6, %v2792_v43, %v1349_v8 }
 0x5e5   : > { %v1351_v31 = vpop.permute.xlu1 %1350 }
 0x5e6   : > { %v1403_v10 = vsel %vm557_vm6, %v2796_v44, %v1351_v31 }
 0x5ec   : > { %v938_v18 = vpop.f32.mrf.mxu0 }
 0x5ed   : > { %1354 = vrot.lane.b32.xlu1 %v938_v18, %s2372_s14  ;;  %v1353_v43 = vpop.permute.xlu1 %1352 }
 0x5ee   : > { %v1404_v16 = vsel %vm557_vm6, %v2798_v51, %v1353_v43  ;;  %v2965_v51 = vld [vmem:[%s2445_s18] sm:$0xff] }
 0x5f5   : > { %v1058_v2 = vpop.xlane.xlu0 %1057 }
 0x5f6   : > { %2298 = vrcp.f32 %v1058_v2 }
 0x5f7   : > { %2300 = vrcp.f32 %v1061_v63 }
 0x5fc   : > { %v2299_v59 = vpop.eup %2298 }
 0x5fd   : > { %v1261_v28 = vpop.xlane.xlu0 %1260  ;;  %v1074_v46 = vmul.f32 %v2299_v59, %v2289_v45  ;;  %v2301_v6 = vpop.eup %2300 }
 0x5fe   : > { %2302 = vrcp.f32 %v1261_v28  ;;  %v1075_v32 = vmul.f32 %v2301_v6, %v2881_v25 }
 0x5ff   : > { %2085 = vmatmul.msk.f32.gmra.mxu1 %vm620_vm8, %v1074_v46  ;;  %2304 = vrcp.f32 %v1064_v12  ;;  %v1486_v46 = vperm.slane %v2965_v51, 3 }
 0x600   : > { %v1326_v26 = vpop.f32.mrf.mxu0  ;;  %2306 = vrcp.f32 %v1264_v24 }
 0x601   : > { %1386 = vrot.lane.b32.xlu2 %v1326_v26, %s2373_s16  ;;  %2308 = vrcp.f32 %v1267_v55  ;;  %v2333_v26 = vld [vmem:[#allocation2] sm:$0xff] }
 0x604   : > { %v2303_v15 = vpop.eup %2302 }
 0x605   : > { %v1275_v29 = vmul.f32 %v2303_v15, %v2291_v0  ;;  %v2305_v41 = vpop.eup %2304  ;;  %v1067_v54 = vpop.xlane.xlu0 %1066 }
 0x606   : > { %v2307_v11 = vpop.eup %2306  ;;  %2310 = vrcp.f32 %v1067_v54  ;;  %v1076_v25 = vmul.f32 %v2305_v41, %v2883_v38 }
 0x607   : > { %2086 = vmatmul.msk.f32.gmra.mxu1 %vm620_vm8, %v1075_v32  ;;  %2102 = vmatmul.msk.f32.gmra.mxu0 %vm620_vm8, %v1275_v29  ;;  %v1276_v56 = vmul.f32 %v2307_v11, %v2891_v13  ;;  %v2309_v40 = vpop.eup %2308  ;;  %v2334_v29 = vld [vmem:[#allocation2 + $0x8] sm:$0xff] }
 0x608   : > { %v1329_v36 = vpop.f32.mrf.mxu0  ;;  %v1277_v9 = vmul.f32 %v2309_v40, %v2889_v7 }
 0x609   : > { %1388 = vrot.lane.b32.xlu2 %v1329_v36, %s2373_s16 }
 0x60c   : > { %v2311_v23 = vpop.eup %2310 }
 0x60d   : > { %v1077_v61 = vmul.f32 %v2311_v23, %v2295_v60 }
 0x60f   : > { %2087 = vmatmul.msk.f32.gmra.mxu1 %vm620_vm8, %v1076_v25  ;;  %2103 = vmatmul.msk.f32.gmra.mxu0 %vm620_vm8, %v1276_v56 }
 0x617   : > { %2088 = vmatmul.msk.f32.gmra.mxu1 %vm620_vm8, %v1077_v61  ;;  %2104 = vmatmul.msk.f32.gmra.mxu0 %vm620_vm8, %v1277_v9  ;;  %v2337_v61 = vld [vmem:[#allocation2 + $0x20] sm:$0x3] }
 0x618   : > { %v1347_v7 = vpop.permute.xlu0 %1346 }
 0x619   : > { %v1401_v20 = vsel %vm557_vm6, %v2790_v5, %v1347_v7 }
 0x624   : > { %v1126_v49 = vpop.f32.mrf.mxu1 }
 0x625   : > { %1366 = vrot.lane.b32.xlu0 %v1126_v49, %s2374_s17 }
 0x65b   : > { %v1387_v62 = vpop.permute.xlu2 %1386 }
 0x65f   : > { %v1355_v44 = vpop.permute.xlu1 %1354 }
 0x660   : > { %v1405_v12 = vsel %vm557_vm6, %v2802_v53, %v1355_v44 }
 0x663   : > { %v1389_v35 = vpop.permute.xlu2 %1388 }
 0x67c   : > { %v1129_v38 = vpop.f32.mrf.mxu1 }
 0x67d   : > { %1368 = vrot.lane.b32.xlu0 %v1129_v38, %s2374_s17 }
 0x684   : > { %v1132_v13 = vpop.f32.mrf.mxu1  ;;  %v1332_v50 = vpop.f32.mrf.mxu0 }
 0x685   : > { %1370 = vrot.lane.b32.xlu0 %v1132_v13, %s2374_s17  ;;  %1390 = vrot.lane.b32.xlu2 %v1332_v50, %s2373_s16 }
 0x68c   : > { %v1135_v47 = vpop.f32.mrf.mxu1  ;;  %v1335_v48 = vpop.f32.mrf.mxu0 }
 0x68d   : > { %1372 = vrot.lane.b32.xlu0 %v1135_v47, %s2374_s17  ;;  %1392 = vrot.lane.b32.xlu2 %v1335_v48, %s2373_s16 }
 0x694   : > { %v1138_v57 = vpop.f32.mrf.mxu1  ;;  %v1338_v58 = vpop.f32.mrf.mxu0 }
 0x695   : > { %1374 = vrot.lane.b32.xlu0 %v1138_v57, %s2374_s17  ;;  %1394 = vrot.lane.b32.xlu2 %v1338_v58, %s2373_s16 }
 0x697   : > { %v1367_v30 = vpop.permute.xlu0 %1366 }
 0x698   : > { %v1407_v45 = vsel %vm1406_vm10, %v1401_v20, %v1367_v30 }
 0x699   : > { %v1413_v4 = vsel %vm1412_vm11, %v1407_v45, %v1387_v62 }
 0x69a   : > { %2105 = vmatmul.msk.f32.vlgmr.msra.gmra.mxu2 %vm358_vm2, %v1413_v4 }
 0x6df   : > { %v1391_v5 = vpop.permute.xlu2 %1390 }
 0x6e7   : > { %v1393_v14 = vpop.permute.xlu2 %1392 }
 0x6ef   : > { %v1369_v22 = vpop.permute.xlu0 %1368  ;;  %v1395_v59 = vpop.permute.xlu2 %1394 }
 0x6f0   : > { %v1408_v39 = vsel %vm1406_vm10, %v1402_v52, %v1369_v22 }
 0x6f1   : > { %v1414_v0 = vsel %vm1412_vm11, %v1408_v39, %v1389_v35 }
 0x6f2   : > { %2106 = vmatmul.msk.f32.gmra.mxu2 %vm358_vm2, %v1414_v0 }
 0x6f7   : > { %v1371_v33 = vpop.permute.xlu0 %1370 }
 0x6f8   : > { %v1409_v60 = vsel %vm1406_vm10, %v1403_v10, %v1371_v33  ;;  %v357_v33 = vld [vmem:[%s2440_s15 + $0x18] sm:$0xff] }
 0x6f9   : > { %v1415_v3 = vsel %vm1412_vm11, %v1409_v60, %v1391_v5  ;;  %1642 = vmatpush.msra.mxu1 %v357_v33 }
 0x6fa   : > { %2107 = vmatmul.msk.f32.gmra.mxu2 %vm358_vm2, %v1415_v3  ;;  %v356_v3 = vld [vmem:[%s2440_s15 + $0x10] sm:$0xff] }
 0x6fb   : > { %1643 = vmatpush.msra.mxu1 %v356_v3 }
 0x6ff   : > { %v1373_v17 = vpop.permute.xlu0 %1372 }
 0x700   : > { %v1410_v18 = vsel %vm1406_vm10, %v1404_v16, %v1373_v17  ;;  %v354_v16 = vld [vmem:[%s2440_s15] sm:$0xff] }
 0x701   : > { %v1416_v63 = vsel %vm1412_vm11, %v1410_v18, %v1393_v14  ;;  %v355_v14 = vld [vmem:[%s2440_s15 + $0x8] sm:$0xff] }
 0x702   : > { %2108 = vmatmul.msk.f32.gmra.mxu2 %vm358_vm2, %v1416_v63  ;;  %1644 = vmatpush.msra.mxu1 %v355_v14 }
 0x704   : > { %1645 = vmatpush.msra.mxu1 %v354_v16 }
 0x707   : > { %v1375_v2 = vpop.permute.xlu0 %1374 }
 0x708   : > { %v1411_v24 = vsel %vm1406_vm10, %v1405_v12, %v1375_v2 }
 0x709   : > { %v1417_v28 = vsel %vm1412_vm11, %v1411_v24, %v1395_v59 }
 0x70a   : > { %2109 = vmatmul.msk.f32.gmra.mxu2 %vm358_vm2, %v1417_v28 }
 0x71d   : > { %v1466_v55 = vpop.f32.mrf.mxu2 }
 0x71e   : > { %v1481_v6 = vadd.f32 %v2333_v26, %v1466_v55  ;;  %v3028_v26 = vperm.slane %v2965_v51, 4 }
 0x720   : > { %v2968_v15 = vadd.f32 %v1486_v46, %v1481_v6 }
 0x722   : > { %v1492_v53 = vsel %vm358_vm2, %v2968_v15, 0.0 }
 0x723   : > { %1493 = vadd.xlane.f32.xlu1 %v1492_v53 }
 0x775   : > { %v1469_v32 = vpop.f32.mrf.mxu2 }
 0x776   : > { %v1482_v1 = vadd.f32 %v2334_v29, %v1469_v32  ;;  %v3032_v32 = vperm.slane %v2965_v51, 5 }
 0x778   : > { %v2972_v34 = vadd.f32 %v1486_v46, %v1482_v1 }
 0x77a   : > { %v1495_v37 = vsel %vm358_vm2, %v2972_v34, 0.0 }
 0x77b   : > { %1496 = vadd.xlane.f32.xlu0 %v1495_v37 }
 0x77d   : > { %v1472_v27 = vpop.f32.mrf.mxu2 }
 0x77e   : > { %v1483_v36 = vadd.f32 %v2335_v19, %v1472_v27 }
 0x780   : > { %v2976_v41 = vadd.f32 %v1486_v46, %v1483_v36 }
 0x782   : > { %v1498_v54 = vsel %vm358_vm2, %v2976_v41, 0.0 }
 0x783   : > { %1499 = vadd.xlane.f32.xlu2 %v1498_v54 }
 0x785   : > { %v1475_v11 = vpop.f32.mrf.mxu2 }
 0x786   : > { %v1484_v25 = vadd.f32 %v2336_v42, %v1475_v11 }
 0x788   : > { %v2980_v56 = vadd.f32 %v1486_v46, %v1484_v25 }
 0x78a   : > { %v1501_v40 = vsel %vm358_vm2, %v2980_v56, 0.0 }
 0x78b   : > { %1502 = vadd.xlane.f32.xlu1 %v1501_v40 }
 0x78d   : > { %v1478_v23 = vpop.f32.mrf.mxu2 }
 0x78e   : > { %v1485_v9 = vadd.f32 %v2337_v61, %v1478_v23 }
 0x790   : > { %v2984_v49 = vadd.f32 %v1486_v46, %v1485_v9 }
 0x792   : > { %v1504_v38 = vsel %vm371_vm3, %v2984_v49, 0.0 }
 0x793   : > { %1505 = vadd.xlane.f32.xlu0 %v1504_v38 }
 0x796   : > { %v1494_v13 = vpop.xlane.xlu1 %1493 }
 0x797   : > { %v1507_v50 = vmul.f32 %v1494_v13, %v2468_v21 }
 0x799   : > { %v1512_v47 = vsub.f32 %v2968_v15, %v1507_v50 }
 0x79b   : > { %v1517_v48 = vmul.f32 %v1512_v47, %v1512_v47 }
 0x79d   : > { %v1522_v7 = vsel %vm358_vm2, %v1517_v48, 0.0 }
 0x79e   : > { %1523 = vadd.xlane.f32.xlu2 %v1522_v7 }
 0x7ee   : > { %v1497_v57 = vpop.xlane.xlu0 %1496 }
 0x7ef   : > { %v1508_v58 = vmul.f32 %v1497_v57, %v2468_v21 }
 0x7f1   : > { %v2993_v20 = vsub.f32 %v2972_v34, %v1508_v58 }
 0x7f3   : > { %v1518_v30 = vmul.f32 %v2993_v20, %v2993_v20 }
 0x7f5   : > { %v1525_v62 = vsel %vm358_vm2, %v1518_v30, 0.0 }
 0x7f6   : > { %1526 = vadd.xlane.f32.xlu1 %v1525_v62  ;;  %v1500_v45 = vpop.xlane.xlu2 %1499 }
 0x7f7   : > { %v1509_v4 = vmul.f32 %v1500_v45, %v2468_v21 }
 0x7f9   : > { %v3000_v8 = vsub.f32 %v2976_v41, %v1509_v4 }
 0x7fb   : > { %v1519_v35 = vmul.f32 %v3000_v8, %v3000_v8 }
 0x7fd   : > { %v1528_v52 = vsel %vm358_vm2, %v1519_v35, 0.0 }
 0x7fe   : > { %v1503_v22 = vpop.xlane.xlu1 %1502  ;;  %1529 = vadd.xlane.f32.xlu0 %v1528_v52 }
 0x7ff   : > { %v1510_v39 = vmul.f32 %v1503_v22, %v2468_v21 }
 0x801   : > { %v3007_v0 = vsub.f32 %v2980_v56, %v1510_v39 }
 0x803   : > { %v1520_v31 = vmul.f32 %v3007_v0, %v3007_v0 }
 0x805   : > { %v1531_v5 = vsel %vm358_vm2, %v1520_v31, 0.0 }
 0x806   : > { %1532 = vadd.xlane.f32.xlu2 %v1531_v5  ;;  %v1506_v10 = vpop.xlane.xlu0 %1505 }
 0x807   : > { %v1511_v60 = vmul.f32 %v1506_v10, %v2468_v21 }
 0x809   : > { %v3016_v43 = vsub.f32 %v2984_v49, %v1511_v60 }
 0x80b   : > { %v1521_v17 = vmul.f32 %v3016_v43, %v3016_v43 }
 0x80d   : > { %v1534_v18 = vsel %vm371_vm3, %v1521_v17, 0.0 }
 0x80e   : > { %1535 = vadd.xlane.f32.xlu1 %v1534_v18 }
 0x811   : > { %v1524_v63 = vpop.xlane.xlu2 %1523 }
 0x812   : > { %v1537_v44 = vmul.f32 %v1524_v63, %v2468_v21  ;;  %1718 = vrot.lane.b32.xlu0 %v357_v33, %s2364_s13 }
 0x814   : > { %v1542_v12 = vadd.f32 1e-05, %v1537_v44 }
 0x816   : > { %2312 = vrsqrt.f32 %v1542_v12  ;;  %vm1553_vm13 = vweird.f32 %v1542_v12 }
 0x81a   : > { %1712 = vrot.lane.b32.xlu0 %v354_v16, %s2364_s13 }
 0x81c   : > { %v2313_v2 = vpop.eup %2312 }
 0x81d   : > { %v1548_v59 = vmul.f32 %v2313_v2, %v1542_v12  ;;  %vm1554_vm12 = vweird.f32 %v2313_v2 }
 0x81e   : > { %1716 = vrot.lane.b32.xlu2 %v356_v3, %s2364_s13  ;;  %vm1555_vm14 = vmor %vm1553_vm13, %vm1554_vm12  ;;  %vm1720_vm12 = vcmask 523264  }
 0x81f   : > { %v1549_v24 = vmul.f32 %v2313_v2, %v1548_v59 }
 0x821   : > { %v1550_v28 = vmul.f32 0.5, %v1549_v24 }
 0x823   : > { %v1551_v46 = vsub.f32 1.5, %v1550_v28 }
 0x825   : > { %v1552_v55 = vmul.f32 %v2313_v2, %v1551_v46 }
 0x827   : > { %v1556_v6 = vsel %vm1555_vm14, %v2313_v2, %v1552_v55  ;;  %1714 = vrot.lane.b32.xlu1 %v355_v14, %s2364_s13 }
 0x828   : > { %v1597_v53 = vmul.f32 %v1556_v6, %v1512_v47 }
 0x82a   : > { %v1603_v29 = vmul.f32 %v3028_v26, %v1597_v53 }
 0x82c   : > { %v1609_v1 = vadd.f32 %v3032_v32, %v1603_v29 }
 0x82e   : > { %2110 = vmatmul.msk.f32.vlgmr.msra.gmra.mxu1 %vm358_vm2, %v1609_v1 }
 0x869   : > { %v1527_v37 = vpop.xlane.xlu1 %1526 }
 0x86a   : > { %v1538_v27 = vmul.f32 %v1527_v37, %v2468_v21 }
 0x86c   : > { %v1543_v19 = vadd.f32 1e-05, %v1538_v27 }
 0x86e   : > { %2314 = vrsqrt.f32 %v1543_v19  ;;  %vm1563_vm0 = vweird.f32 %v1543_v19 }
 0x871   : > { %v1530_v36 = vpop.xlane.xlu0 %1529 }
 0x872   : > { %v1539_v54 = vmul.f32 %v1530_v36, %v2468_v21 }
 0x874   : > { %v2315_v11 = vpop.eup %2314  ;;  %v1544_v42 = vadd.f32 1e-05, %v1539_v54 }
 0x875   : > { %v1558_v25 = vmul.f32 %v2315_v11, %v1543_v19  ;;  %vm1564_vm15 = vweird.f32 %v2315_v11  ;;  %v1614_v19 = vperm.slane %v2965_v51, 6 }
 0x876   : > { %2316 = vrsqrt.f32 %v1544_v42  ;;  %vm1565_vm1 = vmor %vm1563_vm0, %vm1564_vm15  ;;  %vm1573_vm5 = vweird.f32 %v1544_v42 }
 0x877   : > { %v1559_v40 = vmul.f32 %v2315_v11, %v1558_v25 }
 0x879   : > { %v1560_v23 = vmul.f32 0.5, %v1559_v40  ;;  %v1533_v61 = vpop.xlane.xlu2 %1532 }
 0x87a   : > { %v1540_v9 = vmul.f32 %v1533_v61, %v2468_v21 }
 0x87b   : > { %v1561_v38 = vsub.f32 1.5, %v1560_v23 }
 0x87c   : > { %v2317_v13 = vpop.eup %2316  ;;  %v1545_v50 = vadd.f32 1e-05, %v1540_v9 }
 0x87d   : > { %v1562_v47 = vmul.f32 %v2315_v11, %v1561_v38  ;;  %v1568_v48 = vmul.f32 %v2317_v13, %v1544_v42  ;;  %vm1574_vm4 = vweird.f32 %v2317_v13 }
 0x87e   : > { %2318 = vrsqrt.f32 %v1545_v50  ;;  %vm1575_vm6 = vmor %vm1573_vm5, %vm1574_vm4  ;;  %vm1583_vm8 = vweird.f32 %v1545_v50 }
 0x87f   : > { %v1566_v7 = vsel %vm1565_vm1, %v2315_v11, %v1562_v47  ;;  %v1569_v57 = vmul.f32 %v2317_v13, %v1568_v48 }
 0x880   : > { %v1598_v58 = vmul.f32 %v1566_v7, %v2993_v20 }
 0x881   : > { %v1570_v30 = vmul.f32 0.5, %v1569_v57  ;;  %v1536_v62 = vpop.xlane.xlu1 %1535 }
 0x882   : > { %v1541_v45 = vmul.f32 %v1536_v62, %v2468_v21  ;;  %v1604_v4 = vmul.f32 %v3028_v26, %v1598_v58 }
 0x883   : > { %v1571_v35 = vsub.f32 1.5, %v1570_v30 }
 0x884   : > { %v2319_v52 = vpop.eup %2318  ;;  %v1546_v22 = vadd.f32 1e-05, %v1541_v45  ;;  %v1610_v39 = vadd.f32 %v3032_v32, %v1604_v4  ;;  %v1719_v55 = vpop.permute.xlu0 %1718 }
 0x885   : > { %v1572_v31 = vmul.f32 %v2317_v13, %v1571_v35  ;;  %v1578_v5 = vmul.f32 %v2319_v52, %v1545_v50  ;;  %vm1584_vm7 = vweird.f32 %v2319_v52  ;;  %2115 = vmatpush.xpose.msk.msra.mxu3 %vm1720_vm12, %v1719_v55 }
 0x886   : > { %2320 = vrsqrt.f32 %v1546_v22  ;;  %2111 = vmatmul.msk.f32.gmra.mxu1 %vm358_vm2, %v1610_v39  ;;  %vm1585_vm9 = vmor %vm1583_vm8, %vm1584_vm7  ;;  %vm1593_vm11 = vweird.f32 %v1546_v22 }
 0x887   : > { %v1576_v20 = vsel %vm1575_vm6, %v2317_v13, %v1572_v31  ;;  %v1579_v10 = vmul.f32 %v2319_v52, %v1578_v5 }
 0x888   : > { %v1599_v33 = vmul.f32 %v1576_v20, %v3000_v8 }
 0x889   : > { %v1580_v60 = vmul.f32 0.5, %v1579_v10 }
 0x88a   : > { %v1605_v3 = vmul.f32 %v3028_v26, %v1599_v33 }
 0x88b   : > { %v1581_v14 = vsub.f32 1.5, %v1580_v60 }
 0x88c   : > { %v2321_v16 = vpop.eup %2320  ;;  %v1611_v17 = vadd.f32 %v3032_v32, %v1605_v3  ;;  %v1713_v27 = vpop.permute.xlu0 %1712 }
 0x88d   : > { %v1582_v18 = vmul.f32 %v2319_v52, %v1581_v14  ;;  %v1588_v63 = vmul.f32 %v2321_v16, %v1546_v22  ;;  %vm1594_vm10 = vweird.f32 %v2321_v16 }
 0x88e   : > { %2112 = vmatmul.msk.f32.gmra.mxu1 %vm358_vm2, %v1611_v17  ;;  %vm1595_vm13 = vmor %vm1593_vm11, %vm1594_vm10 }
 0x88f   : > { %v1586_v44 = vsel %vm1585_vm9, %v2319_v52, %v1582_v18  ;;  %v1589_v12 = vmul.f32 %v2321_v16, %v1588_v63 }
 0x890   : > { %v1600_v2 = vmul.f32 %v1586_v44, %v3007_v0  ;;  %v1717_v0 = vpop.permute.xlu2 %1716 }
 0x891   : > { %v1590_v59 = vmul.f32 0.5, %v1589_v12  ;;  %2116 = vmatpush.xpose.msk.msra.mxu3 %vm1720_vm12, %v1717_v0 }
 0x892   : > { %v1606_v8 = vmul.f32 %v3028_v26, %v1600_v2 }
 0x893   : > { %v1591_v24 = vsub.f32 1.5, %v1590_v59 }
 0x894   : > { %v1612_v28 = vadd.f32 %v3032_v32, %v1606_v8 }
 0x895   : > { %v1592_v46 = vmul.f32 %v2321_v16, %v1591_v24 }
 0x896   : > { %2113 = vmatmul.msk.f32.gmra.mxu1 %vm358_vm2, %v1612_v28 }
 0x897   : > { %v1596_v6 = vsel %vm1595_vm13, %v2321_v16, %v1592_v46 }
 0x898   : > { %v1601_v53 = vmul.f32 %v1596_v6, %v3016_v43 }
 0x899   : > { %v1715_v37 = vpop.permute.xlu1 %1714 }
 0x89a   : > { %v1607_v29 = vmul.f32 %v3028_v26, %v1601_v53  ;;  %2117 = vmatpush.xpose.msk.msra.mxu3 %vm1720_vm12, %v1715_v37 }
 0x89c   : > { %v1613_v1 = vadd.f32 %v3032_v32, %v1607_v29 }
 0x89e   : > { %2114 = vmatmul.msk.f32.gmra.mxu1 %vm358_vm2, %v1613_v1  ;;  %2118 = vmatpush.xpose.msk.msra.mxu3 %vm1720_vm12, %v1713_v27  ;;  %v1707_v27 = vperm.slane %v2965_v51, 7 }
 0x8ab   : > { %v1647_v36 = vpop.f32.mrf.mxu1 }
 0x8ac   : > { %v1648_v54 = vadd.f32 %v1647_v36, %v1614_v19 }
 0x8ae   : > { %v1662_v43 = vmul.f32 %v1648_v54, %v1648_v54 }
 0x8b0   : > { %v1667_v11 = vmul.f32 %v1662_v43, %v1648_v54 }
 0x8b2   : > { %v1672_v42 = vmul.f32 0.044715, %v1667_v11 }
 0x8b4   : > { %v1677_v26 = vadd.f32 %v1672_v42, %v1648_v54 }
 0x8b6   : > { %v1682_v25 = vmul.f32 0.7978846, %v1677_v26 }
 0x8b8   : > { %2322 = vtanh.f32 %v1682_v25 }
 0x8be   : > { %v2323_v40 = vpop.eup %2322 }
 0x8bf   : > { %v1692_v32 = vadd.f32 1.0, %v2323_v40 }
 0x8c1   : > { %v1697_v23 = vmul.f32 0.5, %v1692_v32 }
 0x8c3   : > { %v1702_v61 = vmul.f32 %v1697_v23, %v1648_v54 }
 0x8c5   : > { %2119 = vmatmul.msk.f32.vlgmr.msra.gmra.mxu3 %vm1720_vm12, %v1702_v61 }
 0x903   : > { %v1650_v9 = vpop.f32.mrf.mxu1 }
 0x904   : > { %v1651_v38 = vadd.f32 %v1650_v9, %v1614_v19 }
 0x906   : > { %v1663_v13 = vmul.f32 %v1651_v38, %v1651_v38 }
 0x908   : > { %v1668_v50 = vmul.f32 %v1663_v13, %v1651_v38 }
 0x90a   : > { %v1673_v47 = vmul.f32 0.044715, %v1668_v50 }
 0x90b   : > { %v1653_v48 = vpop.f32.mrf.mxu1 }
 0x90c   : > { %v1678_v7 = vadd.f32 %v1673_v47, %v1651_v38  ;;  %v1654_v57 = vadd.f32 %v1653_v48, %v1614_v19 }
 0x90e   : > { %v1664_v58 = vmul.f32 %v1654_v57, %v1654_v57  ;;  %v1683_v30 = vmul.f32 0.7978846, %v1678_v7 }
 0x910   : > { %v1669_v62 = vmul.f32 %v1664_v58, %v1654_v57  ;;  %2324 = vtanh.f32 %v1683_v30 }
 0x912   : > { %v1674_v45 = vmul.f32 0.044715, %v1669_v62 }
 0x913   : > { %v1656_v4 = vpop.f32.mrf.mxu1 }
 0x914   : > { %v1679_v35 = vadd.f32 %v1674_v45, %v1654_v57  ;;  %v1657_v52 = vadd.f32 %v1656_v4, %v1614_v19 }
 0x916   : > { %v2325_v22 = vpop.eup %2324  ;;  %v1665_v39 = vmul.f32 %v1657_v52, %v1657_v52  ;;  %v1684_v31 = vmul.f32 0.7978846, %v1679_v35 }
 0x917   : > { %v1693_v5 = vadd.f32 1.0, %v2325_v22 }
 0x918   : > { %v1670_v20 = vmul.f32 %v1665_v39, %v1657_v52  ;;  %2326 = vtanh.f32 %v1684_v31 }
 0x919   : > { %v1698_v10 = vmul.f32 0.5, %v1693_v5 }
 0x91a   : > { %v1675_v33 = vmul.f32 0.044715, %v1670_v20 }
 0x91b   : > { %v1659_v60 = vpop.f32.mrf.mxu1  ;;  %v1703_v3 = vmul.f32 %v1698_v10, %v1651_v38 }
 0x91c   : > { %v1680_v14 = vadd.f32 %v1675_v33, %v1657_v52  ;;  %v1660_v16 = vadd.f32 %v1659_v60, %v1614_v19 }
 0x91d   : > { %2120 = vmatmul.msk.f32.gmra.mxu3 %vm1720_vm12, %v1703_v3 }
 0x91e   : > { %v2327_v17 = vpop.eup %2326  ;;  %v1666_v18 = vmul.f32 %v1660_v16, %v1660_v16  ;;  %v1685_v63 = vmul.f32 0.7978846, %v1680_v14 }
 0x91f   : > { %v1694_v44 = vadd.f32 1.0, %v2327_v17 }
 0x920   : > { %v1671_v12 = vmul.f32 %v1666_v18, %v1660_v16  ;;  %2328 = vtanh.f32 %v1685_v63 }
 0x921   : > { %v1699_v2 = vmul.f32 0.5, %v1694_v44 }
 0x922   : > { %v1676_v59 = vmul.f32 0.044715, %v1671_v12 }
 0x923   : > { %v1704_v8 = vmul.f32 %v1699_v2, %v1654_v57 }
 0x924   : > { %v1681_v24 = vadd.f32 %v1676_v59, %v1660_v16 }
 0x925   : > { %2121 = vmatmul.msk.f32.gmra.mxu3 %vm1720_vm12, %v1704_v8 }
 0x926   : > { %v2329_v28 = vpop.eup %2328  ;;  %v1686_v46 = vmul.f32 0.7978846, %v1681_v24 }
 0x927   : > { %v1695_v55 = vadd.f32 1.0, %v2329_v28 }
 0x928   : > { %2330 = vtanh.f32 %v1686_v46 }
 0x929   : > { %v1700_v6 = vmul.f32 0.5, %v1695_v55 }
 0x92b   : > { %v1705_v53 = vmul.f32 %v1700_v6, %v1657_v52 }
 0x92d   : > { %2122 = vmatmul.msk.f32.gmra.mxu3 %vm1720_vm12, %v1705_v53 }
 0x92e   : > { %v2331_v0 = vpop.eup %2330 }
 0x92f   : > { %v1696_v29 = vadd.f32 1.0, %v2331_v0 }
 0x931   : > { %v1701_v1 = vmul.f32 0.5, %v1696_v29 }
 0x933   : > { %v1706_v37 = vmul.f32 %v1701_v1, %v1660_v16 }
 0x935   : > { %2123 = vmatmul.msk.f32.gmra.mxu3 %vm1720_vm12, %v1706_v37 }
 0x948   : > { %v1761_v19 = vpop.f32.mrf.mxu3 }
 0x949   : > { %v1762_v36 = vadd.f32 %v1761_v19, %v1707_v27 }
 0x94b   : > { %v1776_v54 = vadd.f32 %v1762_v36, %v2968_v15 }
 0x94d   : > { %1781 = vst.msk [vmem:[#allocation2] sm:$0xff] %vm358_vm2, %v1776_v54 }
 0x9a0   : > { %v1764_v43 = vpop.f32.mrf.mxu3 }
 0x9a1   : > { %v1765_v11 = vadd.f32 %v1764_v43, %v1707_v27 }
 0x9a3   : > { %v1777_v42 = vadd.f32 %v1765_v11, %v2972_v34 }
 0x9a5   : > { %1782 = vst.msk [vmem:[#allocation2 + $0x8] sm:$0xff] %vm358_vm2, %v1777_v42 }
 0x9a8   : > { %v1767_v26 = vpop.f32.mrf.mxu3 }
 0x9a9   : > { %v1768_v25 = vadd.f32 %v1767_v26, %v1707_v27 }
 0x9ab   : > { %v1778_v40 = vadd.f32 %v1768_v25, %v2976_v41 }
 0x9ad   : > { %1783 = vst.msk [vmem:[#allocation2 + $0x10] sm:$0xff] %vm358_vm2, %v1778_v40 }
 0x9b0   : > { %v1770_v32 = vpop.f32.mrf.mxu3 }
 0x9b1   : > { %v1771_v51 = vadd.f32 %v1770_v32, %v1707_v27 }
 0x9b3   : > { %v1779_v23 = vadd.f32 %v1771_v51, %v2980_v56 }
 0x9b5   : > { %1784 = vst.msk [vmem:[#allocation2 + $0x18] sm:$0xff] %vm358_vm2, %v1779_v23 }
 0x9b8   : > { %v1773_v15 = vpop.f32.mrf.mxu3 }
 0x9b9   : > { %v1774_v61 = vadd.f32 %v1773_v15, %v1707_v27  ;;  %1789 = sbr.rel (%p2124_p5) target bundleno = 2907 (0xb5b), region = 60 }
 0x9bb   : > { %v1780_v9 = vadd.f32 %v1774_v61, %v2984_v49 }
 0x9bd   : > { %1785 = vst.msk [vmem:[#allocation2 + $0x20] sm:$0x3] %vm371_vm3, %v1780_v9 }
 0x9be   : > { %v1804_v34 = vsel %vm371_vm3, %v1780_v9, 0.0  ;;  %v1801_v41 = vsel %vm358_vm2, %v1779_v23, 0.0  ;;  %v1795_v38 = vsel %vm358_vm2, %v1777_v42, 0.0  ;;  %v1798_v56 = vsel %vm358_vm2, %v1778_v40, 0.0  ;;  %v1917_v18 = vld [vmem:[%s3174_s6 + $0x18] sm:$0xff]  ;;  %v1916_v63 = vld [vmem:[%s3174_s6 + $0x10] sm:$0xff] }
 0x9bf   : > { %1805 = vadd.xlane.f32.xlu1 %v1804_v34  ;;  %1802 = vadd.xlane.f32.xlu0 %v1801_v41  ;;  %v1792_v13 = vsel %vm358_vm2, %v1776_v54, 0.0  ;;  %v1915_v44 = vld [vmem:[%s3174_s6 + $0x8] sm:$0xff]  ;;  %v1914_v12 = vld [vmem:[%s3174_s6] sm:$0xff] }
 0x9c0   : > { %1796 = vadd.xlane.f32.xlu2 %v1795_v38  ;;  %2136 = vmatpush.msra.mxu3 %v1917_v18  ;;  %v2338_v38 = vld [vmem:[%s3173_s5] ss:$0 sm:$0xff] }
 0x9c1   : > { %1949 = vmatpush.msra.mxu0 %v1917_v18  ;;  %2135 = vmatpush.msra.mxu2 %v1917_v18 }
 0x9c2   : > { %2134 = vmatpush.msra.mxu1 %v1917_v18  ;;  %2139 = vmatpush.msra.mxu3 %v1916_v63 }
 0x9c3   : > { %1950 = vmatpush.msra.mxu0 %v1916_v63  ;;  %2138 = vmatpush.msra.mxu2 %v1916_v63 }
 0x9c4   : > { %2137 = vmatpush.msra.mxu1 %v1916_v63  ;;  %2142 = vmatpush.msra.mxu3 %v1915_v44 }
 0x9c5   : > { %1951 = vmatpush.msra.mxu0 %v1915_v44  ;;  %2141 = vmatpush.msra.mxu2 %v1915_v44 }
 0x9c6   : > { %2140 = vmatpush.msra.mxu1 %v1915_v44  ;;  %2145 = vmatpush.msra.mxu3 %v1914_v12 }
 0x9c7   : > { %1799 = vadd.xlane.f32.xlu0 %v1798_v56  ;;  %1793 = vadd.xlane.f32.xlu1 %v1792_v13 }
 0x9c8   : > { %1952 = vmatpush.msra.mxu0 %v1914_v12  ;;  %2144 = vmatpush.msra.mxu2 %v1914_v12 }
 0x9c9   : > { %2143 = vmatpush.msra.mxu1 %v1914_v12 }
 0xa32   : > { %v1806_v49 = vpop.xlane.xlu1 %1805  ;;  %v1803_v50 = vpop.xlane.xlu0 %1802 }
 0xa33   : > { %v1811_v47 = vmul.f32 %v1806_v49, %v2468_v21  ;;  %v1810_v48 = vmul.f32 %v1803_v50, %v2468_v21  ;;  %v1797_v62 = vpop.xlane.xlu2 %1796  ;;  %v2339_v50 = vld [vmem:[%s3173_s5 + $0x1] ss:$0 sm:$0xff] }
 0xa34   : > { %v1808_v31 = vmul.f32 %v1797_v62, %v2468_v21 }
 0xa35   : > { %v3086_v7 = vsub.f32 %v1780_v9, %v1811_v47  ;;  %v3088_v57 = vsub.f32 %v1779_v23, %v1810_v48 }
 0xa36   : > { %v3105_v33 = vsub.f32 %v1777_v42, %v1808_v31 }
 0xa37   : > { %v1820_v58 = vmul.f32 %v3088_v57, %v3088_v57  ;;  %v1821_v30 = vmul.f32 %v3086_v7, %v3086_v7 }
 0xa38   : > { %v1818_v16 = vmul.f32 %v3105_v33, %v3105_v33 }
 0xa39   : > { %v1831_v45 = vsel %vm358_vm2, %v1820_v58, 0.0  ;;  %v1834_v4 = vsel %vm371_vm3, %v1821_v30, 0.0 }
 0xa3a   : > { %v1800_v35 = vpop.xlane.xlu0 %1799  ;;  %1832 = vadd.xlane.f32.xlu2 %v1831_v45  ;;  %1835 = vadd.xlane.f32.xlu1 %v1834_v4  ;;  %v1794_v52 = vpop.xlane.xlu1 %1793  ;;  %v1825_v17 = vsel %vm358_vm2, %v1818_v16, 0.0 }
 0xa3b   : > { %v1809_v22 = vmul.f32 %v1800_v35, %v2468_v21  ;;  %v1807_v39 = vmul.f32 %v1794_v52, %v2468_v21 }
 0xa3d   : > { %v3099_v5 = vsub.f32 %v1778_v40, %v1809_v22  ;;  %v3101_v20 = vsub.f32 %v1776_v54, %v1807_v39 }
 0xa3f   : > { %v1819_v10 = vmul.f32 %v3099_v5, %v3099_v5  ;;  %v1817_v60 = vmul.f32 %v3101_v20, %v3101_v20 }
 0xa41   : > { %v1828_v3 = vsel %vm358_vm2, %v1819_v10, 0.0  ;;  %v1822_v14 = vsel %vm358_vm2, %v1817_v60, 0.0 }
 0xa42   : > { %1829 = vadd.xlane.f32.xlu0 %v1828_v3  ;;  %1823 = vadd.xlane.f32.xlu2 %v1822_v14 }
 0xa4a   : > { %1826 = vadd.xlane.f32.xlu0 %v1825_v17 }
 0xaad   : > { %v1833_v2 = vpop.xlane.xlu2 %1832  ;;  %v1836_v59 = vpop.xlane.xlu1 %1835 }
 0xaae   : > { %v1840_v8 = vmul.f32 %v1833_v2, %v2468_v21  ;;  %v1841_v24 = vmul.f32 %v1836_v59, %v2468_v21 }
 0xab0   : > { %v1845_v28 = vadd.f32 1e-05, %v1840_v8  ;;  %v1846_v46 = vadd.f32 1e-05, %v1841_v24 }
 0xab2   : > { %2341 = vrsqrt.f32 %v1845_v28  ;;  %vm1883_vm14 = vweird.f32 %v1845_v28  ;;  %vm1893_vm15 = vweird.f32 %v1846_v46 }
 0xab3   : > { %2343 = vrsqrt.f32 %v1846_v46 }
 0xab5   : > { %v1830_v55 = vpop.xlane.xlu0 %1829  ;;  %v1824_v6 = vpop.xlane.xlu2 %1823 }
 0xab6   : > { %v1839_v53 = vmul.f32 %v1830_v55, %v2468_v21  ;;  %v1837_v0 = vmul.f32 %v1824_v6, %v2468_v21 }
 0xab8   : > { %v2342_v29 = vpop.eup %2341  ;;  %v1844_v1 = vadd.f32 1e-05, %v1839_v53  ;;  %v1842_v37 = vadd.f32 1e-05, %v1837_v0 }
 0xab9   : > { %v2344_v27 = vpop.eup %2343  ;;  %v1878_v19 = vmul.f32 %v2342_v29, %v1845_v28  ;;  %vm1884_vm3 = vweird.f32 %v2342_v29  ;;  %v2340_v28 = vld [vmem:[%s3175_s7] ss:$0 sm:$0xff] }
 0xaba   : > { %v1888_v36 = vmul.f32 %v2344_v27, %v1846_v46  ;;  %2345 = vrsqrt.f32 %v1844_v1  ;;  %vm1894_vm0 = vweird.f32 %v2344_v27  ;;  %vm1885_vm1 = vmor %vm1883_vm14, %vm1884_vm3  ;;  %vm1853_vm6 = vweird.f32 %v1842_v37 }
 0xabb   : > { %v1879_v54 = vmul.f32 %v2342_v29, %v1878_v19  ;;  %2347 = vrsqrt.f32 %v1842_v37  ;;  %vm1895_vm4 = vmor %vm1893_vm15, %vm1894_vm0  ;;  %vm1873_vm8 = vweird.f32 %v1844_v1 }
 0xabc   : > { %v1889_v43 = vmul.f32 %v2344_v27, %v1888_v36 }
 0xabd   : > { %v1880_v11 = vmul.f32 0.5, %v1879_v54  ;;  %v1827_v42 = vpop.xlane.xlu0 %1826 }
 0xabe   : > { %v1890_v26 = vmul.f32 0.5, %v1889_v43  ;;  %v1838_v25 = vmul.f32 %v1827_v42, %v2468_v21 }
 0xabf   : > { %v1881_v40 = vsub.f32 1.5, %v1880_v11 }
 0xac0   : > { %v2346_v32 = vpop.eup %2345  ;;  %v1891_v51 = vsub.f32 1.5, %v1890_v26  ;;  %v1843_v23 = vadd.f32 1e-05, %v1838_v25 }
 0xac1   : > { %v2348_v15 = vpop.eup %2347  ;;  %v1882_v61 = vmul.f32 %v2342_v29, %v1881_v40  ;;  %v1868_v9 = vmul.f32 %v2346_v32, %v1844_v1  ;;  %vm1874_vm5 = vweird.f32 %v2346_v32 }
 0xac2   : > { %v1892_v34 = vmul.f32 %v2344_v27, %v1891_v51  ;;  %v1848_v41 = vmul.f32 %v2348_v15, %v1842_v37  ;;  %2349 = vrsqrt.f32 %v1843_v23  ;;  %vm1854_vm7 = vweird.f32 %v2348_v15  ;;  %vm1875_vm9 = vmor %vm1873_vm8, %vm1874_vm5 }
 0xac3   : > { %v1869_v21 = vmul.f32 %v2346_v32, %v1868_v9  ;;  %v1886_v56 = vsel %vm1885_vm1, %v2342_v29, %v1882_v61  ;;  %vm1855_vm10 = vmor %vm1853_vm6, %vm1854_vm7  ;;  %vm1863_vm12 = vweird.f32 %v1843_v23 }
 0xac4   : > { %v1849_v13 = vmul.f32 %v2348_v15, %v1848_v41  ;;  %v1900_v49 = vmul.f32 %v1886_v56, %v3088_v57  ;;  %v1896_v48 = vsel %vm1895_vm4, %v2344_v27, %v1892_v34 }
 0xac5   : > { %v1870_v47 = vmul.f32 0.5, %v1869_v21  ;;  %v1901_v52 = vmul.f32 %v1896_v48, %v3086_v7 }
 0xac6   : > { %v1850_v58 = vmul.f32 0.5, %v1849_v13  ;;  %v1906_v30 = vmul.f32 %v2338_v38, %v1900_v49 }
 0xac7   : > { %v1871_v62 = vsub.f32 1.5, %v1870_v47  ;;  %v1907_v14 = vmul.f32 %v2338_v38, %v1901_v52 }
 0xac8   : > { %v2350_v45 = vpop.eup %2349  ;;  %v1851_v4 = vsub.f32 1.5, %v1850_v58  ;;  %v1912_v35 = vadd.f32 %v2339_v50, %v1906_v30 }
 0xac9   : > { %v1872_v22 = vmul.f32 %v2346_v32, %v1871_v62  ;;  %v1858_v57 = vmul.f32 %v2350_v45, %v1843_v23  ;;  %vm1864_vm11 = vweird.f32 %v2350_v45  ;;  %v1913_v12 = vadd.f32 %v2339_v50, %v1907_v14 }
 0xaca   : > { %v1852_v39 = vmul.f32 %v2348_v15, %v1851_v4  ;;  %2128 = vmatmul.msk.f32.vlgmr.msra.gmra.mxu3 %vm358_vm2, %v1912_v35  ;;  %vm1865_vm13 = vmor %vm1863_vm12, %vm1864_vm11 }
 0xacb   : > { %v1859_v31 = vmul.f32 %v2350_v45, %v1858_v57  ;;  %v1876_v10 = vsel %vm1875_vm9, %v2346_v32, %v1872_v22 }
 0xacc   : > { %v1856_v60 = vsel %vm1855_vm10, %v2348_v15, %v1852_v39  ;;  %v1899_v3 = vmul.f32 %v1876_v10, %v3099_v5 }
 0xacd   : > { %v1860_v16 = vmul.f32 0.5, %v1859_v31  ;;  %v1897_v17 = vmul.f32 %v1856_v60, %v3101_v20 }
 0xace   : > { %v1905_v18 = vmul.f32 %v2338_v38, %v1899_v3 }
 0xacf   : > { %v1861_v63 = vsub.f32 1.5, %v1860_v16  ;;  %v1903_v7 = vmul.f32 %v2338_v38, %v1897_v17 }
 0xad0   : > { %v1911_v44 = vadd.f32 %v2339_v50, %v1905_v18 }
 0xad1   : > { %v1862_v2 = vmul.f32 %v2350_v45, %v1861_v63  ;;  %v1909_v59 = vadd.f32 %v2339_v50, %v1903_v7 }
 0xad2   : > { %2127 = vmatmul.msk.f32.vlgmr.msra.gmra.mxu2 %vm358_vm2, %v1911_v44  ;;  %2129 = vmatmul.msk.f32.gmra.mxu3 %vm358_vm2, %v1913_v12 }
 0xad3   : > { %2125 = vmatmul.msk.f32.vlgmr.msra.gmra.mxu0 %vm358_vm2, %v1909_v59  ;;  %v1866_v5 = vsel %vm1865_vm13, %v2350_v45, %v1862_v2 }
 0xad4   : > { %v1898_v8 = vmul.f32 %v1866_v5, %v3105_v33 }
 0xad6   : > { %v1904_v20 = vmul.f32 %v2338_v38, %v1898_v8 }
 0xad8   : > { %v1910_v24 = vadd.f32 %v2339_v50, %v1904_v20 }
 0xada   : > { %2126 = vmatmul.msk.f32.vlgmr.msra.gmra.mxu1 %vm358_vm2, %v1910_v24 }
 0xb4d   : > { %v1963_v46 = vpop.f32.mrf.mxu3 }
 0xb4e   : > { %v1964_v55 = vadd.f32 %v2340_v28, %v1963_v46 }
 0xb50   : > { %1972 = vst [vmem:[%s3176_s8 + $0x18] sm:$0xff] %v1964_v55  ;;  %v1954_v6 = vpop.f32.mrf.mxu0 }
 0xb51   : > { %v1955_v53 = vadd.f32 %v2340_v28, %v1954_v6 }
 0xb53   : > { %1969 = vst [vmem:[%s3176_s8] sm:$0xff] %v1955_v53 }
 0xb55   : > { %v1960_v33 = vpop.f32.mrf.mxu2  ;;  %v1966_v0 = vpop.f32.mrf.mxu3 }
 0xb56   : > { %v1961_v29 = vadd.f32 %v2340_v28, %v1960_v33  ;;  %v1967_v1 = vadd.f32 %v2340_v28, %v1966_v0 }
 0xb57   : > { %v1957_v37 = vpop.f32.mrf.mxu1 }
 0xb58   : > { %1971 = vst [vmem:[%s3176_s8 + $0x10] sm:$0xff] %v1961_v29  ;;  %v1958_v27 = vadd.f32 %v2340_v28, %v1957_v37 }
 0xb59   : > { %1973 = vst [vmem:[%s3176_s8 + $0x20] sm:$0x3] %v1967_v1 }
 0xb5a   : > { %1970 = vst [vmem:[%s3176_s8 + $0x8] sm:$0xff] %v1958_v27 }
 0xb5b PF: > { %s18_s27 = sadd.s32 1, %s2357_s27  }
 0xb5c   : > { %p15_p6 = scmp.ge.s32.totalorder %s18_s27, 4  }
 0xb5e   :  { %17 = sbr.rel (!%p15_p6) target bundleno = 1 (0x1), region = 92 }

</bundles_post_ra>
